<compile_context>
chip_gen: v6e
topology: v6e:2x2x1
jax: 0.10.0
libtpu: 0.0.40
codegen_flags: <defaults>
</compile_context>

<pallas_src>
import math

import numpy as np
import jax
import jax.numpy as jnp
from jax.experimental import pallas as pl
from jax.experimental.pallas import tpu as pltpu

# ----------------------------- config (small, deterministic) -----------------------------
LATENT = 32          # config.latent_ndim (must be divisible by 8 for the conv chain)
NHEADS = 4           # config.nheads
NLAYERS = 2          # config.nlayers
SEQ_LEN = 90         # implied by the ConvTranspose1d chain
N_TOKENS = 15        # 13 keypoint tokens + 2 bbox tokens
N_KPS = 13
N_BBOX = 2
HD = LATENT // NHEADS
DFF = LATENT * 4
EPS = 1e-5
PAD_OUT = 256        # lane-dense padded output width (>= 2 * SEQ_LEN = 180)
PAD3 = 128           # stage-3 recon activation width padded 116 -> 128

N_ENC_PARAMS = 16    # stacked-over-layers encoder params (head-major attention packing)
N_REC_PARAMS = 14    # per reconstruction head: 3x(A, b, gamma, beta) + (A4, b4)

# (real GroupNorm width, number of zero-padded columns) per recon stage
REC_GN = ((48, 0), (72, 0), (116, 12))


# ===================================== Pallas kernel =====================================
def _layer_norm(x, g, b):
    m = jnp.mean(x, axis=-1, keepdims=True)
    xc = x - m
    v = jnp.mean(xc * xc, axis=-1, keepdims=True)
    return xc * jax.lax.rsqrt(v + EPS) * g + b


def _reconstruction(h, p):
    """Reconstruction head on (BB, n_pts, LATENT): 3x (convT-as-matmul + GroupNorm(1,C) + SiLU)
    + final convT-as-matmul (lane-padded) + tanh.  Padded columns carry gamma=beta=0 and zero
    rows in the next stage's matrix, so they stay exactly zero."""
    for i, (n_real, n_pad) in enumerate(REC_GN):
        A, b, g, be = p[4 * i], p[4 * i + 1], p[4 * i + 2], p[4 * i + 3]
        h = jnp.einsum('btc,cd->btd', h, A[...],
                       preferred_element_type=jnp.float32) + b[...]
        # GroupNorm(num_groups=1): stats over the n_real real elements of each row.
        inv = 1.0 / n_real
        m = jnp.sum(h, axis=-1, keepdims=True) * inv          # padded cols are 0 -> sum correct
        hc = h - m
        ssq = jnp.sum(hc * hc, axis=-1, keepdims=True)
        if n_pad:
            ssq = ssq - n_pad * (m * m)                        # remove padded (-m)^2 contributions
        v = ssq * inv
        h = hc * jax.lax.rsqrt(v + EPS) * g[...] + be[...]
        h = h * jax.nn.sigmoid(h)                              # SiLU
    h = jnp.einsum('btc,cd->btd', h, p[12][...],
                   preferred_element_type=jnp.float32) + p[13][...]
    return jnp.tanh(h)


def decoder_kernel(*refs):
    """Fully fused Decoder forward for one block of BB batch elements (grid over batch blocks)."""
    x_ref = refs[0]
    enc = refs[1:1 + N_ENC_PARAMS]
    kps_p = refs[1 + N_ENC_PARAMS:1 + N_ENC_PARAMS + N_REC_PARAMS]
    bbox_p = refs[1 + N_ENC_PARAMS + N_REC_PARAMS:1 + N_ENC_PARAMS + 2 * N_REC_PARAMS]
    out_kps_ref, out_bbox_ref = refs[-2], refs[-1]

    (wq, bq, wk, bk, wv, bv, wo, bo,
     g1, be1, wf1, bf1, wf2, bf2, g2, be2) = enc

    x = x_ref[...]                                    # (BB, N_TOKENS, LATENT)

    for l in range(NLAYERS):                          # unrolled (NLAYERS = 2)
        # -------- self-attention: head-major weights, batched contractions, no concat ----------
        attn = None
        for h in range(NHEADS):                       # unrolled over heads
            # scale 1/sqrt(HD) is pre-folded into wq / bq at init time
            qh = jnp.einsum('bnd,dk->bnk', x, wq[l, h],
                            preferred_element_type=jnp.float32) + bq[l, h]   # (BB, N, HD)
            kh = jnp.einsum('bnd,dk->bnk', x, wk[l, h],
                            preferred_element_type=jnp.float32) + bk[l, h]
            vh = jnp.einsum('bnd,dk->bnk', x, wv[l, h],
                            preferred_element_type=jnp.float32) + bv[l, h]
            s = jnp.einsum('bnk,bmk->bnm', qh, kh,
                           preferred_element_type=jnp.float32)               # (BB, N, N)
            s = s - jnp.max(s, axis=-1, keepdims=True)
            p = jnp.exp(s)
            p = p * pl.reciprocal(jnp.sum(p, axis=-1, keepdims=True), approx=True)
            oh = jnp.einsum('bnm,bmk->bnk', p, vh,
                            preferred_element_type=jnp.float32)              # (BB, N, HD)
            contrib = jnp.einsum('bnk,kd->bnd', oh, wo[l, h],
                                 preferred_element_type=jnp.float32)         # (BB, N, D)
            attn = contrib if attn is None else attn + contrib
        attn = attn + bo[l]

        x = _layer_norm(x + attn, g1[l], be1[l])

        # -------- feed-forward: Linear(D,4D) -> SiLU -> Linear(4D,D) --------
        ff = jnp.einsum('bnd,df->bnf', x, wf1[l],
                        preferred_element_type=jnp.float32) + bf1[l]
        ff = ff * jax.nn.sigmoid(ff)                  # SiLU
        ff = jnp.einsum('bnf,fd->bnd', ff, wf2[l],
                        preferred_element_type=jnp.float32) + bf2[l]
        x = _layer_norm(x + ff, g2[l], be2[l])

    # -------- reconstruction heads, still VMEM-resident, same launch --------
    out_kps_ref[...] = _reconstruction(x[:, :N_KPS, :], kps_p)     # (BB, 13, PAD_OUT)
    out_bbox_ref[...] = _reconstruction(x[:, N_KPS:, :], bbox_p)   # (BB, 2, PAD_OUT)


# ===================================== wrapper =====================================
def _pick_bb(batch):
    """Batch elements per grid step: amortize step overhead / fill sublanes, but keep the grid at
    >= 2 steps when batch allows so both v7x TensorCores get work."""
    if batch >= 16:
        return 8
    if batch >= 2:
        return max(1, batch // 2)
    return 1


def decoder_forward(zq, flat_params):
    B = zq.shape[0]
    BB = _pick_bb(B)
    G = pl.cdiv(B, BB)
    Bp = G * BB
    if Bp != B:
        zq = jnp.pad(zq, ((0, Bp - B), (0, 0), (0, 0)))

    # constant weights: whole-array VMEM operands (no blocking, no double buffering)
    weight_spec = pl.BlockSpec(memory_space=pltpu.MemorySpace.VMEM)
    in_specs = [pl.BlockSpec((BB, N_TOKENS, LATENT), lambda g: (g, 0, 0))]
    in_specs += [weight_spec for _ in flat_params]
    out_specs = (pl.BlockSpec((BB, N_KPS, PAD_OUT), lambda g: (g, 0, 0)),
                 pl.BlockSpec((BB, N_BBOX, PAD_OUT), lambda g: (g, 0, 0)))
    out_shape = (jax.ShapeDtypeStruct((Bp, N_KPS, PAD_OUT), jnp.float32),
                 jax.ShapeDtypeStruct((Bp, N_BBOX, PAD_OUT), jnp.float32))

    out_kps, out_bbox = pl.pallas_call(
        decoder_kernel,
        out_shape=out_shape,
        grid=(G,),
        in_specs=in_specs,
        out_specs=out_specs,
        compiler_params=pltpu.CompilerParams(dimension_semantics=("parallel",)),
    )(zq, *flat_params)

    # Matches torch: x.view(-1, n_pts, 2, seq_len).permute(0, 3, 1, 2) -> (B, seq, n_pts, 2)
    recon_kps = out_kps[:B, :, :2 * SEQ_LEN].reshape(B, N_KPS, SEQ_LEN, 2).transpose(0, 2, 1, 3)
    recon_bbox = out_bbox[:B, :, :2 * SEQ_LEN].reshape(B, N_BBOX, SEQ_LEN, 2).transpose(0, 2, 1, 3)
    return recon_kps, recon_bbox


decoder_forward_jit = jax.jit(decoder_forward)


# ===================================== parameter init =====================================
def init_encoder_layer(key):
    ks = jax.random.split(key, 12)
    r = lambda k, shape, s=0.1: jax.random.normal(k, shape, jnp.float32) * s
    scale = 1.0 / math.sqrt(HD)

    in_w = r(ks[0], (3 * LATENT, LATENT))   # torch in_proj_weight (3D, D)
    in_b = r(ks[1], (3 * LATENT,))          # torch in_proj_bias

    def head_major(w_rows, b_rows, s=1.0):
        # torch: y = x @ w_rows.T + b_rows ; columns h*HD:(h+1)*HD belong to head h.
        w = (w_rows.T * s).reshape(LATENT, NHEADS, HD).transpose(1, 0, 2)   # (H, D, HD)
        b = (b_rows * s).reshape(NHEADS, 1, HD)                             # (H, 1, HD)
        return w, b

    wq, bq = head_major(in_w[:LATENT], in_b[:LATENT], scale)                # scale folded into Q
    wk, bk = head_major(in_w[LATENT:2 * LATENT], in_b[LATENT:2 * LATENT])
    wv, bv = head_major(in_w[2 * LATENT:], in_b[2 * LATENT:])

    out_w = r(ks[2], (LATENT, LATENT))      # out_proj.weight; y = concat(heads) @ out_w.T + b
    wo = out_w.T.reshape(NHEADS, HD, LATENT)                                 # per-head row blocks

    return dict(
        wq=wq, bq=bq, wk=wk, bk=bk, wv=wv, bv=bv,
        wo=wo, bo=r(ks[3], (1, LATENT)),
        g1=1.0 + r(ks[4], (1, LATENT)), be1=r(ks[5], (1, LATENT)),
        wf1=r(ks[6], (DFF, LATENT)).T, bf1=r(ks[7], (1, DFF)),
        wf2=r(ks[8], (LATENT, DFF)).T, bf2=r(ks[9], (1, LATENT)),
        g2=1.0 + r(ks[10], (1, LATENT)), be2=r(ks[11], (1, LATENT)),
    )


ENC_PARAM_NAMES = ("wq", "bq", "wk", "bk", "wv", "bv", "wo", "bo",
                   "g1", "be1", "wf1", "bf1", "wf2", "bf2", "g2", "be2")


def init_encoder_params(key):
    layers = [init_encoder_layer(k) for k in jax.random.split(key, NLAYERS)]
    return [jnp.stack([lyr[n] for lyr in layers]) for n in ENC_PARAM_NAMES]


def convT_to_matmul(w, b, stride, l_in):
    """ConvTranspose1d (weight (Cin, Cout, K)) as a dense (Lin*Cin, Lout*Cout) matrix
    acting on channel-last flattened rows (index = l*C + c)."""
    cin, cout, k = w.shape
    l_out = (l_in - 1) * stride + k
    a = np.zeros((l_in * cin, l_out * cout), np.float32)
    for t in range(l_in):
        for kk in range(k):
            j = t * stride + kk
            a[t * cin:(t + 1) * cin, j * cout:(j + 1) * cout] += w[:, :, kk]
    bias = np.tile(b, l_out)[None, :]
    return a, bias, l_out


def init_recon(key):
    keys = iter(jax.random.split(key, 16))
    r = lambda shape, s=0.1: np.asarray(jax.random.normal(next(keys), shape, jnp.float32)) * s

    chans = [LATENT, LATENT // 2, LATENT // 4, LATENT // 8, 2]
    kernels = [3, 5, 5, 6]
    strides = [1, 2, 3, 3]
    pad_widths = [48, 72, PAD3]            # per-stage padded activation widths (stages 0..2)

    flat = []
    l = 1
    in_pad = 0                             # zero columns appended to the previous stage's output
    for i in range(4):
        w = r((chans[i], chans[i + 1], kernels[i]))
        b = r((chans[i + 1],))
        a, bias, l_out = convT_to_matmul(w, b, strides[i], l)
        if in_pad:
            a = np.pad(a, ((0, in_pad), (0, 0)))      # zero rows for the padded input columns
        if i == 3:
            # pad final stage to lane-dense PAD_OUT columns (zeros -> tanh(0)=0, sliced off later)
            a = np.pad(a, ((0, 0), (0, PAD_OUT - a.shape[1])))
            bias = np.pad(bias, ((0, 0), (0, PAD_OUT - bias.shape[1])))
            flat += [jnp.asarray(a), jnp.asarray(bias)]
        else:
            out_pad = pad_widths[i] - a.shape[1]
            g = 1.0 + r((chans[i + 1],))
            be = r((chans[i + 1],))
            g_t = np.tile(g, l_out)[None, :]
            be_t = np.tile(be, l_out)[None, :]
            if out_pad:
                # padded columns get zero matrix cols / bias / gamma / beta -> stay exactly 0
                a = np.pad(a, ((0, 0), (0, out_pad)))
                bias = np.pad(bias, ((0, 0), (0, out_pad)))
                g_t = np.pad(g_t, ((0, 0), (0, out_pad)))
                be_t = np.pad(be_t, ((0, 0), (0, out_pad)))
            flat += [jnp.asarray(a), jnp.asarray(bias), jnp.asarray(g_t), jnp.asarray(be_t)]
            in_pad = out_pad
        l = l_out
    assert l == SEQ_LEN
    return flat


# ===================================== main =====================================
if __name__ == "__main__":
    key = jax.random.PRNGKey(0)
    k_in, k_enc, k_kps, k_bbox = jax.random.split(key, 4)

    zq = jax.random.normal(k_in, (2, N_TOKENS, LATENT), jnp.float32)

    flat_params = (init_encoder_params(k_enc)
                   + init_recon(k_kps)
                   + init_recon(k_bbox))
    assert len(flat_params) == N_ENC_PARAMS + 2 * N_REC_PARAMS

    recon_kps, recon_bbox = decoder_forward_jit(zq, flat_params)
    jax.block_until_ready((recon_kps, recon_bbox))

    assert recon_kps.shape == (2, SEQ_LEN, N_KPS, 2), recon_kps.shape
    assert recon_bbox.shape == (2, SEQ_LEN, N_BBOX, 2), recon_bbox.shape
    assert bool(jnp.all(jnp.isfinite(recon_kps))) and bool(jnp.all(jnp.isfinite(recon_bbox)))
    print("KERNEL_OK")
</pallas_src>

<mosaic_0001>
module attributes {stable_mosaic.version = 11 : i64} {
  func.func @decoder_kernel(%arg0: i32, %arg1: memref<1x15x32xf32, #tpu.memory_space<vmem>>, %arg2: memref<2x4x32x8xf32, #tpu.memory_space<vmem>>, %arg3: memref<2x4x1x8xf32, #tpu.memory_space<vmem>>, %arg4: memref<2x4x32x8xf32, #tpu.memory_space<vmem>>, %arg5: memref<2x4x1x8xf32, #tpu.memory_space<vmem>>, %arg6: memref<2x4x32x8xf32, #tpu.memory_space<vmem>>, %arg7: memref<2x4x1x8xf32, #tpu.memory_space<vmem>>, %arg8: memref<2x4x8x32xf32, #tpu.memory_space<vmem>>, %arg9: memref<2x1x32xf32, #tpu.memory_space<vmem>>, %arg10: memref<2x1x32xf32, #tpu.memory_space<vmem>>, %arg11: memref<2x1x32xf32, #tpu.memory_space<vmem>>, %arg12: memref<2x32x128xf32, #tpu.memory_space<vmem>>, %arg13: memref<2x1x128xf32, #tpu.memory_space<vmem>>, %arg14: memref<2x128x32xf32, #tpu.memory_space<vmem>>, %arg15: memref<2x1x32xf32, #tpu.memory_space<vmem>>, %arg16: memref<2x1x32xf32, #tpu.memory_space<vmem>>, %arg17: memref<2x1x32xf32, #tpu.memory_space<vmem>>, %arg18: memref<32x48xf32, #tpu.memory_space<vmem>>, %arg19: memref<1x48xf32, #tpu.memory_space<vmem>>, %arg20: memref<1x48xf32, #tpu.memory_space<vmem>>, %arg21: memref<1x48xf32, #tpu.memory_space<vmem>>, %arg22: memref<48x72xf32, #tpu.memory_space<vmem>>, %arg23: memref<1x72xf32, #tpu.memory_space<vmem>>, %arg24: memref<1x72xf32, #tpu.memory_space<vmem>>, %arg25: memref<1x72xf32, #tpu.memory_space<vmem>>, %arg26: memref<72x128xf32, #tpu.memory_space<vmem>>, %arg27: memref<1x128xf32, #tpu.memory_space<vmem>>, %arg28: memref<1x128xf32, #tpu.memory_space<vmem>>, %arg29: memref<1x128xf32, #tpu.memory_space<vmem>>, %arg30: memref<128x256xf32, #tpu.memory_space<vmem>>, %arg31: memref<1x256xf32, #tpu.memory_space<vmem>>, %arg32: memref<32x48xf32, #tpu.memory_space<vmem>>, %arg33: memref<1x48xf32, #tpu.memory_space<vmem>>, %arg34: memref<1x48xf32, #tpu.memory_space<vmem>>, %arg35: memref<1x48xf32, #tpu.memory_space<vmem>>, %arg36: memref<48x72xf32, #tpu.memory_space<vmem>>, %arg37: memref<1x72xf32, #tpu.memory_space<vmem>>, %arg38: memref<1x72xf32, #tpu.memory_space<vmem>>, %arg39: memref<1x72xf32, #tpu.memory_space<vmem>>, %arg40: memref<72x128xf32, #tpu.memory_space<vmem>>, %arg41: memref<1x128xf32, #tpu.memory_space<vmem>>, %arg42: memref<1x128xf32, #tpu.memory_space<vmem>>, %arg43: memref<1x128xf32, #tpu.memory_space<vmem>>, %arg44: memref<128x256xf32, #tpu.memory_space<vmem>>, %arg45: memref<1x256xf32, #tpu.memory_space<vmem>>, %arg46: memref<1x13x256xf32, #tpu.memory_space<vmem>>, %arg47: memref<1x2x256xf32, #tpu.memory_space<vmem>>) attributes {dimension_semantics = [#tpu.dimension_semantics<parallel>], iteration_bounds = array<i64: 2>, scalar_prefetch = 0 : i64, scratch_operands = 0 : i64, tpu.core_type = #tpu.core_type<tc>, window_params = [{transform_indices = @transform_0, window_bounds = array<i64: 1, 15, 32>}, {pipeline_mode = #tpu.pipeline_mode<synchronous>, transform_indices = @transform_1, window_bounds = array<i64: 2, 4, 32, 8>}, {pipeline_mode = #tpu.pipeline_mode<synchronous>, transform_indices = @transform_2, window_bounds = array<i64: 2, 4, 1, 8>}, {pipeline_mode = #tpu.pipeline_mode<synchronous>, transform_indices = @transform_3, window_bounds = array<i64: 2, 4, 32, 8>}, {pipeline_mode = #tpu.pipeline_mode<synchronous>, transform_indices = @transform_4, window_bounds = array<i64: 2, 4, 1, 8>}, {pipeline_mode = #tpu.pipeline_mode<synchronous>, transform_indices = @transform_5, window_bounds = array<i64: 2, 4, 32, 8>}, {pipeline_mode = #tpu.pipeline_mode<synchronous>, transform_indices = @transform_6, window_bounds = array<i64: 2, 4, 1, 8>}, {pipeline_mode = #tpu.pipeline_mode<synchronous>, transform_indices = @transform_7, window_bounds = array<i64: 2, 4, 8, 32>}, {pipeline_mode = #tpu.pipeline_mode<synchronous>, transform_indices = @transform_8, window_bounds = array<i64: 2, 1, 32>}, {pipeline_mode = #tpu.pipeline_mode<synchronous>, transform_indices = @transform_9, window_bounds = array<i64: 2, 1, 32>}, {pipeline_mode = #tpu.pipeline_mode<synchronous>, transform_indices = @transform_10, window_bounds = array<i64: 2, 1, 32>}, {pipeline_mode = #tpu.pipeline_mode<synchronous>, transform_indices = @transform_11, window_bounds = array<i64: 2, 32, 128>}, {pipeline_mode = #tpu.pipeline_mode<synchronous>, transform_indices = @transform_12, window_bounds = array<i64: 2, 1, 128>}, {pipeline_mode = #tpu.pipeline_mode<synchronous>, transform_indices = @transform_13, window_bounds = array<i64: 2, 128, 32>}, {pipeline_mode = #tpu.pipeline_mode<synchronous>, transform_indices = @transform_14, window_bounds = array<i64: 2, 1, 32>}, {pipeline_mode = #tpu.pipeline_mode<synchronous>, transform_indices = @transform_15, window_bounds = array<i64: 2, 1, 32>}, {pipeline_mode = #tpu.pipeline_mode<synchronous>, transform_indices = @transform_16, window_bounds = array<i64: 2, 1, 32>}, {pipeline_mode = #tpu.pipeline_mode<synchronous>, transform_indices = @transform_17, window_bounds = array<i64: 32, 48>}, {pipeline_mode = #tpu.pipeline_mode<synchronous>, transform_indices = @transform_18, window_bounds = array<i64: 1, 48>}, {pipeline_mode = #tpu.pipeline_mode<synchronous>, transform_indices = @transform_19, window_bounds = array<i64: 1, 48>}, {pipeline_mode = #tpu.pipeline_mode<synchronous>, transform_indices = @transform_20, window_bounds = array<i64: 1, 48>}, {pipeline_mode = #tpu.pipeline_mode<synchronous>, transform_indices = @transform_21, window_bounds = array<i64: 48, 72>}, {pipeline_mode = #tpu.pipeline_mode<synchronous>, transform_indices = @transform_22, window_bounds = array<i64: 1, 72>}, {pipeline_mode = #tpu.pipeline_mode<synchronous>, transform_indices = @transform_23, window_bounds = array<i64: 1, 72>}, {pipeline_mode = #tpu.pipeline_mode<synchronous>, transform_indices = @transform_24, window_bounds = array<i64: 1, 72>}, {pipeline_mode = #tpu.pipeline_mode<synchronous>, transform_indices = @transform_25, window_bounds = array<i64: 72, 128>}, {pipeline_mode = #tpu.pipeline_mode<synchronous>, transform_indices = @transform_26, window_bounds = array<i64: 1, 128>}, {pipeline_mode = #tpu.pipeline_mode<synchronous>, transform_indices = @transform_27, window_bounds = array<i64: 1, 128>}, {pipeline_mode = #tpu.pipeline_mode<synchronous>, transform_indices = @transform_28, window_bounds = array<i64: 1, 128>}, {pipeline_mode = #tpu.pipeline_mode<synchronous>, transform_indices = @transform_29, window_bounds = array<i64: 128, 256>}, {pipeline_mode = #tpu.pipeline_mode<synchronous>, transform_indices = @transform_30, window_bounds = array<i64: 1, 256>}, {pipeline_mode = #tpu.pipeline_mode<synchronous>, transform_indices = @transform_31, window_bounds = array<i64: 32, 48>}, {pipeline_mode = #tpu.pipeline_mode<synchronous>, transform_indices = @transform_32, window_bounds = array<i64: 1, 48>}, {pipeline_mode = #tpu.pipeline_mode<synchronous>, transform_indices = @transform_33, window_bounds = array<i64: 1, 48>}, {pipeline_mode = #tpu.pipeline_mode<synchronous>, transform_indices = @transform_34, window_bounds = array<i64: 1, 48>}, {pipeline_mode = #tpu.pipeline_mode<synchronous>, transform_indices = @transform_35, window_bounds = array<i64: 48, 72>}, {pipeline_mode = #tpu.pipeline_mode<synchronous>, transform_indices = @transform_36, window_bounds = array<i64: 1, 72>}, {pipeline_mode = #tpu.pipeline_mode<synchronous>, transform_indices = @transform_37, window_bounds = array<i64: 1, 72>}, {pipeline_mode = #tpu.pipeline_mode<synchronous>, transform_indices = @transform_38, window_bounds = array<i64: 1, 72>}, {pipeline_mode = #tpu.pipeline_mode<synchronous>, transform_indices = @transform_39, window_bounds = array<i64: 72, 128>}, {pipeline_mode = #tpu.pipeline_mode<synchronous>, transform_indices = @transform_40, window_bounds = array<i64: 1, 128>}, {pipeline_mode = #tpu.pipeline_mode<synchronous>, transform_indices = @transform_41, window_bounds = array<i64: 1, 128>}, {pipeline_mode = #tpu.pipeline_mode<synchronous>, transform_indices = @transform_42, window_bounds = array<i64: 1, 128>}, {pipeline_mode = #tpu.pipeline_mode<synchronous>, transform_indices = @transform_43, window_bounds = array<i64: 128, 256>}, {pipeline_mode = #tpu.pipeline_mode<synchronous>, transform_indices = @transform_44, window_bounds = array<i64: 1, 256>}, {transform_indices = @transform_45, window_bounds = array<i64: 1, 13, 256>}, {transform_indices = @transform_46, window_bounds = array<i64: 1, 2, 256>}]} {
    %c0 = arith.constant 0 : index
    %c0_0 = arith.constant 0 : index
    %c0_1 = arith.constant 0 : index
    %0 = vector.load %arg1[%c0, %c0_0, %c0_1] : memref<1x15x32xf32, #tpu.memory_space<vmem>>, vector<1x15x32xf32>
    %c0_2 = arith.constant 0 : index
    %c0_3 = arith.constant 0 : index
    %c0_4 = arith.constant 0 : index
    %c0_5 = arith.constant 0 : index
    %1 = vector.load %arg2[%c0_2, %c0_3, %c0_4, %c0_5] : memref<2x4x32x8xf32, #tpu.memory_space<vmem>>, vector<1x1x32x8xf32>
    %2 = vector.shape_cast %1 : vector<1x1x32x8xf32> to vector<32x8xf32>
    "tpu.trace_start"() <{level = 10 : i32, message = "bnd,dk->bnk"}> : () -> ()
    %cst = arith.constant dense<0.000000e+00> : vector<1x15x8xf32>
    %3 = tpu.matmul %0, %2, %cst {dimension_numbers = #tpu.dot_dimension_numbers<[2], [0], [0, 1], [1], [0, 0, 0, 1, 1, 1], [], []>} : vector<1x15x32xf32>, vector<32x8xf32>, vector<1x15x8xf32> -> vector<1x15x8xf32>
    "tpu.trace_stop"() : () -> ()
    %c0_6 = arith.constant 0 : index
    %c0_7 = arith.constant 0 : index
    %c0_8 = arith.constant 0 : index
    %c0_9 = arith.constant 0 : index
    %4 = vector.load %arg3[%c0_6, %c0_7, %c0_8, %c0_9] : memref<2x4x1x8xf32, #tpu.memory_space<vmem>>, vector<1x1x1x8xf32>
    %5 = vector.shape_cast %4 : vector<1x1x1x8xf32> to vector<1x8xf32>
    %6 = vector.shape_cast %5 : vector<1x8xf32> to vector<1x1x8xf32>
    %7 = vector.broadcast %6 : vector<1x1x8xf32> to vector<1x15x8xf32>
    %8 = arith.addf %3, %7 : vector<1x15x8xf32>
    %c0_10 = arith.constant 0 : index
    %c0_11 = arith.constant 0 : index
    %c0_12 = arith.constant 0 : index
    %c0_13 = arith.constant 0 : index
    %9 = vector.load %arg4[%c0_10, %c0_11, %c0_12, %c0_13] : memref<2x4x32x8xf32, #tpu.memory_space<vmem>>, vector<1x1x32x8xf32>
    %10 = vector.shape_cast %9 : vector<1x1x32x8xf32> to vector<32x8xf32>
    "tpu.trace_start"() <{level = 10 : i32, message = "bnd,dk->bnk"}> : () -> ()
    %cst_14 = arith.constant dense<0.000000e+00> : vector<1x15x8xf32>
    %11 = tpu.matmul %0, %10, %cst_14 {dimension_numbers = #tpu.dot_dimension_numbers<[2], [0], [0, 1], [1], [0, 0, 0, 1, 1, 1], [], []>} : vector<1x15x32xf32>, vector<32x8xf32>, vector<1x15x8xf32> -> vector<1x15x8xf32>
    "tpu.trace_stop"() : () -> ()
    %c0_15 = arith.constant 0 : index
    %c0_16 = arith.constant 0 : index
    %c0_17 = arith.constant 0 : index
    %c0_18 = arith.constant 0 : index
    %12 = vector.load %arg5[%c0_15, %c0_16, %c0_17, %c0_18] : memref<2x4x1x8xf32, #tpu.memory_space<vmem>>, vector<1x1x1x8xf32>
    %13 = vector.shape_cast %12 : vector<1x1x1x8xf32> to vector<1x8xf32>
    %14 = vector.shape_cast %13 : vector<1x8xf32> to vector<1x1x8xf32>
    %15 = vector.broadcast %14 : vector<1x1x8xf32> to vector<1x15x8xf32>
    %16 = arith.addf %11, %15 : vector<1x15x8xf32>
    %c0_19 = arith.constant 0 : index
    %c0_20 = arith.constant 0 : index
    %c0_21 = arith.constant 0 : index
    %c0_22 = arith.constant 0 : index
    %17 = vector.load %arg6[%c0_19, %c0_20, %c0_21, %c0_22] : memref<2x4x32x8xf32, #tpu.memory_space<vmem>>, vector<1x1x32x8xf32>
    %18 = vector.shape_cast %17 : vector<1x1x32x8xf32> to vector<32x8xf32>
    "tpu.trace_start"() <{level = 10 : i32, message = "bnd,dk->bnk"}> : () -> ()
    %cst_23 = arith.constant dense<0.000000e+00> : vector<1x15x8xf32>
    %19 = tpu.matmul %0, %18, %cst_23 {dimension_numbers = #tpu.dot_dimension_numbers<[2], [0], [0, 1], [1], [0, 0, 0, 1, 1, 1], [], []>} : vector<1x15x32xf32>, vector<32x8xf32>, vector<1x15x8xf32> -> vector<1x15x8xf32>
    "tpu.trace_stop"() : () -> ()
    %c0_24 = arith.constant 0 : index
    %c0_25 = arith.constant 0 : index
    %c0_26 = arith.constant 0 : index
    %c0_27 = arith.constant 0 : index
    %20 = vector.load %arg7[%c0_24, %c0_25, %c0_26, %c0_27] : memref<2x4x1x8xf32, #tpu.memory_space<vmem>>, vector<1x1x1x8xf32>
    %21 = vector.shape_cast %20 : vector<1x1x1x8xf32> to vector<1x8xf32>
    %22 = vector.shape_cast %21 : vector<1x8xf32> to vector<1x1x8xf32>
    %23 = vector.broadcast %22 : vector<1x1x8xf32> to vector<1x15x8xf32>
    %24 = arith.addf %19, %23 : vector<1x15x8xf32>
    "tpu.trace_start"() <{level = 10 : i32, message = "bnk,bmk->bnm"}> : () -> ()
    %cst_28 = arith.constant dense<0.000000e+00> : vector<1x15x15xf32>
    %25 = tpu.matmul %8, %16, %cst_28 {dimension_numbers = #tpu.dot_dimension_numbers<[2], [2], [1], [1], [0, 0, 0, 1, 1, 1], [0], [0]>} : vector<1x15x8xf32>, vector<1x15x8xf32>, vector<1x15x15xf32> -> vector<1x15x15xf32>
    "tpu.trace_stop"() : () -> ()
    %cst_29 = arith.constant dense<0xFF800000> : vector<1x15xf32>
    %26 = vector.multi_reduction <maximumf>, %25, %cst_29 [2] : vector<1x15x15xf32> to vector<1x15xf32>
    %27 = vector.shape_cast %26 : vector<1x15xf32> to vector<1x15x1xf32>
    %28 = vector.broadcast %27 : vector<1x15x1xf32> to vector<1x15x15xf32>
    %29 = arith.subf %25, %28 : vector<1x15x15xf32>
    %30 = math.exp %29 : vector<1x15x15xf32>
    %cst_30 = arith.constant dense<0.000000e+00> : vector<1x15xf32>
    %31 = vector.multi_reduction <add>, %30, %cst_30 [2] : vector<1x15x15xf32> to vector<1x15xf32>
    %32 = vector.shape_cast %31 : vector<1x15xf32> to vector<1x15x1xf32>
    %33 = tpu.reciprocal %32 {approx = true} : vector<1x15x1xf32> -> vector<1x15x1xf32>
    %34 = vector.broadcast %33 : vector<1x15x1xf32> to vector<1x15x15xf32>
    %35 = arith.mulf %30, %34 : vector<1x15x15xf32>
    "tpu.trace_start"() <{level = 10 : i32, message = "bnm,bmk->bnk"}> : () -> ()
    %cst_31 = arith.constant dense<0.000000e+00> : vector<1x15x8xf32>
    %36 = tpu.matmul %35, %24, %cst_31 {dimension_numbers = #tpu.dot_dimension_numbers<[2], [1], [1], [2], [0, 0, 0, 1, 1, 2], [0], [0]>} : vector<1x15x15xf32>, vector<1x15x8xf32>, vector<1x15x8xf32> -> vector<1x15x8xf32>
    "tpu.trace_stop"() : () -> ()
    %c0_32 = arith.constant 0 : index
    %c0_33 = arith.constant 0 : index
    %c0_34 = arith.constant 0 : index
    %c0_35 = arith.constant 0 : index
    %37 = vector.load %arg8[%c0_32, %c0_33, %c0_34, %c0_35] : memref<2x4x8x32xf32, #tpu.memory_space<vmem>>, vector<1x1x8x32xf32>
    %38 = vector.shape_cast %37 : vector<1x1x8x32xf32> to vector<8x32xf32>
    "tpu.trace_start"() <{level = 10 : i32, message = "bnk,kd->bnd"}> : () -> ()
    %cst_36 = arith.constant dense<0.000000e+00> : vector<1x15x32xf32>
    %39 = tpu.matmul %36, %38, %cst_36 {dimension_numbers = #tpu.dot_dimension_numbers<[2], [0], [0, 1], [1], [0, 0, 0, 1, 1, 1], [], []>} : vector<1x15x8xf32>, vector<8x32xf32>, vector<1x15x32xf32> -> vector<1x15x32xf32>
    "tpu.trace_stop"() : () -> ()
    %c0_37 = arith.constant 0 : index
    %c1 = arith.constant 1 : index
    %c0_38 = arith.constant 0 : index
    %c0_39 = arith.constant 0 : index
    %40 = vector.load %arg2[%c0_37, %c1, %c0_38, %c0_39] : memref<2x4x32x8xf32, #tpu.memory_space<vmem>>, vector<1x1x32x8xf32>
    %41 = vector.shape_cast %40 : vector<1x1x32x8xf32> to vector<32x8xf32>
    "tpu.trace_start"() <{level = 10 : i32, message = "bnd,dk->bnk"}> : () -> ()
    %cst_40 = arith.constant dense<0.000000e+00> : vector<1x15x8xf32>
    %42 = tpu.matmul %0, %41, %cst_40 {dimension_numbers = #tpu.dot_dimension_numbers<[2], [0], [0, 1], [1], [0, 0, 0, 1, 1, 1], [], []>} : vector<1x15x32xf32>, vector<32x8xf32>, vector<1x15x8xf32> -> vector<1x15x8xf32>
    "tpu.trace_stop"() : () -> ()
    %c0_41 = arith.constant 0 : index
    %c1_42 = arith.constant 1 : index
    %c0_43 = arith.constant 0 : index
    %c0_44 = arith.constant 0 : index
    %43 = vector.load %arg3[%c0_41, %c1_42, %c0_43, %c0_44] : memref<2x4x1x8xf32, #tpu.memory_space<vmem>>, vector<1x1x1x8xf32>
    %44 = vector.shape_cast %43 : vector<1x1x1x8xf32> to vector<1x8xf32>
    %45 = vector.shape_cast %44 : vector<1x8xf32> to vector<1x1x8xf32>
    %46 = vector.broadcast %45 : vector<1x1x8xf32> to vector<1x15x8xf32>
    %47 = arith.addf %42, %46 : vector<1x15x8xf32>
    %c0_45 = arith.constant 0 : index
    %c1_46 = arith.constant 1 : index
    %c0_47 = arith.constant 0 : index
    %c0_48 = arith.constant 0 : index
    %48 = vector.load %arg4[%c0_45, %c1_46, %c0_47, %c0_48] : memref<2x4x32x8xf32, #tpu.memory_space<vmem>>, vector<1x1x32x8xf32>
    %49 = vector.shape_cast %48 : vector<1x1x32x8xf32> to vector<32x8xf32>
    "tpu.trace_start"() <{level = 10 : i32, message = "bnd,dk->bnk"}> : () -> ()
    %cst_49 = arith.constant dense<0.000000e+00> : vector<1x15x8xf32>
    %50 = tpu.matmul %0, %49, %cst_49 {dimension_numbers = #tpu.dot_dimension_numbers<[2], [0], [0, 1], [1], [0, 0, 0, 1, 1, 1], [], []>} : vector<1x15x32xf32>, vector<32x8xf32>, vector<1x15x8xf32> -> vector<1x15x8xf32>
    "tpu.trace_stop"() : () -> ()
    %c0_50 = arith.constant 0 : index
    %c1_51 = arith.constant 1 : index
    %c0_52 = arith.constant 0 : index
    %c0_53 = arith.constant 0 : index
    %51 = vector.load %arg5[%c0_50, %c1_51, %c0_52, %c0_53] : memref<2x4x1x8xf32, #tpu.memory_space<vmem>>, vector<1x1x1x8xf32>
    %52 = vector.shape_cast %51 : vector<1x1x1x8xf32> to vector<1x8xf32>
    %53 = vector.shape_cast %52 : vector<1x8xf32> to vector<1x1x8xf32>
    %54 = vector.broadcast %53 : vector<1x1x8xf32> to vector<1x15x8xf32>
    %55 = arith.addf %50, %54 : vector<1x15x8xf32>
    %c0_54 = arith.constant 0 : index
    %c1_55 = arith.constant 1 : index
    %c0_56 = arith.constant 0 : index
    %c0_57 = arith.constant 0 : index
    %56 = vector.load %arg6[%c0_54, %c1_55, %c0_56, %c0_57] : memref<2x4x32x8xf32, #tpu.memory_space<vmem>>, vector<1x1x32x8xf32>
    %57 = vector.shape_cast %56 : vector<1x1x32x8xf32> to vector<32x8xf32>
    "tpu.trace_start"() <{level = 10 : i32, message = "bnd,dk->bnk"}> : () -> ()
    %cst_58 = arith.constant dense<0.000000e+00> : vector<1x15x8xf32>
    %58 = tpu.matmul %0, %57, %cst_58 {dimension_numbers = #tpu.dot_dimension_numbers<[2], [0], [0, 1], [1], [0, 0, 0, 1, 1, 1], [], []>} : vector<1x15x32xf32>, vector<32x8xf32>, vector<1x15x8xf32> -> vector<1x15x8xf32>
    "tpu.trace_stop"() : () -> ()
    %c0_59 = arith.constant 0 : index
    %c1_60 = arith.constant 1 : index
    %c0_61 = arith.constant 0 : index
    %c0_62 = arith.constant 0 : index
    %59 = vector.load %arg7[%c0_59, %c1_60, %c0_61, %c0_62] : memref<2x4x1x8xf32, #tpu.memory_space<vmem>>, vector<1x1x1x8xf32>
    %60 = vector.shape_cast %59 : vector<1x1x1x8xf32> to vector<1x8xf32>
    %61 = vector.shape_cast %60 : vector<1x8xf32> to vector<1x1x8xf32>
    %62 = vector.broadcast %61 : vector<1x1x8xf32> to vector<1x15x8xf32>
    %63 = arith.addf %58, %62 : vector<1x15x8xf32>
    "tpu.trace_start"() <{level = 10 : i32, message = "bnk,bmk->bnm"}> : () -> ()
    %cst_63 = arith.constant dense<0.000000e+00> : vector<1x15x15xf32>
    %64 = tpu.matmul %47, %55, %cst_63 {dimension_numbers = #tpu.dot_dimension_numbers<[2], [2], [1], [1], [0, 0, 0, 1, 1, 1], [0], [0]>} : vector<1x15x8xf32>, vector<1x15x8xf32>, vector<1x15x15xf32> -> vector<1x15x15xf32>
    "tpu.trace_stop"() : () -> ()
    %cst_64 = arith.constant dense<0xFF800000> : vector<1x15xf32>
    %65 = vector.multi_reduction <maximumf>, %64, %cst_64 [2] : vector<1x15x15xf32> to vector<1x15xf32>
    %66 = vector.shape_cast %65 : vector<1x15xf32> to vector<1x15x1xf32>
    %67 = vector.broadcast %66 : vector<1x15x1xf32> to vector<1x15x15xf32>
    %68 = arith.subf %64, %67 : vector<1x15x15xf32>
    %69 = math.exp %68 : vector<1x15x15xf32>
    %cst_65 = arith.constant dense<0.000000e+00> : vector<1x15xf32>
    %70 = vector.multi_reduction <add>, %69, %cst_65 [2] : vector<1x15x15xf32> to vector<1x15xf32>
    %71 = vector.shape_cast %70 : vector<1x15xf32> to vector<1x15x1xf32>
    %72 = tpu.reciprocal %71 {approx = true} : vector<1x15x1xf32> -> vector<1x15x1xf32>
    %73 = vector.broadcast %72 : vector<1x15x1xf32> to vector<1x15x15xf32>
    %74 = arith.mulf %69, %73 : vector<1x15x15xf32>
    "tpu.trace_start"() <{level = 10 : i32, message = "bnm,bmk->bnk"}> : () -> ()
    %cst_66 = arith.constant dense<0.000000e+00> : vector<1x15x8xf32>
    %75 = tpu.matmul %74, %63, %cst_66 {dimension_numbers = #tpu.dot_dimension_numbers<[2], [1], [1], [2], [0, 0, 0, 1, 1, 2], [0], [0]>} : vector<1x15x15xf32>, vector<1x15x8xf32>, vector<1x15x8xf32> -> vector<1x15x8xf32>
    "tpu.trace_stop"() : () -> ()
    %c0_67 = arith.constant 0 : index
    %c1_68 = arith.constant 1 : index
    %c0_69 = arith.constant 0 : index
    %c0_70 = arith.constant 0 : index
    %76 = vector.load %arg8[%c0_67, %c1_68, %c0_69, %c0_70] : memref<2x4x8x32xf32, #tpu.memory_space<vmem>>, vector<1x1x8x32xf32>
    %77 = vector.shape_cast %76 : vector<1x1x8x32xf32> to vector<8x32xf32>
    "tpu.trace_start"() <{level = 10 : i32, message = "bnk,kd->bnd"}> : () -> ()
    %cst_71 = arith.constant dense<0.000000e+00> : vector<1x15x32xf32>
    %78 = tpu.matmul %75, %77, %cst_71 {dimension_numbers = #tpu.dot_dimension_numbers<[2], [0], [0, 1], [1], [0, 0, 0, 1, 1, 1], [], []>} : vector<1x15x8xf32>, vector<8x32xf32>, vector<1x15x32xf32> -> vector<1x15x32xf32>
    "tpu.trace_stop"() : () -> ()
    %79 = arith.addf %39, %78 : vector<1x15x32xf32>
    %c0_72 = arith.constant 0 : index
    %c2 = arith.constant 2 : index
    %c0_73 = arith.constant 0 : index
    %c0_74 = arith.constant 0 : index
    %80 = vector.load %arg2[%c0_72, %c2, %c0_73, %c0_74] : memref<2x4x32x8xf32, #tpu.memory_space<vmem>>, vector<1x1x32x8xf32>
    %81 = vector.shape_cast %80 : vector<1x1x32x8xf32> to vector<32x8xf32>
    "tpu.trace_start"() <{level = 10 : i32, message = "bnd,dk->bnk"}> : () -> ()
    %cst_75 = arith.constant dense<0.000000e+00> : vector<1x15x8xf32>
    %82 = tpu.matmul %0, %81, %cst_75 {dimension_numbers = #tpu.dot_dimension_numbers<[2], [0], [0, 1], [1], [0, 0, 0, 1, 1, 1], [], []>} : vector<1x15x32xf32>, vector<32x8xf32>, vector<1x15x8xf32> -> vector<1x15x8xf32>
    "tpu.trace_stop"() : () -> ()
    %c0_76 = arith.constant 0 : index
    %c2_77 = arith.constant 2 : index
    %c0_78 = arith.constant 0 : index
    %c0_79 = arith.constant 0 : index
    %83 = vector.load %arg3[%c0_76, %c2_77, %c0_78, %c0_79] : memref<2x4x1x8xf32, #tpu.memory_space<vmem>>, vector<1x1x1x8xf32>
    %84 = vector.shape_cast %83 : vector<1x1x1x8xf32> to vector<1x8xf32>
    %85 = vector.shape_cast %84 : vector<1x8xf32> to vector<1x1x8xf32>
    %86 = vector.broadcast %85 : vector<1x1x8xf32> to vector<1x15x8xf32>
    %87 = arith.addf %82, %86 : vector<1x15x8xf32>
    %c0_80 = arith.constant 0 : index
    %c2_81 = arith.constant 2 : index
    %c0_82 = arith.constant 0 : index
    %c0_83 = arith.constant 0 : index
    %88 = vector.load %arg4[%c0_80, %c2_81, %c0_82, %c0_83] : memref<2x4x32x8xf32, #tpu.memory_space<vmem>>, vector<1x1x32x8xf32>
    %89 = vector.shape_cast %88 : vector<1x1x32x8xf32> to vector<32x8xf32>
    "tpu.trace_start"() <{level = 10 : i32, message = "bnd,dk->bnk"}> : () -> ()
    %cst_84 = arith.constant dense<0.000000e+00> : vector<1x15x8xf32>
    %90 = tpu.matmul %0, %89, %cst_84 {dimension_numbers = #tpu.dot_dimension_numbers<[2], [0], [0, 1], [1], [0, 0, 0, 1, 1, 1], [], []>} : vector<1x15x32xf32>, vector<32x8xf32>, vector<1x15x8xf32> -> vector<1x15x8xf32>
    "tpu.trace_stop"() : () -> ()
    %c0_85 = arith.constant 0 : index
    %c2_86 = arith.constant 2 : index
    %c0_87 = arith.constant 0 : index
    %c0_88 = arith.constant 0 : index
    %91 = vector.load %arg5[%c0_85, %c2_86, %c0_87, %c0_88] : memref<2x4x1x8xf32, #tpu.memory_space<vmem>>, vector<1x1x1x8xf32>
    %92 = vector.shape_cast %91 : vector<1x1x1x8xf32> to vector<1x8xf32>
    %93 = vector.shape_cast %92 : vector<1x8xf32> to vector<1x1x8xf32>
    %94 = vector.broadcast %93 : vector<1x1x8xf32> to vector<1x15x8xf32>
    %95 = arith.addf %90, %94 : vector<1x15x8xf32>
    %c0_89 = arith.constant 0 : index
    %c2_90 = arith.constant 2 : index
    %c0_91 = arith.constant 0 : index
    %c0_92 = arith.constant 0 : index
    %96 = vector.load %arg6[%c0_89, %c2_90, %c0_91, %c0_92] : memref<2x4x32x8xf32, #tpu.memory_space<vmem>>, vector<1x1x32x8xf32>
    %97 = vector.shape_cast %96 : vector<1x1x32x8xf32> to vector<32x8xf32>
    "tpu.trace_start"() <{level = 10 : i32, message = "bnd,dk->bnk"}> : () -> ()
    %cst_93 = arith.constant dense<0.000000e+00> : vector<1x15x8xf32>
    %98 = tpu.matmul %0, %97, %cst_93 {dimension_numbers = #tpu.dot_dimension_numbers<[2], [0], [0, 1], [1], [0, 0, 0, 1, 1, 1], [], []>} : vector<1x15x32xf32>, vector<32x8xf32>, vector<1x15x8xf32> -> vector<1x15x8xf32>
    "tpu.trace_stop"() : () -> ()
    %c0_94 = arith.constant 0 : index
    %c2_95 = arith.constant 2 : index
    %c0_96 = arith.constant 0 : index
    %c0_97 = arith.constant 0 : index
    %99 = vector.load %arg7[%c0_94, %c2_95, %c0_96, %c0_97] : memref<2x4x1x8xf32, #tpu.memory_space<vmem>>, vector<1x1x1x8xf32>
    %100 = vector.shape_cast %99 : vector<1x1x1x8xf32> to vector<1x8xf32>
    %101 = vector.shape_cast %100 : vector<1x8xf32> to vector<1x1x8xf32>
    %102 = vector.broadcast %101 : vector<1x1x8xf32> to vector<1x15x8xf32>
    %103 = arith.addf %98, %102 : vector<1x15x8xf32>
    "tpu.trace_start"() <{level = 10 : i32, message = "bnk,bmk->bnm"}> : () -> ()
    %cst_98 = arith.constant dense<0.000000e+00> : vector<1x15x15xf32>
    %104 = tpu.matmul %87, %95, %cst_98 {dimension_numbers = #tpu.dot_dimension_numbers<[2], [2], [1], [1], [0, 0, 0, 1, 1, 1], [0], [0]>} : vector<1x15x8xf32>, vector<1x15x8xf32>, vector<1x15x15xf32> -> vector<1x15x15xf32>
    "tpu.trace_stop"() : () -> ()
    %cst_99 = arith.constant dense<0xFF800000> : vector<1x15xf32>
    %105 = vector.multi_reduction <maximumf>, %104, %cst_99 [2] : vector<1x15x15xf32> to vector<1x15xf32>
    %106 = vector.shape_cast %105 : vector<1x15xf32> to vector<1x15x1xf32>
    %107 = vector.broadcast %106 : vector<1x15x1xf32> to vector<1x15x15xf32>
    %108 = arith.subf %104, %107 : vector<1x15x15xf32>
    %109 = math.exp %108 : vector<1x15x15xf32>
    %cst_100 = arith.constant dense<0.000000e+00> : vector<1x15xf32>
    %110 = vector.multi_reduction <add>, %109, %cst_100 [2] : vector<1x15x15xf32> to vector<1x15xf32>
    %111 = vector.shape_cast %110 : vector<1x15xf32> to vector<1x15x1xf32>
    %112 = tpu.reciprocal %111 {approx = true} : vector<1x15x1xf32> -> vector<1x15x1xf32>
    %113 = vector.broadcast %112 : vector<1x15x1xf32> to vector<1x15x15xf32>
    %114 = arith.mulf %109, %113 : vector<1x15x15xf32>
    "tpu.trace_start"() <{level = 10 : i32, message = "bnm,bmk->bnk"}> : () -> ()
    %cst_101 = arith.constant dense<0.000000e+00> : vector<1x15x8xf32>
    %115 = tpu.matmul %114, %103, %cst_101 {dimension_numbers = #tpu.dot_dimension_numbers<[2], [1], [1], [2], [0, 0, 0, 1, 1, 2], [0], [0]>} : vector<1x15x15xf32>, vector<1x15x8xf32>, vector<1x15x8xf32> -> vector<1x15x8xf32>
    "tpu.trace_stop"() : () -> ()
    %c0_102 = arith.constant 0 : index
    %c2_103 = arith.constant 2 : index
    %c0_104 = arith.constant 0 : index
    %c0_105 = arith.constant 0 : index
    %116 = vector.load %arg8[%c0_102, %c2_103, %c0_104, %c0_105] : memref<2x4x8x32xf32, #tpu.memory_space<vmem>>, vector<1x1x8x32xf32>
    %117 = vector.shape_cast %116 : vector<1x1x8x32xf32> to vector<8x32xf32>
    "tpu.trace_start"() <{level = 10 : i32, message = "bnk,kd->bnd"}> : () -> ()
    %cst_106 = arith.constant dense<0.000000e+00> : vector<1x15x32xf32>
    %118 = tpu.matmul %115, %117, %cst_106 {dimension_numbers = #tpu.dot_dimension_numbers<[2], [0], [0, 1], [1], [0, 0, 0, 1, 1, 1], [], []>} : vector<1x15x8xf32>, vector<8x32xf32>, vector<1x15x32xf32> -> vector<1x15x32xf32>
    "tpu.trace_stop"() : () -> ()
    %119 = arith.addf %79, %118 : vector<1x15x32xf32>
    %c0_107 = arith.constant 0 : index
    %c3 = arith.constant 3 : index
    %c0_108 = arith.constant 0 : index
    %c0_109 = arith.constant 0 : index
    %120 = vector.load %arg2[%c0_107, %c3, %c0_108, %c0_109] : memref<2x4x32x8xf32, #tpu.memory_space<vmem>>, vector<1x1x32x8xf32>
    %121 = vector.shape_cast %120 : vector<1x1x32x8xf32> to vector<32x8xf32>
    "tpu.trace_start"() <{level = 10 : i32, message = "bnd,dk->bnk"}> : () -> ()
    %cst_110 = arith.constant dense<0.000000e+00> : vector<1x15x8xf32>
    %122 = tpu.matmul %0, %121, %cst_110 {dimension_numbers = #tpu.dot_dimension_numbers<[2], [0], [0, 1], [1], [0, 0, 0, 1, 1, 1], [], []>} : vector<1x15x32xf32>, vector<32x8xf32>, vector<1x15x8xf32> -> vector<1x15x8xf32>
    "tpu.trace_stop"() : () -> ()
    %c0_111 = arith.constant 0 : index
    %c3_112 = arith.constant 3 : index
    %c0_113 = arith.constant 0 : index
    %c0_114 = arith.constant 0 : index
    %123 = vector.load %arg3[%c0_111, %c3_112, %c0_113, %c0_114] : memref<2x4x1x8xf32, #tpu.memory_space<vmem>>, vector<1x1x1x8xf32>
    %124 = vector.shape_cast %123 : vector<1x1x1x8xf32> to vector<1x8xf32>
    %125 = vector.shape_cast %124 : vector<1x8xf32> to vector<1x1x8xf32>
    %126 = vector.broadcast %125 : vector<1x1x8xf32> to vector<1x15x8xf32>
    %127 = arith.addf %122, %126 : vector<1x15x8xf32>
    %c0_115 = arith.constant 0 : index
    %c3_116 = arith.constant 3 : index
    %c0_117 = arith.constant 0 : index
    %c0_118 = arith.constant 0 : index
    %128 = vector.load %arg4[%c0_115, %c3_116, %c0_117, %c0_118] : memref<2x4x32x8xf32, #tpu.memory_space<vmem>>, vector<1x1x32x8xf32>
    %129 = vector.shape_cast %128 : vector<1x1x32x8xf32> to vector<32x8xf32>
    "tpu.trace_start"() <{level = 10 : i32, message = "bnd,dk->bnk"}> : () -> ()
    %cst_119 = arith.constant dense<0.000000e+00> : vector<1x15x8xf32>
    %130 = tpu.matmul %0, %129, %cst_119 {dimension_numbers = #tpu.dot_dimension_numbers<[2], [0], [0, 1], [1], [0, 0, 0, 1, 1, 1], [], []>} : vector<1x15x32xf32>, vector<32x8xf32>, vector<1x15x8xf32> -> vector<1x15x8xf32>
    "tpu.trace_stop"() : () -> ()
    %c0_120 = arith.constant 0 : index
    %c3_121 = arith.constant 3 : index
    %c0_122 = arith.constant 0 : index
    %c0_123 = arith.constant 0 : index
    %131 = vector.load %arg5[%c0_120, %c3_121, %c0_122, %c0_123] : memref<2x4x1x8xf32, #tpu.memory_space<vmem>>, vector<1x1x1x8xf32>
    %132 = vector.shape_cast %131 : vector<1x1x1x8xf32> to vector<1x8xf32>
    %133 = vector.shape_cast %132 : vector<1x8xf32> to vector<1x1x8xf32>
    %134 = vector.broadcast %133 : vector<1x1x8xf32> to vector<1x15x8xf32>
    %135 = arith.addf %130, %134 : vector<1x15x8xf32>
    %c0_124 = arith.constant 0 : index
    %c3_125 = arith.constant 3 : index
    %c0_126 = arith.constant 0 : index
    %c0_127 = arith.constant 0 : index
    %136 = vector.load %arg6[%c0_124, %c3_125, %c0_126, %c0_127] : memref<2x4x32x8xf32, #tpu.memory_space<vmem>>, vector<1x1x32x8xf32>
    %137 = vector.shape_cast %136 : vector<1x1x32x8xf32> to vector<32x8xf32>
    "tpu.trace_start"() <{level = 10 : i32, message = "bnd,dk->bnk"}> : () -> ()
    %cst_128 = arith.constant dense<0.000000e+00> : vector<1x15x8xf32>
    %138 = tpu.matmul %0, %137, %cst_128 {dimension_numbers = #tpu.dot_dimension_numbers<[2], [0], [0, 1], [1], [0, 0, 0, 1, 1, 1], [], []>} : vector<1x15x32xf32>, vector<32x8xf32>, vector<1x15x8xf32> -> vector<1x15x8xf32>
    "tpu.trace_stop"() : () -> ()
    %c0_129 = arith.constant 0 : index
    %c3_130 = arith.constant 3 : index
    %c0_131 = arith.constant 0 : index
    %c0_132 = arith.constant 0 : index
    %139 = vector.load %arg7[%c0_129, %c3_130, %c0_131, %c0_132] : memref<2x4x1x8xf32, #tpu.memory_space<vmem>>, vector<1x1x1x8xf32>
    %140 = vector.shape_cast %139 : vector<1x1x1x8xf32> to vector<1x8xf32>
    %141 = vector.shape_cast %140 : vector<1x8xf32> to vector<1x1x8xf32>
    %142 = vector.broadcast %141 : vector<1x1x8xf32> to vector<1x15x8xf32>
    %143 = arith.addf %138, %142 : vector<1x15x8xf32>
    "tpu.trace_start"() <{level = 10 : i32, message = "bnk,bmk->bnm"}> : () -> ()
    %cst_133 = arith.constant dense<0.000000e+00> : vector<1x15x15xf32>
    %144 = tpu.matmul %127, %135, %cst_133 {dimension_numbers = #tpu.dot_dimension_numbers<[2], [2], [1], [1], [0, 0, 0, 1, 1, 1], [0], [0]>} : vector<1x15x8xf32>, vector<1x15x8xf32>, vector<1x15x15xf32> -> vector<1x15x15xf32>
    "tpu.trace_stop"() : () -> ()
    %cst_134 = arith.constant dense<0xFF800000> : vector<1x15xf32>
    %145 = vector.multi_reduction <maximumf>, %144, %cst_134 [2] : vector<1x15x15xf32> to vector<1x15xf32>
    %146 = vector.shape_cast %145 : vector<1x15xf32> to vector<1x15x1xf32>
    %147 = vector.broadcast %146 : vector<1x15x1xf32> to vector<1x15x15xf32>
    %148 = arith.subf %144, %147 : vector<1x15x15xf32>
    %149 = math.exp %148 : vector<1x15x15xf32>
    %cst_135 = arith.constant dense<0.000000e+00> : vector<1x15xf32>
    %150 = vector.multi_reduction <add>, %149, %cst_135 [2] : vector<1x15x15xf32> to vector<1x15xf32>
    %151 = vector.shape_cast %150 : vector<1x15xf32> to vector<1x15x1xf32>
    %152 = tpu.reciprocal %151 {approx = true} : vector<1x15x1xf32> -> vector<1x15x1xf32>
    %153 = vector.broadcast %152 : vector<1x15x1xf32> to vector<1x15x15xf32>
    %154 = arith.mulf %149, %153 : vector<1x15x15xf32>
    "tpu.trace_start"() <{level = 10 : i32, message = "bnm,bmk->bnk"}> : () -> ()
    %cst_136 = arith.constant dense<0.000000e+00> : vector<1x15x8xf32>
    %155 = tpu.matmul %154, %143, %cst_136 {dimension_numbers = #tpu.dot_dimension_numbers<[2], [1], [1], [2], [0, 0, 0, 1, 1, 2], [0], [0]>} : vector<1x15x15xf32>, vector<1x15x8xf32>, vector<1x15x8xf32> -> vector<1x15x8xf32>
    "tpu.trace_stop"() : () -> ()
    %c0_137 = arith.constant 0 : index
    %c3_138 = arith.constant 3 : index
    %c0_139 = arith.constant 0 : index
    %c0_140 = arith.constant 0 : index
    %156 = vector.load %arg8[%c0_137, %c3_138, %c0_139, %c0_140] : memref<2x4x8x32xf32, #tpu.memory_space<vmem>>, vector<1x1x8x32xf32>
    %157 = vector.shape_cast %156 : vector<1x1x8x32xf32> to vector<8x32xf32>
    "tpu.trace_start"() <{level = 10 : i32, message = "bnk,kd->bnd"}> : () -> ()
    %cst_141 = arith.constant dense<0.000000e+00> : vector<1x15x32xf32>
    %158 = tpu.matmul %155, %157, %cst_141 {dimension_numbers = #tpu.dot_dimension_numbers<[2], [0], [0, 1], [1], [0, 0, 0, 1, 1, 1], [], []>} : vector<1x15x8xf32>, vector<8x32xf32>, vector<1x15x32xf32> -> vector<1x15x32xf32>
    "tpu.trace_stop"() : () -> ()
    %159 = arith.addf %119, %158 : vector<1x15x32xf32>
    %c0_142 = arith.constant 0 : index
    %c0_143 = arith.constant 0 : index
    %c0_144 = arith.constant 0 : index
    %160 = vector.load %arg9[%c0_142, %c0_143, %c0_144] : memref<2x1x32xf32, #tpu.memory_space<vmem>>, vector<1x1x32xf32>
    %161 = vector.shape_cast %160 : vector<1x1x32xf32> to vector<1x32xf32>
    %162 = vector.shape_cast %161 : vector<1x32xf32> to vector<1x1x32xf32>
    %163 = vector.broadcast %162 : vector<1x1x32xf32> to vector<1x15x32xf32>
    %164 = arith.addf %159, %163 : vector<1x15x32xf32>
    %165 = arith.addf %0, %164 : vector<1x15x32xf32>
    %c0_145 = arith.constant 0 : index
    %c0_146 = arith.constant 0 : index
    %c0_147 = arith.constant 0 : index
    %166 = vector.load %arg10[%c0_145, %c0_146, %c0_147] : memref<2x1x32xf32, #tpu.memory_space<vmem>>, vector<1x1x32xf32>
    %167 = vector.shape_cast %166 : vector<1x1x32xf32> to vector<1x32xf32>
    %c0_148 = arith.constant 0 : index
    %c0_149 = arith.constant 0 : index
    %c0_150 = arith.constant 0 : index
    %168 = vector.load %arg11[%c0_148, %c0_149, %c0_150] : memref<2x1x32xf32, #tpu.memory_space<vmem>>, vector<1x1x32xf32>
    %169 = vector.shape_cast %168 : vector<1x1x32xf32> to vector<1x32xf32>
    %cst_151 = arith.constant dense<0.000000e+00> : vector<1x15xf32>
    %170 = vector.multi_reduction <add>, %165, %cst_151 [2] : vector<1x15x32xf32> to vector<1x15xf32>
    %171 = vector.shape_cast %170 : vector<1x15xf32> to vector<1x15x1xf32>
    %cst_152 = arith.constant 3.200000e+01 : f32
    %172 = vector.broadcast %cst_152 : f32 to vector<1x15x1xf32>
    %173 = arith.divf %171, %172 : vector<1x15x1xf32>
    %174 = vector.broadcast %173 : vector<1x15x1xf32> to vector<1x15x32xf32>
    %175 = arith.subf %165, %174 : vector<1x15x32xf32>
    %176 = arith.mulf %175, %175 : vector<1x15x32xf32>
    %cst_153 = arith.constant dense<0.000000e+00> : vector<1x15xf32>
    %177 = vector.multi_reduction <add>, %176, %cst_153 [2] : vector<1x15x32xf32> to vector<1x15xf32>
    %178 = vector.shape_cast %177 : vector<1x15xf32> to vector<1x15x1xf32>
    %cst_154 = arith.constant 3.200000e+01 : f32
    %179 = vector.broadcast %cst_154 : f32 to vector<1x15x1xf32>
    %180 = arith.divf %178, %179 : vector<1x15x1xf32>
    %cst_155 = arith.constant 9.99999974E-6 : f32
    %181 = vector.broadcast %cst_155 : f32 to vector<1x15x1xf32>
    %182 = arith.addf %180, %181 : vector<1x15x1xf32>
    %183 = math.rsqrt %182 : vector<1x15x1xf32>
    %184 = vector.broadcast %183 : vector<1x15x1xf32> to vector<1x15x32xf32>
    %185 = arith.mulf %175, %184 : vector<1x15x32xf32>
    %186 = vector.shape_cast %167 : vector<1x32xf32> to vector<1x1x32xf32>
    %187 = vector.broadcast %186 : vector<1x1x32xf32> to vector<1x15x32xf32>
    %188 = arith.mulf %185, %187 : vector<1x15x32xf32>
    %189 = vector.shape_cast %169 : vector<1x32xf32> to vector<1x1x32xf32>
    %190 = vector.broadcast %189 : vector<1x1x32xf32> to vector<1x15x32xf32>
    %191 = arith.addf %188, %190 : vector<1x15x32xf32>
    %c0_156 = arith.constant 0 : index
    %c0_157 = arith.constant 0 : index
    %c0_158 = arith.constant 0 : index
    %192 = vector.load %arg12[%c0_156, %c0_157, %c0_158] : memref<2x32x128xf32, #tpu.memory_space<vmem>>, vector<1x32x128xf32>
    %193 = vector.shape_cast %192 : vector<1x32x128xf32> to vector<32x128xf32>
    "tpu.trace_start"() <{level = 10 : i32, message = "bnd,df->bnf"}> : () -> ()
    %cst_159 = arith.constant dense<0.000000e+00> : vector<1x15x128xf32>
    %194 = tpu.matmul %191, %193, %cst_159 {dimension_numbers = #tpu.dot_dimension_numbers<[2], [0], [0, 1], [1], [0, 0, 0, 1, 1, 1], [], []>} : vector<1x15x32xf32>, vector<32x128xf32>, vector<1x15x128xf32> -> vector<1x15x128xf32>
    "tpu.trace_stop"() : () -> ()
    %c0_160 = arith.constant 0 : index
    %c0_161 = arith.constant 0 : index
    %c0_162 = arith.constant 0 : index
    %195 = vector.load %arg13[%c0_160, %c0_161, %c0_162] : memref<2x1x128xf32, #tpu.memory_space<vmem>>, vector<1x1x128xf32>
    %196 = vector.shape_cast %195 : vector<1x1x128xf32> to vector<1x128xf32>
    %197 = vector.shape_cast %196 : vector<1x128xf32> to vector<1x1x128xf32>
    %198 = vector.broadcast %197 : vector<1x1x128xf32> to vector<1x15x128xf32>
    %199 = arith.addf %194, %198 : vector<1x15x128xf32>
    %200 = arith.negf %199 : vector<1x15x128xf32>
    %201 = math.exp %200 : vector<1x15x128xf32>
    %cst_163 = arith.constant 1.000000e+00 : f32
    %202 = vector.broadcast %cst_163 : f32 to vector<1x15x128xf32>
    %203 = arith.addf %202, %201 : vector<1x15x128xf32>
    %204 = arith.divf %202, %203 : vector<1x15x128xf32>
    %205 = arith.mulf %199, %204 : vector<1x15x128xf32>
    %c0_164 = arith.constant 0 : index
    %c0_165 = arith.constant 0 : index
    %c0_166 = arith.constant 0 : index
    %206 = vector.load %arg14[%c0_164, %c0_165, %c0_166] : memref<2x128x32xf32, #tpu.memory_space<vmem>>, vector<1x128x32xf32>
    %207 = vector.shape_cast %206 : vector<1x128x32xf32> to vector<128x32xf32>
    "tpu.trace_start"() <{level = 10 : i32, message = "bnf,fd->bnd"}> : () -> ()
    %cst_167 = arith.constant dense<0.000000e+00> : vector<1x15x32xf32>
    %208 = tpu.matmul %205, %207, %cst_167 {dimension_numbers = #tpu.dot_dimension_numbers<[2], [0], [0, 1], [1], [0, 0, 0, 1, 1, 1], [], []>} : vector<1x15x128xf32>, vector<128x32xf32>, vector<1x15x32xf32> -> vector<1x15x32xf32>
    "tpu.trace_stop"() : () -> ()
    %c0_168 = arith.constant 0 : index
    %c0_169 = arith.constant 0 : index
    %c0_170 = arith.constant 0 : index
    %209 = vector.load %arg15[%c0_168, %c0_169, %c0_170] : memref<2x1x32xf32, #tpu.memory_space<vmem>>, vector<1x1x32xf32>
    %210 = vector.shape_cast %209 : vector<1x1x32xf32> to vector<1x32xf32>
    %211 = vector.shape_cast %210 : vector<1x32xf32> to vector<1x1x32xf32>
    %212 = vector.broadcast %211 : vector<1x1x32xf32> to vector<1x15x32xf32>
    %213 = arith.addf %208, %212 : vector<1x15x32xf32>
    %214 = arith.addf %191, %213 : vector<1x15x32xf32>
    %c0_171 = arith.constant 0 : index
    %c0_172 = arith.constant 0 : index
    %c0_173 = arith.constant 0 : index
    %215 = vector.load %arg16[%c0_171, %c0_172, %c0_173] : memref<2x1x32xf32, #tpu.memory_space<vmem>>, vector<1x1x32xf32>
    %216 = vector.shape_cast %215 : vector<1x1x32xf32> to vector<1x32xf32>
    %c0_174 = arith.constant 0 : index
    %c0_175 = arith.constant 0 : index
    %c0_176 = arith.constant 0 : index
    %217 = vector.load %arg17[%c0_174, %c0_175, %c0_176] : memref<2x1x32xf32, #tpu.memory_space<vmem>>, vector<1x1x32xf32>
    %218 = vector.shape_cast %217 : vector<1x1x32xf32> to vector<1x32xf32>
    %cst_177 = arith.constant dense<0.000000e+00> : vector<1x15xf32>
    %219 = vector.multi_reduction <add>, %214, %cst_177 [2] : vector<1x15x32xf32> to vector<1x15xf32>
    %220 = vector.shape_cast %219 : vector<1x15xf32> to vector<1x15x1xf32>
    %cst_178 = arith.constant 3.200000e+01 : f32
    %221 = vector.broadcast %cst_178 : f32 to vector<1x15x1xf32>
    %222 = arith.divf %220, %221 : vector<1x15x1xf32>
    %223 = vector.broadcast %222 : vector<1x15x1xf32> to vector<1x15x32xf32>
    %224 = arith.subf %214, %223 : vector<1x15x32xf32>
    %225 = arith.mulf %224, %224 : vector<1x15x32xf32>
    %cst_179 = arith.constant dense<0.000000e+00> : vector<1x15xf32>
    %226 = vector.multi_reduction <add>, %225, %cst_179 [2] : vector<1x15x32xf32> to vector<1x15xf32>
    %227 = vector.shape_cast %226 : vector<1x15xf32> to vector<1x15x1xf32>
    %cst_180 = arith.constant 3.200000e+01 : f32
    %228 = vector.broadcast %cst_180 : f32 to vector<1x15x1xf32>
    %229 = arith.divf %227, %228 : vector<1x15x1xf32>
    %cst_181 = arith.constant 9.99999974E-6 : f32
    %230 = vector.broadcast %cst_181 : f32 to vector<1x15x1xf32>
    %231 = arith.addf %229, %230 : vector<1x15x1xf32>
    %232 = math.rsqrt %231 : vector<1x15x1xf32>
    %233 = vector.broadcast %232 : vector<1x15x1xf32> to vector<1x15x32xf32>
    %234 = arith.mulf %224, %233 : vector<1x15x32xf32>
    %235 = vector.shape_cast %216 : vector<1x32xf32> to vector<1x1x32xf32>
    %236 = vector.broadcast %235 : vector<1x1x32xf32> to vector<1x15x32xf32>
    %237 = arith.mulf %234, %236 : vector<1x15x32xf32>
    %238 = vector.shape_cast %218 : vector<1x32xf32> to vector<1x1x32xf32>
    %239 = vector.broadcast %238 : vector<1x1x32xf32> to vector<1x15x32xf32>
    %240 = arith.addf %237, %239 : vector<1x15x32xf32>
    %c1_182 = arith.constant 1 : index
    %c0_183 = arith.constant 0 : index
    %c0_184 = arith.constant 0 : index
    %c0_185 = arith.constant 0 : index
    %241 = vector.load %arg2[%c1_182, %c0_183, %c0_184, %c0_185] : memref<2x4x32x8xf32, #tpu.memory_space<vmem>>, vector<1x1x32x8xf32>
    %242 = vector.shape_cast %241 : vector<1x1x32x8xf32> to vector<32x8xf32>
    "tpu.trace_start"() <{level = 10 : i32, message = "bnd,dk->bnk"}> : () -> ()
    %cst_186 = arith.constant dense<0.000000e+00> : vector<1x15x8xf32>
    %243 = tpu.matmul %240, %242, %cst_186 {dimension_numbers = #tpu.dot_dimension_numbers<[2], [0], [0, 1], [1], [0, 0, 0, 1, 1, 1], [], []>} : vector<1x15x32xf32>, vector<32x8xf32>, vector<1x15x8xf32> -> vector<1x15x8xf32>
    "tpu.trace_stop"() : () -> ()
    %c1_187 = arith.constant 1 : index
    %c0_188 = arith.constant 0 : index
    %c0_189 = arith.constant 0 : index
    %c0_190 = arith.constant 0 : index
    %244 = vector.load %arg3[%c1_187, %c0_188, %c0_189, %c0_190] : memref<2x4x1x8xf32, #tpu.memory_space<vmem>>, vector<1x1x1x8xf32>
    %245 = vector.shape_cast %244 : vector<1x1x1x8xf32> to vector<1x8xf32>
    %246 = vector.shape_cast %245 : vector<1x8xf32> to vector<1x1x8xf32>
    %247 = vector.broadcast %246 : vector<1x1x8xf32> to vector<1x15x8xf32>
    %248 = arith.addf %243, %247 : vector<1x15x8xf32>
    %c1_191 = arith.constant 1 : index
    %c0_192 = arith.constant 0 : index
    %c0_193 = arith.constant 0 : index
    %c0_194 = arith.constant 0 : index
    %249 = vector.load %arg4[%c1_191, %c0_192, %c0_193, %c0_194] : memref<2x4x32x8xf32, #tpu.memory_space<vmem>>, vector<1x1x32x8xf32>
    %250 = vector.shape_cast %249 : vector<1x1x32x8xf32> to vector<32x8xf32>
    "tpu.trace_start"() <{level = 10 : i32, message = "bnd,dk->bnk"}> : () -> ()
    %cst_195 = arith.constant dense<0.000000e+00> : vector<1x15x8xf32>
    %251 = tpu.matmul %240, %250, %cst_195 {dimension_numbers = #tpu.dot_dimension_numbers<[2], [0], [0, 1], [1], [0, 0, 0, 1, 1, 1], [], []>} : vector<1x15x32xf32>, vector<32x8xf32>, vector<1x15x8xf32> -> vector<1x15x8xf32>
    "tpu.trace_stop"() : () -> ()
    %c1_196 = arith.constant 1 : index
    %c0_197 = arith.constant 0 : index
    %c0_198 = arith.constant 0 : index
    %c0_199 = arith.constant 0 : index
    %252 = vector.load %arg5[%c1_196, %c0_197, %c0_198, %c0_199] : memref<2x4x1x8xf32, #tpu.memory_space<vmem>>, vector<1x1x1x8xf32>
    %253 = vector.shape_cast %252 : vector<1x1x1x8xf32> to vector<1x8xf32>
    %254 = vector.shape_cast %253 : vector<1x8xf32> to vector<1x1x8xf32>
    %255 = vector.broadcast %254 : vector<1x1x8xf32> to vector<1x15x8xf32>
    %256 = arith.addf %251, %255 : vector<1x15x8xf32>
    %c1_200 = arith.constant 1 : index
    %c0_201 = arith.constant 0 : index
    %c0_202 = arith.constant 0 : index
    %c0_203 = arith.constant 0 : index
    %257 = vector.load %arg6[%c1_200, %c0_201, %c0_202, %c0_203] : memref<2x4x32x8xf32, #tpu.memory_space<vmem>>, vector<1x1x32x8xf32>
    %258 = vector.shape_cast %257 : vector<1x1x32x8xf32> to vector<32x8xf32>
    "tpu.trace_start"() <{level = 10 : i32, message = "bnd,dk->bnk"}> : () -> ()
    %cst_204 = arith.constant dense<0.000000e+00> : vector<1x15x8xf32>
    %259 = tpu.matmul %240, %258, %cst_204 {dimension_numbers = #tpu.dot_dimension_numbers<[2], [0], [0, 1], [1], [0, 0, 0, 1, 1, 1], [], []>} : vector<1x15x32xf32>, vector<32x8xf32>, vector<1x15x8xf32> -> vector<1x15x8xf32>
    "tpu.trace_stop"() : () -> ()
    %c1_205 = arith.constant 1 : index
    %c0_206 = arith.constant 0 : index
    %c0_207 = arith.constant 0 : index
    %c0_208 = arith.constant 0 : index
    %260 = vector.load %arg7[%c1_205, %c0_206, %c0_207, %c0_208] : memref<2x4x1x8xf32, #tpu.memory_space<vmem>>, vector<1x1x1x8xf32>
    %261 = vector.shape_cast %260 : vector<1x1x1x8xf32> to vector<1x8xf32>
    %262 = vector.shape_cast %261 : vector<1x8xf32> to vector<1x1x8xf32>
    %263 = vector.broadcast %262 : vector<1x1x8xf32> to vector<1x15x8xf32>
    %264 = arith.addf %259, %263 : vector<1x15x8xf32>
    "tpu.trace_start"() <{level = 10 : i32, message = "bnk,bmk->bnm"}> : () -> ()
    %cst_209 = arith.constant dense<0.000000e+00> : vector<1x15x15xf32>
    %265 = tpu.matmul %248, %256, %cst_209 {dimension_numbers = #tpu.dot_dimension_numbers<[2], [2], [1], [1], [0, 0, 0, 1, 1, 1], [0], [0]>} : vector<1x15x8xf32>, vector<1x15x8xf32>, vector<1x15x15xf32> -> vector<1x15x15xf32>
    "tpu.trace_stop"() : () -> ()
    %cst_210 = arith.constant dense<0xFF800000> : vector<1x15xf32>
    %266 = vector.multi_reduction <maximumf>, %265, %cst_210 [2] : vector<1x15x15xf32> to vector<1x15xf32>
    %267 = vector.shape_cast %266 : vector<1x15xf32> to vector<1x15x1xf32>
    %268 = vector.broadcast %267 : vector<1x15x1xf32> to vector<1x15x15xf32>
    %269 = arith.subf %265, %268 : vector<1x15x15xf32>
    %270 = math.exp %269 : vector<1x15x15xf32>
    %cst_211 = arith.constant dense<0.000000e+00> : vector<1x15xf32>
    %271 = vector.multi_reduction <add>, %270, %cst_211 [2] : vector<1x15x15xf32> to vector<1x15xf32>
    %272 = vector.shape_cast %271 : vector<1x15xf32> to vector<1x15x1xf32>
    %273 = tpu.reciprocal %272 {approx = true} : vector<1x15x1xf32> -> vector<1x15x1xf32>
    %274 = vector.broadcast %273 : vector<1x15x1xf32> to vector<1x15x15xf32>
    %275 = arith.mulf %270, %274 : vector<1x15x15xf32>
    "tpu.trace_start"() <{level = 10 : i32, message = "bnm,bmk->bnk"}> : () -> ()
    %cst_212 = arith.constant dense<0.000000e+00> : vector<1x15x8xf32>
    %276 = tpu.matmul %275, %264, %cst_212 {dimension_numbers = #tpu.dot_dimension_numbers<[2], [1], [1], [2], [0, 0, 0, 1, 1, 2], [0], [0]>} : vector<1x15x15xf32>, vector<1x15x8xf32>, vector<1x15x8xf32> -> vector<1x15x8xf32>
    "tpu.trace_stop"() : () -> ()
    %c1_213 = arith.constant 1 : index
    %c0_214 = arith.constant 0 : index
    %c0_215 = arith.constant 0 : index
    %c0_216 = arith.constant 0 : index
    %277 = vector.load %arg8[%c1_213, %c0_214, %c0_215, %c0_216] : memref<2x4x8x32xf32, #tpu.memory_space<vmem>>, vector<1x1x8x32xf32>
    %278 = vector.shape_cast %277 : vector<1x1x8x32xf32> to vector<8x32xf32>
    "tpu.trace_start"() <{level = 10 : i32, message = "bnk,kd->bnd"}> : () -> ()
    %cst_217 = arith.constant dense<0.000000e+00> : vector<1x15x32xf32>
    %279 = tpu.matmul %276, %278, %cst_217 {dimension_numbers = #tpu.dot_dimension_numbers<[2], [0], [0, 1], [1], [0, 0, 0, 1, 1, 1], [], []>} : vector<1x15x8xf32>, vector<8x32xf32>, vector<1x15x32xf32> -> vector<1x15x32xf32>
    "tpu.trace_stop"() : () -> ()
    %c1_218 = arith.constant 1 : index
    %c1_219 = arith.constant 1 : index
    %c0_220 = arith.constant 0 : index
    %c0_221 = arith.constant 0 : index
    %280 = vector.load %arg2[%c1_218, %c1_219, %c0_220, %c0_221] : memref<2x4x32x8xf32, #tpu.memory_space<vmem>>, vector<1x1x32x8xf32>
    %281 = vector.shape_cast %280 : vector<1x1x32x8xf32> to vector<32x8xf32>
    "tpu.trace_start"() <{level = 10 : i32, message = "bnd,dk->bnk"}> : () -> ()
    %cst_222 = arith.constant dense<0.000000e+00> : vector<1x15x8xf32>
    %282 = tpu.matmul %240, %281, %cst_222 {dimension_numbers = #tpu.dot_dimension_numbers<[2], [0], [0, 1], [1], [0, 0, 0, 1, 1, 1], [], []>} : vector<1x15x32xf32>, vector<32x8xf32>, vector<1x15x8xf32> -> vector<1x15x8xf32>
    "tpu.trace_stop"() : () -> ()
    %c1_223 = arith.constant 1 : index
    %c1_224 = arith.constant 1 : index
    %c0_225 = arith.constant 0 : index
    %c0_226 = arith.constant 0 : index
    %283 = vector.load %arg3[%c1_223, %c1_224, %c0_225, %c0_226] : memref<2x4x1x8xf32, #tpu.memory_space<vmem>>, vector<1x1x1x8xf32>
    %284 = vector.shape_cast %283 : vector<1x1x1x8xf32> to vector<1x8xf32>
    %285 = vector.shape_cast %284 : vector<1x8xf32> to vector<1x1x8xf32>
    %286 = vector.broadcast %285 : vector<1x1x8xf32> to vector<1x15x8xf32>
    %287 = arith.addf %282, %286 : vector<1x15x8xf32>
    %c1_227 = arith.constant 1 : index
    %c1_228 = arith.constant 1 : index
    %c0_229 = arith.constant 0 : index
    %c0_230 = arith.constant 0 : index
    %288 = vector.load %arg4[%c1_227, %c1_228, %c0_229, %c0_230] : memref<2x4x32x8xf32, #tpu.memory_space<vmem>>, vector<1x1x32x8xf32>
    %289 = vector.shape_cast %288 : vector<1x1x32x8xf32> to vector<32x8xf32>
    "tpu.trace_start"() <{level = 10 : i32, message = "bnd,dk->bnk"}> : () -> ()
    %cst_231 = arith.constant dense<0.000000e+00> : vector<1x15x8xf32>
    %290 = tpu.matmul %240, %289, %cst_231 {dimension_numbers = #tpu.dot_dimension_numbers<[2], [0], [0, 1], [1], [0, 0, 0, 1, 1, 1], [], []>} : vector<1x15x32xf32>, vector<32x8xf32>, vector<1x15x8xf32> -> vector<1x15x8xf32>
    "tpu.trace_stop"() : () -> ()
    %c1_232 = arith.constant 1 : index
    %c1_233 = arith.constant 1 : index
    %c0_234 = arith.constant 0 : index
    %c0_235 = arith.constant 0 : index
    %291 = vector.load %arg5[%c1_232, %c1_233, %c0_234, %c0_235] : memref<2x4x1x8xf32, #tpu.memory_space<vmem>>, vector<1x1x1x8xf32>
    %292 = vector.shape_cast %291 : vector<1x1x1x8xf32> to vector<1x8xf32>
    %293 = vector.shape_cast %292 : vector<1x8xf32> to vector<1x1x8xf32>
    %294 = vector.broadcast %293 : vector<1x1x8xf32> to vector<1x15x8xf32>
    %295 = arith.addf %290, %294 : vector<1x15x8xf32>
    %c1_236 = arith.constant 1 : index
    %c1_237 = arith.constant 1 : index
    %c0_238 = arith.constant 0 : index
    %c0_239 = arith.constant 0 : index
    %296 = vector.load %arg6[%c1_236, %c1_237, %c0_238, %c0_239] : memref<2x4x32x8xf32, #tpu.memory_space<vmem>>, vector<1x1x32x8xf32>
    %297 = vector.shape_cast %296 : vector<1x1x32x8xf32> to vector<32x8xf32>
    "tpu.trace_start"() <{level = 10 : i32, message = "bnd,dk->bnk"}> : () -> ()
    %cst_240 = arith.constant dense<0.000000e+00> : vector<1x15x8xf32>
    %298 = tpu.matmul %240, %297, %cst_240 {dimension_numbers = #tpu.dot_dimension_numbers<[2], [0], [0, 1], [1], [0, 0, 0, 1, 1, 1], [], []>} : vector<1x15x32xf32>, vector<32x8xf32>, vector<1x15x8xf32> -> vector<1x15x8xf32>
    "tpu.trace_stop"() : () -> ()
    %c1_241 = arith.constant 1 : index
    %c1_242 = arith.constant 1 : index
    %c0_243 = arith.constant 0 : index
    %c0_244 = arith.constant 0 : index
    %299 = vector.load %arg7[%c1_241, %c1_242, %c0_243, %c0_244] : memref<2x4x1x8xf32, #tpu.memory_space<vmem>>, vector<1x1x1x8xf32>
    %300 = vector.shape_cast %299 : vector<1x1x1x8xf32> to vector<1x8xf32>
    %301 = vector.shape_cast %300 : vector<1x8xf32> to vector<1x1x8xf32>
    %302 = vector.broadcast %301 : vector<1x1x8xf32> to vector<1x15x8xf32>
    %303 = arith.addf %298, %302 : vector<1x15x8xf32>
    "tpu.trace_start"() <{level = 10 : i32, message = "bnk,bmk->bnm"}> : () -> ()
    %cst_245 = arith.constant dense<0.000000e+00> : vector<1x15x15xf32>
    %304 = tpu.matmul %287, %295, %cst_245 {dimension_numbers = #tpu.dot_dimension_numbers<[2], [2], [1], [1], [0, 0, 0, 1, 1, 1], [0], [0]>} : vector<1x15x8xf32>, vector<1x15x8xf32>, vector<1x15x15xf32> -> vector<1x15x15xf32>
    "tpu.trace_stop"() : () -> ()
    %cst_246 = arith.constant dense<0xFF800000> : vector<1x15xf32>
    %305 = vector.multi_reduction <maximumf>, %304, %cst_246 [2] : vector<1x15x15xf32> to vector<1x15xf32>
    %306 = vector.shape_cast %305 : vector<1x15xf32> to vector<1x15x1xf32>
    %307 = vector.broadcast %306 : vector<1x15x1xf32> to vector<1x15x15xf32>
    %308 = arith.subf %304, %307 : vector<1x15x15xf32>
    %309 = math.exp %308 : vector<1x15x15xf32>
    %cst_247 = arith.constant dense<0.000000e+00> : vector<1x15xf32>
    %310 = vector.multi_reduction <add>, %309, %cst_247 [2] : vector<1x15x15xf32> to vector<1x15xf32>
    %311 = vector.shape_cast %310 : vector<1x15xf32> to vector<1x15x1xf32>
    %312 = tpu.reciprocal %311 {approx = true} : vector<1x15x1xf32> -> vector<1x15x1xf32>
    %313 = vector.broadcast %312 : vector<1x15x1xf32> to vector<1x15x15xf32>
    %314 = arith.mulf %309, %313 : vector<1x15x15xf32>
    "tpu.trace_start"() <{level = 10 : i32, message = "bnm,bmk->bnk"}> : () -> ()
    %cst_248 = arith.constant dense<0.000000e+00> : vector<1x15x8xf32>
    %315 = tpu.matmul %314, %303, %cst_248 {dimension_numbers = #tpu.dot_dimension_numbers<[2], [1], [1], [2], [0, 0, 0, 1, 1, 2], [0], [0]>} : vector<1x15x15xf32>, vector<1x15x8xf32>, vector<1x15x8xf32> -> vector<1x15x8xf32>
    "tpu.trace_stop"() : () -> ()
    %c1_249 = arith.constant 1 : index
    %c1_250 = arith.constant 1 : index
    %c0_251 = arith.constant 0 : index
    %c0_252 = arith.constant 0 : index
    %316 = vector.load %arg8[%c1_249, %c1_250, %c0_251, %c0_252] : memref<2x4x8x32xf32, #tpu.memory_space<vmem>>, vector<1x1x8x32xf32>
    %317 = vector.shape_cast %316 : vector<1x1x8x32xf32> to vector<8x32xf32>
    "tpu.trace_start"() <{level = 10 : i32, message = "bnk,kd->bnd"}> : () -> ()
    %cst_253 = arith.constant dense<0.000000e+00> : vector<1x15x32xf32>
    %318 = tpu.matmul %315, %317, %cst_253 {dimension_numbers = #tpu.dot_dimension_numbers<[2], [0], [0, 1], [1], [0, 0, 0, 1, 1, 1], [], []>} : vector<1x15x8xf32>, vector<8x32xf32>, vector<1x15x32xf32> -> vector<1x15x32xf32>
    "tpu.trace_stop"() : () -> ()
    %319 = arith.addf %279, %318 : vector<1x15x32xf32>
    %c1_254 = arith.constant 1 : index
    %c2_255 = arith.constant 2 : index
    %c0_256 = arith.constant 0 : index
    %c0_257 = arith.constant 0 : index
    %320 = vector.load %arg2[%c1_254, %c2_255, %c0_256, %c0_257] : memref<2x4x32x8xf32, #tpu.memory_space<vmem>>, vector<1x1x32x8xf32>
    %321 = vector.shape_cast %320 : vector<1x1x32x8xf32> to vector<32x8xf32>
    "tpu.trace_start"() <{level = 10 : i32, message = "bnd,dk->bnk"}> : () -> ()
    %cst_258 = arith.constant dense<0.000000e+00> : vector<1x15x8xf32>
    %322 = tpu.matmul %240, %321, %cst_258 {dimension_numbers = #tpu.dot_dimension_numbers<[2], [0], [0, 1], [1], [0, 0, 0, 1, 1, 1], [], []>} : vector<1x15x32xf32>, vector<32x8xf32>, vector<1x15x8xf32> -> vector<1x15x8xf32>
    "tpu.trace_stop"() : () -> ()
    %c1_259 = arith.constant 1 : index
    %c2_260 = arith.constant 2 : index
    %c0_261 = arith.constant 0 : index
    %c0_262 = arith.constant 0 : index
    %323 = vector.load %arg3[%c1_259, %c2_260, %c0_261, %c0_262] : memref<2x4x1x8xf32, #tpu.memory_space<vmem>>, vector<1x1x1x8xf32>
    %324 = vector.shape_cast %323 : vector<1x1x1x8xf32> to vector<1x8xf32>
    %325 = vector.shape_cast %324 : vector<1x8xf32> to vector<1x1x8xf32>
    %326 = vector.broadcast %325 : vector<1x1x8xf32> to vector<1x15x8xf32>
    %327 = arith.addf %322, %326 : vector<1x15x8xf32>
    %c1_263 = arith.constant 1 : index
    %c2_264 = arith.constant 2 : index
    %c0_265 = arith.constant 0 : index
    %c0_266 = arith.constant 0 : index
    %328 = vector.load %arg4[%c1_263, %c2_264, %c0_265, %c0_266] : memref<2x4x32x8xf32, #tpu.memory_space<vmem>>, vector<1x1x32x8xf32>
    %329 = vector.shape_cast %328 : vector<1x1x32x8xf32> to vector<32x8xf32>
    "tpu.trace_start"() <{level = 10 : i32, message = "bnd,dk->bnk"}> : () -> ()
    %cst_267 = arith.constant dense<0.000000e+00> : vector<1x15x8xf32>
    %330 = tpu.matmul %240, %329, %cst_267 {dimension_numbers = #tpu.dot_dimension_numbers<[2], [0], [0, 1], [1], [0, 0, 0, 1, 1, 1], [], []>} : vector<1x15x32xf32>, vector<32x8xf32>, vector<1x15x8xf32> -> vector<1x15x8xf32>
    "tpu.trace_stop"() : () -> ()
    %c1_268 = arith.constant 1 : index
    %c2_269 = arith.constant 2 : index
    %c0_270 = arith.constant 0 : index
    %c0_271 = arith.constant 0 : index
    %331 = vector.load %arg5[%c1_268, %c2_269, %c0_270, %c0_271] : memref<2x4x1x8xf32, #tpu.memory_space<vmem>>, vector<1x1x1x8xf32>
    %332 = vector.shape_cast %331 : vector<1x1x1x8xf32> to vector<1x8xf32>
    %333 = vector.shape_cast %332 : vector<1x8xf32> to vector<1x1x8xf32>
    %334 = vector.broadcast %333 : vector<1x1x8xf32> to vector<1x15x8xf32>
    %335 = arith.addf %330, %334 : vector<1x15x8xf32>
    %c1_272 = arith.constant 1 : index
    %c2_273 = arith.constant 2 : index
    %c0_274 = arith.constant 0 : index
    %c0_275 = arith.constant 0 : index
    %336 = vector.load %arg6[%c1_272, %c2_273, %c0_274, %c0_275] : memref<2x4x32x8xf32, #tpu.memory_space<vmem>>, vector<1x1x32x8xf32>
    %337 = vector.shape_cast %336 : vector<1x1x32x8xf32> to vector<32x8xf32>
    "tpu.trace_start"() <{level = 10 : i32, message = "bnd,dk->bnk"}> : () -> ()
    %cst_276 = arith.constant dense<0.000000e+00> : vector<1x15x8xf32>
    %338 = tpu.matmul %240, %337, %cst_276 {dimension_numbers = #tpu.dot_dimension_numbers<[2], [0], [0, 1], [1], [0, 0, 0, 1, 1, 1], [], []>} : vector<1x15x32xf32>, vector<32x8xf32>, vector<1x15x8xf32> -> vector<1x15x8xf32>
    "tpu.trace_stop"() : () -> ()
    %c1_277 = arith.constant 1 : index
    %c2_278 = arith.constant 2 : index
    %c0_279 = arith.constant 0 : index
    %c0_280 = arith.constant 0 : index
    %339 = vector.load %arg7[%c1_277, %c2_278, %c0_279, %c0_280] : memref<2x4x1x8xf32, #tpu.memory_space<vmem>>, vector<1x1x1x8xf32>
    %340 = vector.shape_cast %339 : vector<1x1x1x8xf32> to vector<1x8xf32>
    %341 = vector.shape_cast %340 : vector<1x8xf32> to vector<1x1x8xf32>
    %342 = vector.broadcast %341 : vector<1x1x8xf32> to vector<1x15x8xf32>
    %343 = arith.addf %338, %342 : vector<1x15x8xf32>
    "tpu.trace_start"() <{level = 10 : i32, message = "bnk,bmk->bnm"}> : () -> ()
    %cst_281 = arith.constant dense<0.000000e+00> : vector<1x15x15xf32>
    %344 = tpu.matmul %327, %335, %cst_281 {dimension_numbers = #tpu.dot_dimension_numbers<[2], [2], [1], [1], [0, 0, 0, 1, 1, 1], [0], [0]>} : vector<1x15x8xf32>, vector<1x15x8xf32>, vector<1x15x15xf32> -> vector<1x15x15xf32>
    "tpu.trace_stop"() : () -> ()
    %cst_282 = arith.constant dense<0xFF800000> : vector<1x15xf32>
    %345 = vector.multi_reduction <maximumf>, %344, %cst_282 [2] : vector<1x15x15xf32> to vector<1x15xf32>
    %346 = vector.shape_cast %345 : vector<1x15xf32> to vector<1x15x1xf32>
    %347 = vector.broadcast %346 : vector<1x15x1xf32> to vector<1x15x15xf32>
    %348 = arith.subf %344, %347 : vector<1x15x15xf32>
    %349 = math.exp %348 : vector<1x15x15xf32>
    %cst_283 = arith.constant dense<0.000000e+00> : vector<1x15xf32>
    %350 = vector.multi_reduction <add>, %349, %cst_283 [2] : vector<1x15x15xf32> to vector<1x15xf32>
    %351 = vector.shape_cast %350 : vector<1x15xf32> to vector<1x15x1xf32>
    %352 = tpu.reciprocal %351 {approx = true} : vector<1x15x1xf32> -> vector<1x15x1xf32>
    %353 = vector.broadcast %352 : vector<1x15x1xf32> to vector<1x15x15xf32>
    %354 = arith.mulf %349, %353 : vector<1x15x15xf32>
    "tpu.trace_start"() <{level = 10 : i32, message = "bnm,bmk->bnk"}> : () -> ()
    %cst_284 = arith.constant dense<0.000000e+00> : vector<1x15x8xf32>
    %355 = tpu.matmul %354, %343, %cst_284 {dimension_numbers = #tpu.dot_dimension_numbers<[2], [1], [1], [2], [0, 0, 0, 1, 1, 2], [0], [0]>} : vector<1x15x15xf32>, vector<1x15x8xf32>, vector<1x15x8xf32> -> vector<1x15x8xf32>
    "tpu.trace_stop"() : () -> ()
    %c1_285 = arith.constant 1 : index
    %c2_286 = arith.constant 2 : index
    %c0_287 = arith.constant 0 : index
    %c0_288 = arith.constant 0 : index
    %356 = vector.load %arg8[%c1_285, %c2_286, %c0_287, %c0_288] : memref<2x4x8x32xf32, #tpu.memory_space<vmem>>, vector<1x1x8x32xf32>
    %357 = vector.shape_cast %356 : vector<1x1x8x32xf32> to vector<8x32xf32>
    "tpu.trace_start"() <{level = 10 : i32, message = "bnk,kd->bnd"}> : () -> ()
    %cst_289 = arith.constant dense<0.000000e+00> : vector<1x15x32xf32>
    %358 = tpu.matmul %355, %357, %cst_289 {dimension_numbers = #tpu.dot_dimension_numbers<[2], [0], [0, 1], [1], [0, 0, 0, 1, 1, 1], [], []>} : vector<1x15x8xf32>, vector<8x32xf32>, vector<1x15x32xf32> -> vector<1x15x32xf32>
    "tpu.trace_stop"() : () -> ()
    %359 = arith.addf %319, %358 : vector<1x15x32xf32>
    %c1_290 = arith.constant 1 : index
    %c3_291 = arith.constant 3 : index
    %c0_292 = arith.constant 0 : index
    %c0_293 = arith.constant 0 : index
    %360 = vector.load %arg2[%c1_290, %c3_291, %c0_292, %c0_293] : memref<2x4x32x8xf32, #tpu.memory_space<vmem>>, vector<1x1x32x8xf32>
    %361 = vector.shape_cast %360 : vector<1x1x32x8xf32> to vector<32x8xf32>
    "tpu.trace_start"() <{level = 10 : i32, message = "bnd,dk->bnk"}> : () -> ()
    %cst_294 = arith.constant dense<0.000000e+00> : vector<1x15x8xf32>
    %362 = tpu.matmul %240, %361, %cst_294 {dimension_numbers = #tpu.dot_dimension_numbers<[2], [0], [0, 1], [1], [0, 0, 0, 1, 1, 1], [], []>} : vector<1x15x32xf32>, vector<32x8xf32>, vector<1x15x8xf32> -> vector<1x15x8xf32>
    "tpu.trace_stop"() : () -> ()
    %c1_295 = arith.constant 1 : index
    %c3_296 = arith.constant 3 : index
    %c0_297 = arith.constant 0 : index
    %c0_298 = arith.constant 0 : index
    %363 = vector.load %arg3[%c1_295, %c3_296, %c0_297, %c0_298] : memref<2x4x1x8xf32, #tpu.memory_space<vmem>>, vector<1x1x1x8xf32>
    %364 = vector.shape_cast %363 : vector<1x1x1x8xf32> to vector<1x8xf32>
    %365 = vector.shape_cast %364 : vector<1x8xf32> to vector<1x1x8xf32>
    %366 = vector.broadcast %365 : vector<1x1x8xf32> to vector<1x15x8xf32>
    %367 = arith.addf %362, %366 : vector<1x15x8xf32>
    %c1_299 = arith.constant 1 : index
    %c3_300 = arith.constant 3 : index
    %c0_301 = arith.constant 0 : index
    %c0_302 = arith.constant 0 : index
    %368 = vector.load %arg4[%c1_299, %c3_300, %c0_301, %c0_302] : memref<2x4x32x8xf32, #tpu.memory_space<vmem>>, vector<1x1x32x8xf32>
    %369 = vector.shape_cast %368 : vector<1x1x32x8xf32> to vector<32x8xf32>
    "tpu.trace_start"() <{level = 10 : i32, message = "bnd,dk->bnk"}> : () -> ()
    %cst_303 = arith.constant dense<0.000000e+00> : vector<1x15x8xf32>
    %370 = tpu.matmul %240, %369, %cst_303 {dimension_numbers = #tpu.dot_dimension_numbers<[2], [0], [0, 1], [1], [0, 0, 0, 1, 1, 1], [], []>} : vector<1x15x32xf32>, vector<32x8xf32>, vector<1x15x8xf32> -> vector<1x15x8xf32>
    "tpu.trace_stop"() : () -> ()
    %c1_304 = arith.constant 1 : index
    %c3_305 = arith.constant 3 : index
    %c0_306 = arith.constant 0 : index
    %c0_307 = arith.constant 0 : index
    %371 = vector.load %arg5[%c1_304, %c3_305, %c0_306, %c0_307] : memref<2x4x1x8xf32, #tpu.memory_space<vmem>>, vector<1x1x1x8xf32>
    %372 = vector.shape_cast %371 : vector<1x1x1x8xf32> to vector<1x8xf32>
    %373 = vector.shape_cast %372 : vector<1x8xf32> to vector<1x1x8xf32>
    %374 = vector.broadcast %373 : vector<1x1x8xf32> to vector<1x15x8xf32>
    %375 = arith.addf %370, %374 : vector<1x15x8xf32>
    %c1_308 = arith.constant 1 : index
    %c3_309 = arith.constant 3 : index
    %c0_310 = arith.constant 0 : index
    %c0_311 = arith.constant 0 : index
    %376 = vector.load %arg6[%c1_308, %c3_309, %c0_310, %c0_311] : memref<2x4x32x8xf32, #tpu.memory_space<vmem>>, vector<1x1x32x8xf32>
    %377 = vector.shape_cast %376 : vector<1x1x32x8xf32> to vector<32x8xf32>
    "tpu.trace_start"() <{level = 10 : i32, message = "bnd,dk->bnk"}> : () -> ()
    %cst_312 = arith.constant dense<0.000000e+00> : vector<1x15x8xf32>
    %378 = tpu.matmul %240, %377, %cst_312 {dimension_numbers = #tpu.dot_dimension_numbers<[2], [0], [0, 1], [1], [0, 0, 0, 1, 1, 1], [], []>} : vector<1x15x32xf32>, vector<32x8xf32>, vector<1x15x8xf32> -> vector<1x15x8xf32>
    "tpu.trace_stop"() : () -> ()
    %c1_313 = arith.constant 1 : index
    %c3_314 = arith.constant 3 : index
    %c0_315 = arith.constant 0 : index
    %c0_316 = arith.constant 0 : index
    %379 = vector.load %arg7[%c1_313, %c3_314, %c0_315, %c0_316] : memref<2x4x1x8xf32, #tpu.memory_space<vmem>>, vector<1x1x1x8xf32>
    %380 = vector.shape_cast %379 : vector<1x1x1x8xf32> to vector<1x8xf32>
    %381 = vector.shape_cast %380 : vector<1x8xf32> to vector<1x1x8xf32>
    %382 = vector.broadcast %381 : vector<1x1x8xf32> to vector<1x15x8xf32>
    %383 = arith.addf %378, %382 : vector<1x15x8xf32>
    "tpu.trace_start"() <{level = 10 : i32, message = "bnk,bmk->bnm"}> : () -> ()
    %cst_317 = arith.constant dense<0.000000e+00> : vector<1x15x15xf32>
    %384 = tpu.matmul %367, %375, %cst_317 {dimension_numbers = #tpu.dot_dimension_numbers<[2], [2], [1], [1], [0, 0, 0, 1, 1, 1], [0], [0]>} : vector<1x15x8xf32>, vector<1x15x8xf32>, vector<1x15x15xf32> -> vector<1x15x15xf32>
    "tpu.trace_stop"() : () -> ()
    %cst_318 = arith.constant dense<0xFF800000> : vector<1x15xf32>
    %385 = vector.multi_reduction <maximumf>, %384, %cst_318 [2] : vector<1x15x15xf32> to vector<1x15xf32>
    %386 = vector.shape_cast %385 : vector<1x15xf32> to vector<1x15x1xf32>
    %387 = vector.broadcast %386 : vector<1x15x1xf32> to vector<1x15x15xf32>
    %388 = arith.subf %384, %387 : vector<1x15x15xf32>
    %389 = math.exp %388 : vector<1x15x15xf32>
    %cst_319 = arith.constant dense<0.000000e+00> : vector<1x15xf32>
    %390 = vector.multi_reduction <add>, %389, %cst_319 [2] : vector<1x15x15xf32> to vector<1x15xf32>
    %391 = vector.shape_cast %390 : vector<1x15xf32> to vector<1x15x1xf32>
    %392 = tpu.reciprocal %391 {approx = true} : vector<1x15x1xf32> -> vector<1x15x1xf32>
    %393 = vector.broadcast %392 : vector<1x15x1xf32> to vector<1x15x15xf32>
    %394 = arith.mulf %389, %393 : vector<1x15x15xf32>
    "tpu.trace_start"() <{level = 10 : i32, message = "bnm,bmk->bnk"}> : () -> ()
    %cst_320 = arith.constant dense<0.000000e+00> : vector<1x15x8xf32>
    %395 = tpu.matmul %394, %383, %cst_320 {dimension_numbers = #tpu.dot_dimension_numbers<[2], [1], [1], [2], [0, 0, 0, 1, 1, 2], [0], [0]>} : vector<1x15x15xf32>, vector<1x15x8xf32>, vector<1x15x8xf32> -> vector<1x15x8xf32>
    "tpu.trace_stop"() : () -> ()
    %c1_321 = arith.constant 1 : index
    %c3_322 = arith.constant 3 : index
    %c0_323 = arith.constant 0 : index
    %c0_324 = arith.constant 0 : index
    %396 = vector.load %arg8[%c1_321, %c3_322, %c0_323, %c0_324] : memref<2x4x8x32xf32, #tpu.memory_space<vmem>>, vector<1x1x8x32xf32>
    %397 = vector.shape_cast %396 : vector<1x1x8x32xf32> to vector<8x32xf32>
    "tpu.trace_start"() <{level = 10 : i32, message = "bnk,kd->bnd"}> : () -> ()
    %cst_325 = arith.constant dense<0.000000e+00> : vector<1x15x32xf32>
    %398 = tpu.matmul %395, %397, %cst_325 {dimension_numbers = #tpu.dot_dimension_numbers<[2], [0], [0, 1], [1], [0, 0, 0, 1, 1, 1], [], []>} : vector<1x15x8xf32>, vector<8x32xf32>, vector<1x15x32xf32> -> vector<1x15x32xf32>
    "tpu.trace_stop"() : () -> ()
    %399 = arith.addf %359, %398 : vector<1x15x32xf32>
    %c1_326 = arith.constant 1 : index
    %c0_327 = arith.constant 0 : index
    %c0_328 = arith.constant 0 : index
    %400 = vector.load %arg9[%c1_326, %c0_327, %c0_328] : memref<2x1x32xf32, #tpu.memory_space<vmem>>, vector<1x1x32xf32>
    %401 = vector.shape_cast %400 : vector<1x1x32xf32> to vector<1x32xf32>
    %402 = vector.shape_cast %401 : vector<1x32xf32> to vector<1x1x32xf32>
    %403 = vector.broadcast %402 : vector<1x1x32xf32> to vector<1x15x32xf32>
    %404 = arith.addf %399, %403 : vector<1x15x32xf32>
    %405 = arith.addf %240, %404 : vector<1x15x32xf32>
    %c1_329 = arith.constant 1 : index
    %c0_330 = arith.constant 0 : index
    %c0_331 = arith.constant 0 : index
    %406 = vector.load %arg10[%c1_329, %c0_330, %c0_331] : memref<2x1x32xf32, #tpu.memory_space<vmem>>, vector<1x1x32xf32>
    %407 = vector.shape_cast %406 : vector<1x1x32xf32> to vector<1x32xf32>
    %c1_332 = arith.constant 1 : index
    %c0_333 = arith.constant 0 : index
    %c0_334 = arith.constant 0 : index
    %408 = vector.load %arg11[%c1_332, %c0_333, %c0_334] : memref<2x1x32xf32, #tpu.memory_space<vmem>>, vector<1x1x32xf32>
    %409 = vector.shape_cast %408 : vector<1x1x32xf32> to vector<1x32xf32>
    %cst_335 = arith.constant dense<0.000000e+00> : vector<1x15xf32>
    %410 = vector.multi_reduction <add>, %405, %cst_335 [2] : vector<1x15x32xf32> to vector<1x15xf32>
    %411 = vector.shape_cast %410 : vector<1x15xf32> to vector<1x15x1xf32>
    %cst_336 = arith.constant 3.200000e+01 : f32
    %412 = vector.broadcast %cst_336 : f32 to vector<1x15x1xf32>
    %413 = arith.divf %411, %412 : vector<1x15x1xf32>
    %414 = vector.broadcast %413 : vector<1x15x1xf32> to vector<1x15x32xf32>
    %415 = arith.subf %405, %414 : vector<1x15x32xf32>
    %416 = arith.mulf %415, %415 : vector<1x15x32xf32>
    %cst_337 = arith.constant dense<0.000000e+00> : vector<1x15xf32>
    %417 = vector.multi_reduction <add>, %416, %cst_337 [2] : vector<1x15x32xf32> to vector<1x15xf32>
    %418 = vector.shape_cast %417 : vector<1x15xf32> to vector<1x15x1xf32>
    %cst_338 = arith.constant 3.200000e+01 : f32
    %419 = vector.broadcast %cst_338 : f32 to vector<1x15x1xf32>
    %420 = arith.divf %418, %419 : vector<1x15x1xf32>
    %cst_339 = arith.constant 9.99999974E-6 : f32
    %421 = vector.broadcast %cst_339 : f32 to vector<1x15x1xf32>
    %422 = arith.addf %420, %421 : vector<1x15x1xf32>
    %423 = math.rsqrt %422 : vector<1x15x1xf32>
    %424 = vector.broadcast %423 : vector<1x15x1xf32> to vector<1x15x32xf32>
    %425 = arith.mulf %415, %424 : vector<1x15x32xf32>
    %426 = vector.shape_cast %407 : vector<1x32xf32> to vector<1x1x32xf32>
    %427 = vector.broadcast %426 : vector<1x1x32xf32> to vector<1x15x32xf32>
    %428 = arith.mulf %425, %427 : vector<1x15x32xf32>
    %429 = vector.shape_cast %409 : vector<1x32xf32> to vector<1x1x32xf32>
    %430 = vector.broadcast %429 : vector<1x1x32xf32> to vector<1x15x32xf32>
    %431 = arith.addf %428, %430 : vector<1x15x32xf32>
    %c1_340 = arith.constant 1 : index
    %c0_341 = arith.constant 0 : index
    %c0_342 = arith.constant 0 : index
    %432 = vector.load %arg12[%c1_340, %c0_341, %c0_342] : memref<2x32x128xf32, #tpu.memory_space<vmem>>, vector<1x32x128xf32>
    %433 = vector.shape_cast %432 : vector<1x32x128xf32> to vector<32x128xf32>
    "tpu.trace_start"() <{level = 10 : i32, message = "bnd,df->bnf"}> : () -> ()
    %cst_343 = arith.constant dense<0.000000e+00> : vector<1x15x128xf32>
    %434 = tpu.matmul %431, %433, %cst_343 {dimension_numbers = #tpu.dot_dimension_numbers<[2], [0], [0, 1], [1], [0, 0, 0, 1, 1, 1], [], []>} : vector<1x15x32xf32>, vector<32x128xf32>, vector<1x15x128xf32> -> vector<1x15x128xf32>
    "tpu.trace_stop"() : () -> ()
    %c1_344 = arith.constant 1 : index
    %c0_345 = arith.constant 0 : index
    %c0_346 = arith.constant 0 : index
    %435 = vector.load %arg13[%c1_344, %c0_345, %c0_346] : memref<2x1x128xf32, #tpu.memory_space<vmem>>, vector<1x1x128xf32>
    %436 = vector.shape_cast %435 : vector<1x1x128xf32> to vector<1x128xf32>
    %437 = vector.shape_cast %436 : vector<1x128xf32> to vector<1x1x128xf32>
    %438 = vector.broadcast %437 : vector<1x1x128xf32> to vector<1x15x128xf32>
    %439 = arith.addf %434, %438 : vector<1x15x128xf32>
    %440 = arith.negf %439 : vector<1x15x128xf32>
    %441 = math.exp %440 : vector<1x15x128xf32>
    %cst_347 = arith.constant 1.000000e+00 : f32
    %442 = vector.broadcast %cst_347 : f32 to vector<1x15x128xf32>
    %443 = arith.addf %442, %441 : vector<1x15x128xf32>
    %444 = arith.divf %442, %443 : vector<1x15x128xf32>
    %445 = arith.mulf %439, %444 : vector<1x15x128xf32>
    %c1_348 = arith.constant 1 : index
    %c0_349 = arith.constant 0 : index
    %c0_350 = arith.constant 0 : index
    %446 = vector.load %arg14[%c1_348, %c0_349, %c0_350] : memref<2x128x32xf32, #tpu.memory_space<vmem>>, vector<1x128x32xf32>
    %447 = vector.shape_cast %446 : vector<1x128x32xf32> to vector<128x32xf32>
    "tpu.trace_start"() <{level = 10 : i32, message = "bnf,fd->bnd"}> : () -> ()
    %cst_351 = arith.constant dense<0.000000e+00> : vector<1x15x32xf32>
    %448 = tpu.matmul %445, %447, %cst_351 {dimension_numbers = #tpu.dot_dimension_numbers<[2], [0], [0, 1], [1], [0, 0, 0, 1, 1, 1], [], []>} : vector<1x15x128xf32>, vector<128x32xf32>, vector<1x15x32xf32> -> vector<1x15x32xf32>
    "tpu.trace_stop"() : () -> ()
    %c1_352 = arith.constant 1 : index
    %c0_353 = arith.constant 0 : index
    %c0_354 = arith.constant 0 : index
    %449 = vector.load %arg15[%c1_352, %c0_353, %c0_354] : memref<2x1x32xf32, #tpu.memory_space<vmem>>, vector<1x1x32xf32>
    %450 = vector.shape_cast %449 : vector<1x1x32xf32> to vector<1x32xf32>
    %451 = vector.shape_cast %450 : vector<1x32xf32> to vector<1x1x32xf32>
    %452 = vector.broadcast %451 : vector<1x1x32xf32> to vector<1x15x32xf32>
    %453 = arith.addf %448, %452 : vector<1x15x32xf32>
    %454 = arith.addf %431, %453 : vector<1x15x32xf32>
    %c1_355 = arith.constant 1 : index
    %c0_356 = arith.constant 0 : index
    %c0_357 = arith.constant 0 : index
    %455 = vector.load %arg16[%c1_355, %c0_356, %c0_357] : memref<2x1x32xf32, #tpu.memory_space<vmem>>, vector<1x1x32xf32>
    %456 = vector.shape_cast %455 : vector<1x1x32xf32> to vector<1x32xf32>
    %c1_358 = arith.constant 1 : index
    %c0_359 = arith.constant 0 : index
    %c0_360 = arith.constant 0 : index
    %457 = vector.load %arg17[%c1_358, %c0_359, %c0_360] : memref<2x1x32xf32, #tpu.memory_space<vmem>>, vector<1x1x32xf32>
    %458 = vector.shape_cast %457 : vector<1x1x32xf32> to vector<1x32xf32>
    %cst_361 = arith.constant dense<0.000000e+00> : vector<1x15xf32>
    %459 = vector.multi_reduction <add>, %454, %cst_361 [2] : vector<1x15x32xf32> to vector<1x15xf32>
    %460 = vector.shape_cast %459 : vector<1x15xf32> to vector<1x15x1xf32>
    %cst_362 = arith.constant 3.200000e+01 : f32
    %461 = vector.broadcast %cst_362 : f32 to vector<1x15x1xf32>
    %462 = arith.divf %460, %461 : vector<1x15x1xf32>
    %463 = vector.broadcast %462 : vector<1x15x1xf32> to vector<1x15x32xf32>
    %464 = arith.subf %454, %463 : vector<1x15x32xf32>
    %465 = arith.mulf %464, %464 : vector<1x15x32xf32>
    %cst_363 = arith.constant dense<0.000000e+00> : vector<1x15xf32>
    %466 = vector.multi_reduction <add>, %465, %cst_363 [2] : vector<1x15x32xf32> to vector<1x15xf32>
    %467 = vector.shape_cast %466 : vector<1x15xf32> to vector<1x15x1xf32>
    %cst_364 = arith.constant 3.200000e+01 : f32
    %468 = vector.broadcast %cst_364 : f32 to vector<1x15x1xf32>
    %469 = arith.divf %467, %468 : vector<1x15x1xf32>
    %cst_365 = arith.constant 9.99999974E-6 : f32
    %470 = vector.broadcast %cst_365 : f32 to vector<1x15x1xf32>
    %471 = arith.addf %469, %470 : vector<1x15x1xf32>
    %472 = math.rsqrt %471 : vector<1x15x1xf32>
    %473 = vector.broadcast %472 : vector<1x15x1xf32> to vector<1x15x32xf32>
    %474 = arith.mulf %464, %473 : vector<1x15x32xf32>
    %475 = vector.shape_cast %456 : vector<1x32xf32> to vector<1x1x32xf32>
    %476 = vector.broadcast %475 : vector<1x1x32xf32> to vector<1x15x32xf32>
    %477 = arith.mulf %474, %476 : vector<1x15x32xf32>
    %478 = vector.shape_cast %458 : vector<1x32xf32> to vector<1x1x32xf32>
    %479 = vector.broadcast %478 : vector<1x1x32xf32> to vector<1x15x32xf32>
    %480 = arith.addf %477, %479 : vector<1x15x32xf32>
    %481 = vector.extract_strided_slice %480 {offsets = [0, 0, 0], sizes = [1, 13, 32], strides = [1, 1, 1]} : vector<1x15x32xf32> to vector<1x13x32xf32>
    %c0_366 = arith.constant 0 : index
    %c0_367 = arith.constant 0 : index
    %482 = vector.load %arg18[%c0_366, %c0_367] : memref<32x48xf32, #tpu.memory_space<vmem>>, vector<32x48xf32>
    "tpu.trace_start"() <{level = 10 : i32, message = "btc,cd->btd"}> : () -> ()
    %cst_368 = arith.constant dense<0.000000e+00> : vector<1x13x48xf32>
    %483 = tpu.matmul %481, %482, %cst_368 {dimension_numbers = #tpu.dot_dimension_numbers<[2], [0], [0, 1], [1], [0, 0, 0, 1, 1, 1], [], []>} : vector<1x13x32xf32>, vector<32x48xf32>, vector<1x13x48xf32> -> vector<1x13x48xf32>
    "tpu.trace_stop"() : () -> ()
    %c0_369 = arith.constant 0 : index
    %c0_370 = arith.constant 0 : index
    %484 = vector.load %arg19[%c0_369, %c0_370] : memref<1x48xf32, #tpu.memory_space<vmem>>, vector<1x48xf32>
    %485 = vector.shape_cast %484 : vector<1x48xf32> to vector<1x1x48xf32>
    %486 = vector.broadcast %485 : vector<1x1x48xf32> to vector<1x13x48xf32>
    %487 = arith.addf %483, %486 : vector<1x13x48xf32>
    %cst_371 = arith.constant dense<0.000000e+00> : vector<1x13xf32>
    %488 = vector.multi_reduction <add>, %487, %cst_371 [2] : vector<1x13x48xf32> to vector<1x13xf32>
    %489 = vector.shape_cast %488 : vector<1x13xf32> to vector<1x13x1xf32>
    %cst_372 = arith.constant 0.020833334 : f32
    %490 = vector.broadcast %cst_372 : f32 to vector<1x13x1xf32>
    %491 = arith.mulf %489, %490 : vector<1x13x1xf32>
    %492 = vector.broadcast %491 : vector<1x13x1xf32> to vector<1x13x48xf32>
    %493 = arith.subf %487, %492 : vector<1x13x48xf32>
    %494 = arith.mulf %493, %493 : vector<1x13x48xf32>
    %cst_373 = arith.constant dense<0.000000e+00> : vector<1x13xf32>
    %495 = vector.multi_reduction <add>, %494, %cst_373 [2] : vector<1x13x48xf32> to vector<1x13xf32>
    %496 = vector.shape_cast %495 : vector<1x13xf32> to vector<1x13x1xf32>
    %cst_374 = arith.constant 0.020833334 : f32
    %497 = vector.broadcast %cst_374 : f32 to vector<1x13x1xf32>
    %498 = arith.mulf %496, %497 : vector<1x13x1xf32>
    %cst_375 = arith.constant 9.99999974E-6 : f32
    %499 = vector.broadcast %cst_375 : f32 to vector<1x13x1xf32>
    %500 = arith.addf %498, %499 : vector<1x13x1xf32>
    %501 = math.rsqrt %500 : vector<1x13x1xf32>
    %502 = vector.broadcast %501 : vector<1x13x1xf32> to vector<1x13x48xf32>
    %503 = arith.mulf %493, %502 : vector<1x13x48xf32>
    %c0_376 = arith.constant 0 : index
    %c0_377 = arith.constant 0 : index
    %504 = vector.load %arg20[%c0_376, %c0_377] : memref<1x48xf32, #tpu.memory_space<vmem>>, vector<1x48xf32>
    %505 = vector.shape_cast %504 : vector<1x48xf32> to vector<1x1x48xf32>
    %506 = vector.broadcast %505 : vector<1x1x48xf32> to vector<1x13x48xf32>
    %507 = arith.mulf %503, %506 : vector<1x13x48xf32>
    %c0_378 = arith.constant 0 : index
    %c0_379 = arith.constant 0 : index
    %508 = vector.load %arg21[%c0_378, %c0_379] : memref<1x48xf32, #tpu.memory_space<vmem>>, vector<1x48xf32>
    %509 = vector.shape_cast %508 : vector<1x48xf32> to vector<1x1x48xf32>
    %510 = vector.broadcast %509 : vector<1x1x48xf32> to vector<1x13x48xf32>
    %511 = arith.addf %507, %510 : vector<1x13x48xf32>
    %512 = arith.negf %511 : vector<1x13x48xf32>
    %513 = math.exp %512 : vector<1x13x48xf32>
    %cst_380 = arith.constant 1.000000e+00 : f32
    %514 = vector.broadcast %cst_380 : f32 to vector<1x13x48xf32>
    %515 = arith.addf %514, %513 : vector<1x13x48xf32>
    %516 = arith.divf %514, %515 : vector<1x13x48xf32>
    %517 = arith.mulf %511, %516 : vector<1x13x48xf32>
    %c0_381 = arith.constant 0 : index
    %c0_382 = arith.constant 0 : index
    %518 = vector.load %arg22[%c0_381, %c0_382] : memref<48x72xf32, #tpu.memory_space<vmem>>, vector<48x72xf32>
    "tpu.trace_start"() <{level = 10 : i32, message = "btc,cd->btd"}> : () -> ()
    %cst_383 = arith.constant dense<0.000000e+00> : vector<1x13x72xf32>
    %519 = tpu.matmul %517, %518, %cst_383 {dimension_numbers = #tpu.dot_dimension_numbers<[2], [0], [0, 1], [1], [0, 0, 0, 1, 1, 1], [], []>} : vector<1x13x48xf32>, vector<48x72xf32>, vector<1x13x72xf32> -> vector<1x13x72xf32>
    "tpu.trace_stop"() : () -> ()
    %c0_384 = arith.constant 0 : index
    %c0_385 = arith.constant 0 : index
    %520 = vector.load %arg23[%c0_384, %c0_385] : memref<1x72xf32, #tpu.memory_space<vmem>>, vector<1x72xf32>
    %521 = vector.shape_cast %520 : vector<1x72xf32> to vector<1x1x72xf32>
    %522 = vector.broadcast %521 : vector<1x1x72xf32> to vector<1x13x72xf32>
    %523 = arith.addf %519, %522 : vector<1x13x72xf32>
    %cst_386 = arith.constant dense<0.000000e+00> : vector<1x13xf32>
    %524 = vector.multi_reduction <add>, %523, %cst_386 [2] : vector<1x13x72xf32> to vector<1x13xf32>
    %525 = vector.shape_cast %524 : vector<1x13xf32> to vector<1x13x1xf32>
    %cst_387 = arith.constant 0.013888889 : f32
    %526 = vector.broadcast %cst_387 : f32 to vector<1x13x1xf32>
    %527 = arith.mulf %525, %526 : vector<1x13x1xf32>
    %528 = vector.broadcast %527 : vector<1x13x1xf32> to vector<1x13x72xf32>
    %529 = arith.subf %523, %528 : vector<1x13x72xf32>
    %530 = arith.mulf %529, %529 : vector<1x13x72xf32>
    %cst_388 = arith.constant dense<0.000000e+00> : vector<1x13xf32>
    %531 = vector.multi_reduction <add>, %530, %cst_388 [2] : vector<1x13x72xf32> to vector<1x13xf32>
    %532 = vector.shape_cast %531 : vector<1x13xf32> to vector<1x13x1xf32>
    %cst_389 = arith.constant 0.013888889 : f32
    %533 = vector.broadcast %cst_389 : f32 to vector<1x13x1xf32>
    %534 = arith.mulf %532, %533 : vector<1x13x1xf32>
    %cst_390 = arith.constant 9.99999974E-6 : f32
    %535 = vector.broadcast %cst_390 : f32 to vector<1x13x1xf32>
    %536 = arith.addf %534, %535 : vector<1x13x1xf32>
    %537 = math.rsqrt %536 : vector<1x13x1xf32>
    %538 = vector.broadcast %537 : vector<1x13x1xf32> to vector<1x13x72xf32>
    %539 = arith.mulf %529, %538 : vector<1x13x72xf32>
    %c0_391 = arith.constant 0 : index
    %c0_392 = arith.constant 0 : index
    %540 = vector.load %arg24[%c0_391, %c0_392] : memref<1x72xf32, #tpu.memory_space<vmem>>, vector<1x72xf32>
    %541 = vector.shape_cast %540 : vector<1x72xf32> to vector<1x1x72xf32>
    %542 = vector.broadcast %541 : vector<1x1x72xf32> to vector<1x13x72xf32>
    %543 = arith.mulf %539, %542 : vector<1x13x72xf32>
    %c0_393 = arith.constant 0 : index
    %c0_394 = arith.constant 0 : index
    %544 = vector.load %arg25[%c0_393, %c0_394] : memref<1x72xf32, #tpu.memory_space<vmem>>, vector<1x72xf32>
    %545 = vector.shape_cast %544 : vector<1x72xf32> to vector<1x1x72xf32>
    %546 = vector.broadcast %545 : vector<1x1x72xf32> to vector<1x13x72xf32>
    %547 = arith.addf %543, %546 : vector<1x13x72xf32>
    %548 = arith.negf %547 : vector<1x13x72xf32>
    %549 = math.exp %548 : vector<1x13x72xf32>
    %cst_395 = arith.constant 1.000000e+00 : f32
    %550 = vector.broadcast %cst_395 : f32 to vector<1x13x72xf32>
    %551 = arith.addf %550, %549 : vector<1x13x72xf32>
    %552 = arith.divf %550, %551 : vector<1x13x72xf32>
    %553 = arith.mulf %547, %552 : vector<1x13x72xf32>
    %c0_396 = arith.constant 0 : index
    %c0_397 = arith.constant 0 : index
    %554 = vector.load %arg26[%c0_396, %c0_397] : memref<72x128xf32, #tpu.memory_space<vmem>>, vector<72x128xf32>
    "tpu.trace_start"() <{level = 10 : i32, message = "btc,cd->btd"}> : () -> ()
    %cst_398 = arith.constant dense<0.000000e+00> : vector<1x13x128xf32>
    %555 = tpu.matmul %553, %554, %cst_398 {dimension_numbers = #tpu.dot_dimension_numbers<[2], [0], [0, 1], [1], [0, 0, 0, 1, 1, 1], [], []>} : vector<1x13x72xf32>, vector<72x128xf32>, vector<1x13x128xf32> -> vector<1x13x128xf32>
    "tpu.trace_stop"() : () -> ()
    %c0_399 = arith.constant 0 : index
    %c0_400 = arith.constant 0 : index
    %556 = vector.load %arg27[%c0_399, %c0_400] : memref<1x128xf32, #tpu.memory_space<vmem>>, vector<1x128xf32>
    %557 = vector.shape_cast %556 : vector<1x128xf32> to vector<1x1x128xf32>
    %558 = vector.broadcast %557 : vector<1x1x128xf32> to vector<1x13x128xf32>
    %559 = arith.addf %555, %558 : vector<1x13x128xf32>
    %cst_401 = arith.constant dense<0.000000e+00> : vector<1x13xf32>
    %560 = vector.multi_reduction <add>, %559, %cst_401 [2] : vector<1x13x128xf32> to vector<1x13xf32>
    %561 = vector.shape_cast %560 : vector<1x13xf32> to vector<1x13x1xf32>
    %cst_402 = arith.constant 8.620690e-03 : f32
    %562 = vector.broadcast %cst_402 : f32 to vector<1x13x1xf32>
    %563 = arith.mulf %561, %562 : vector<1x13x1xf32>
    %564 = vector.broadcast %563 : vector<1x13x1xf32> to vector<1x13x128xf32>
    %565 = arith.subf %559, %564 : vector<1x13x128xf32>
    %566 = arith.mulf %565, %565 : vector<1x13x128xf32>
    %cst_403 = arith.constant dense<0.000000e+00> : vector<1x13xf32>
    %567 = vector.multi_reduction <add>, %566, %cst_403 [2] : vector<1x13x128xf32> to vector<1x13xf32>
    %568 = vector.shape_cast %567 : vector<1x13xf32> to vector<1x13x1xf32>
    %569 = arith.mulf %563, %563 : vector<1x13x1xf32>
    %cst_404 = arith.constant 1.200000e+01 : f32
    %570 = vector.broadcast %cst_404 : f32 to vector<1x13x1xf32>
    %571 = arith.mulf %570, %569 : vector<1x13x1xf32>
    %572 = arith.subf %568, %571 : vector<1x13x1xf32>
    %cst_405 = arith.constant 8.620690e-03 : f32
    %573 = vector.broadcast %cst_405 : f32 to vector<1x13x1xf32>
    %574 = arith.mulf %572, %573 : vector<1x13x1xf32>
    %cst_406 = arith.constant 9.99999974E-6 : f32
    %575 = vector.broadcast %cst_406 : f32 to vector<1x13x1xf32>
    %576 = arith.addf %574, %575 : vector<1x13x1xf32>
    %577 = math.rsqrt %576 : vector<1x13x1xf32>
    %578 = vector.broadcast %577 : vector<1x13x1xf32> to vector<1x13x128xf32>
    %579 = arith.mulf %565, %578 : vector<1x13x128xf32>
    %c0_407 = arith.constant 0 : index
    %c0_408 = arith.constant 0 : index
    %580 = vector.load %arg28[%c0_407, %c0_408] : memref<1x128xf32, #tpu.memory_space<vmem>>, vector<1x128xf32>
    %581 = vector.shape_cast %580 : vector<1x128xf32> to vector<1x1x128xf32>
    %582 = vector.broadcast %581 : vector<1x1x128xf32> to vector<1x13x128xf32>
    %583 = arith.mulf %579, %582 : vector<1x13x128xf32>
    %c0_409 = arith.constant 0 : index
    %c0_410 = arith.constant 0 : index
    %584 = vector.load %arg29[%c0_409, %c0_410] : memref<1x128xf32, #tpu.memory_space<vmem>>, vector<1x128xf32>
    %585 = vector.shape_cast %584 : vector<1x128xf32> to vector<1x1x128xf32>
    %586 = vector.broadcast %585 : vector<1x1x128xf32> to vector<1x13x128xf32>
    %587 = arith.addf %583, %586 : vector<1x13x128xf32>
    %588 = arith.negf %587 : vector<1x13x128xf32>
    %589 = math.exp %588 : vector<1x13x128xf32>
    %cst_411 = arith.constant 1.000000e+00 : f32
    %590 = vector.broadcast %cst_411 : f32 to vector<1x13x128xf32>
    %591 = arith.addf %590, %589 : vector<1x13x128xf32>
    %592 = arith.divf %590, %591 : vector<1x13x128xf32>
    %593 = arith.mulf %587, %592 : vector<1x13x128xf32>
    %c0_412 = arith.constant 0 : index
    %c0_413 = arith.constant 0 : index
    %594 = vector.load %arg30[%c0_412, %c0_413] : memref<128x256xf32, #tpu.memory_space<vmem>>, vector<128x256xf32>
    "tpu.trace_start"() <{level = 10 : i32, message = "btc,cd->btd"}> : () -> ()
    %cst_414 = arith.constant dense<0.000000e+00> : vector<1x13x256xf32>
    %595 = tpu.matmul %593, %594, %cst_414 {dimension_numbers = #tpu.dot_dimension_numbers<[2], [0], [0, 1], [1], [0, 0, 0, 1, 1, 1], [], []>} : vector<1x13x128xf32>, vector<128x256xf32>, vector<1x13x256xf32> -> vector<1x13x256xf32>
    "tpu.trace_stop"() : () -> ()
    %c0_415 = arith.constant 0 : index
    %c0_416 = arith.constant 0 : index
    %596 = vector.load %arg31[%c0_415, %c0_416] : memref<1x256xf32, #tpu.memory_space<vmem>>, vector<1x256xf32>
    %597 = vector.shape_cast %596 : vector<1x256xf32> to vector<1x1x256xf32>
    %598 = vector.broadcast %597 : vector<1x1x256xf32> to vector<1x13x256xf32>
    %599 = arith.addf %595, %598 : vector<1x13x256xf32>
    %600 = math.tanh %599 : vector<1x13x256xf32>
    %c0_417 = arith.constant 0 : index
    %c0_418 = arith.constant 0 : index
    %c0_419 = arith.constant 0 : index
    %601 = vector.load %arg46[%c0_417, %c0_418, %c0_419] : memref<1x13x256xf32, #tpu.memory_space<vmem>>, vector<1x13x256xf32>
    tpu.vector_store %arg46[%c0_417, %c0_418, %c0_419], %600 {strides = array<i32>} : memref<1x13x256xf32, #tpu.memory_space<vmem>>, vector<1x13x256xf32>,
    %602 = vector.extract_strided_slice %480 {offsets = [0, 13, 0], sizes = [1, 2, 32], strides = [1, 1, 1]} : vector<1x15x32xf32> to vector<1x2x32xf32>
    %c0_420 = arith.constant 0 : index
    %c0_421 = arith.constant 0 : index
    %603 = vector.load %arg32[%c0_420, %c0_421] : memref<32x48xf32, #tpu.memory_space<vmem>>, vector<32x48xf32>
    "tpu.trace_start"() <{level = 10 : i32, message = "btc,cd->btd"}> : () -> ()
    %cst_422 = arith.constant dense<0.000000e+00> : vector<1x2x48xf32>
    %604 = tpu.matmul %602, %603, %cst_422 {dimension_numbers = #tpu.dot_dimension_numbers<[2], [0], [0, 1], [1], [0, 0, 0, 1, 1, 1], [], []>} : vector<1x2x32xf32>, vector<32x48xf32>, vector<1x2x48xf32> -> vector<1x2x48xf32>
    "tpu.trace_stop"() : () -> ()
    %c0_423 = arith.constant 0 : index
    %c0_424 = arith.constant 0 : index
    %605 = vector.load %arg33[%c0_423, %c0_424] : memref<1x48xf32, #tpu.memory_space<vmem>>, vector<1x48xf32>
    %606 = vector.shape_cast %605 : vector<1x48xf32> to vector<1x1x48xf32>
    %607 = vector.broadcast %606 : vector<1x1x48xf32> to vector<1x2x48xf32>
    %608 = arith.addf %604, %607 : vector<1x2x48xf32>
    %cst_425 = arith.constant dense<0.000000e+00> : vector<1x2xf32>
    %609 = vector.multi_reduction <add>, %608, %cst_425 [2] : vector<1x2x48xf32> to vector<1x2xf32>
    %610 = vector.shape_cast %609 : vector<1x2xf32> to vector<1x2x1xf32>
    %cst_426 = arith.constant 0.020833334 : f32
    %611 = vector.broadcast %cst_426 : f32 to vector<1x2x1xf32>
    %612 = arith.mulf %610, %611 : vector<1x2x1xf32>
    %613 = vector.broadcast %612 : vector<1x2x1xf32> to vector<1x2x48xf32>
    %614 = arith.subf %608, %613 : vector<1x2x48xf32>
    %615 = arith.mulf %614, %614 : vector<1x2x48xf32>
    %cst_427 = arith.constant dense<0.000000e+00> : vector<1x2xf32>
    %616 = vector.multi_reduction <add>, %615, %cst_427 [2] : vector<1x2x48xf32> to vector<1x2xf32>
    %617 = vector.shape_cast %616 : vector<1x2xf32> to vector<1x2x1xf32>
    %cst_428 = arith.constant 0.020833334 : f32
    %618 = vector.broadcast %cst_428 : f32 to vector<1x2x1xf32>
    %619 = arith.mulf %617, %618 : vector<1x2x1xf32>
    %cst_429 = arith.constant 9.99999974E-6 : f32
    %620 = vector.broadcast %cst_429 : f32 to vector<1x2x1xf32>
    %621 = arith.addf %619, %620 : vector<1x2x1xf32>
    %622 = math.rsqrt %621 : vector<1x2x1xf32>
    %623 = vector.broadcast %622 : vector<1x2x1xf32> to vector<1x2x48xf32>
    %624 = arith.mulf %614, %623 : vector<1x2x48xf32>
    %c0_430 = arith.constant 0 : index
    %c0_431 = arith.constant 0 : index
    %625 = vector.load %arg34[%c0_430, %c0_431] : memref<1x48xf32, #tpu.memory_space<vmem>>, vector<1x48xf32>
    %626 = vector.shape_cast %625 : vector<1x48xf32> to vector<1x1x48xf32>
    %627 = vector.broadcast %626 : vector<1x1x48xf32> to vector<1x2x48xf32>
    %628 = arith.mulf %624, %627 : vector<1x2x48xf32>
    %c0_432 = arith.constant 0 : index
    %c0_433 = arith.constant 0 : index
    %629 = vector.load %arg35[%c0_432, %c0_433] : memref<1x48xf32, #tpu.memory_space<vmem>>, vector<1x48xf32>
    %630 = vector.shape_cast %629 : vector<1x48xf32> to vector<1x1x48xf32>
    %631 = vector.broadcast %630 : vector<1x1x48xf32> to vector<1x2x48xf32>
    %632 = arith.addf %628, %631 : vector<1x2x48xf32>
    %633 = arith.negf %632 : vector<1x2x48xf32>
    %634 = math.exp %633 : vector<1x2x48xf32>
    %cst_434 = arith.constant 1.000000e+00 : f32
    %635 = vector.broadcast %cst_434 : f32 to vector<1x2x48xf32>
    %636 = arith.addf %635, %634 : vector<1x2x48xf32>
    %637 = arith.divf %635, %636 : vector<1x2x48xf32>
    %638 = arith.mulf %632, %637 : vector<1x2x48xf32>
    %c0_435 = arith.constant 0 : index
    %c0_436 = arith.constant 0 : index
    %639 = vector.load %arg36[%c0_435, %c0_436] : memref<48x72xf32, #tpu.memory_space<vmem>>, vector<48x72xf32>
    "tpu.trace_start"() <{level = 10 : i32, message = "btc,cd->btd"}> : () -> ()
    %cst_437 = arith.constant dense<0.000000e+00> : vector<1x2x72xf32>
    %640 = tpu.matmul %638, %639, %cst_437 {dimension_numbers = #tpu.dot_dimension_numbers<[2], [0], [0, 1], [1], [0, 0, 0, 1, 1, 1], [], []>} : vector<1x2x48xf32>, vector<48x72xf32>, vector<1x2x72xf32> -> vector<1x2x72xf32>
    "tpu.trace_stop"() : () -> ()
    %c0_438 = arith.constant 0 : index
    %c0_439 = arith.constant 0 : index
    %641 = vector.load %arg37[%c0_438, %c0_439] : memref<1x72xf32, #tpu.memory_space<vmem>>, vector<1x72xf32>
    %642 = vector.shape_cast %641 : vector<1x72xf32> to vector<1x1x72xf32>
    %643 = vector.broadcast %642 : vector<1x1x72xf32> to vector<1x2x72xf32>
    %644 = arith.addf %640, %643 : vector<1x2x72xf32>
    %cst_440 = arith.constant dense<0.000000e+00> : vector<1x2xf32>
    %645 = vector.multi_reduction <add>, %644, %cst_440 [2] : vector<1x2x72xf32> to vector<1x2xf32>
    %646 = vector.shape_cast %645 : vector<1x2xf32> to vector<1x2x1xf32>
    %cst_441 = arith.constant 0.013888889 : f32
    %647 = vector.broadcast %cst_441 : f32 to vector<1x2x1xf32>
    %648 = arith.mulf %646, %647 : vector<1x2x1xf32>
    %649 = vector.broadcast %648 : vector<1x2x1xf32> to vector<1x2x72xf32>
    %650 = arith.subf %644, %649 : vector<1x2x72xf32>
    %651 = arith.mulf %650, %650 : vector<1x2x72xf32>
    %cst_442 = arith.constant dense<0.000000e+00> : vector<1x2xf32>
    %652 = vector.multi_reduction <add>, %651, %cst_442 [2] : vector<1x2x72xf32> to vector<1x2xf32>
    %653 = vector.shape_cast %652 : vector<1x2xf32> to vector<1x2x1xf32>
    %cst_443 = arith.constant 0.013888889 : f32
    %654 = vector.broadcast %cst_443 : f32 to vector<1x2x1xf32>
    %655 = arith.mulf %653, %654 : vector<1x2x1xf32>
    %cst_444 = arith.constant 9.99999974E-6 : f32
    %656 = vector.broadcast %cst_444 : f32 to vector<1x2x1xf32>
    %657 = arith.addf %655, %656 : vector<1x2x1xf32>
    %658 = math.rsqrt %657 : vector<1x2x1xf32>
    %659 = vector.broadcast %658 : vector<1x2x1xf32> to vector<1x2x72xf32>
    %660 = arith.mulf %650, %659 : vector<1x2x72xf32>
    %c0_445 = arith.constant 0 : index
    %c0_446 = arith.constant 0 : index
    %661 = vector.load %arg38[%c0_445, %c0_446] : memref<1x72xf32, #tpu.memory_space<vmem>>, vector<1x72xf32>
    %662 = vector.shape_cast %661 : vector<1x72xf32> to vector<1x1x72xf32>
    %663 = vector.broadcast %662 : vector<1x1x72xf32> to vector<1x2x72xf32>
    %664 = arith.mulf %660, %663 : vector<1x2x72xf32>
    %c0_447 = arith.constant 0 : index
    %c0_448 = arith.constant 0 : index
    %665 = vector.load %arg39[%c0_447, %c0_448] : memref<1x72xf32, #tpu.memory_space<vmem>>, vector<1x72xf32>
    %666 = vector.shape_cast %665 : vector<1x72xf32> to vector<1x1x72xf32>
    %667 = vector.broadcast %666 : vector<1x1x72xf32> to vector<1x2x72xf32>
    %668 = arith.addf %664, %667 : vector<1x2x72xf32>
    %669 = arith.negf %668 : vector<1x2x72xf32>
    %670 = math.exp %669 : vector<1x2x72xf32>
    %cst_449 = arith.constant 1.000000e+00 : f32
    %671 = vector.broadcast %cst_449 : f32 to vector<1x2x72xf32>
    %672 = arith.addf %671, %670 : vector<1x2x72xf32>
    %673 = arith.divf %671, %672 : vector<1x2x72xf32>
    %674 = arith.mulf %668, %673 : vector<1x2x72xf32>
    %c0_450 = arith.constant 0 : index
    %c0_451 = arith.constant 0 : index
    %675 = vector.load %arg40[%c0_450, %c0_451] : memref<72x128xf32, #tpu.memory_space<vmem>>, vector<72x128xf32>
    "tpu.trace_start"() <{level = 10 : i32, message = "btc,cd->btd"}> : () -> ()
    %cst_452 = arith.constant dense<0.000000e+00> : vector<1x2x128xf32>
    %676 = tpu.matmul %674, %675, %cst_452 {dimension_numbers = #tpu.dot_dimension_numbers<[2], [0], [0, 1], [1], [0, 0, 0, 1, 1, 1], [], []>} : vector<1x2x72xf32>, vector<72x128xf32>, vector<1x2x128xf32> -> vector<1x2x128xf32>
    "tpu.trace_stop"() : () -> ()
    %c0_453 = arith.constant 0 : index
    %c0_454 = arith.constant 0 : index
    %677 = vector.load %arg41[%c0_453, %c0_454] : memref<1x128xf32, #tpu.memory_space<vmem>>, vector<1x128xf32>
    %678 = vector.shape_cast %677 : vector<1x128xf32> to vector<1x1x128xf32>
    %679 = vector.broadcast %678 : vector<1x1x128xf32> to vector<1x2x128xf32>
    %680 = arith.addf %676, %679 : vector<1x2x128xf32>
    %cst_455 = arith.constant dense<0.000000e+00> : vector<1x2xf32>
    %681 = vector.multi_reduction <add>, %680, %cst_455 [2] : vector<1x2x128xf32> to vector<1x2xf32>
    %682 = vector.shape_cast %681 : vector<1x2xf32> to vector<1x2x1xf32>
    %cst_456 = arith.constant 8.620690e-03 : f32
    %683 = vector.broadcast %cst_456 : f32 to vector<1x2x1xf32>
    %684 = arith.mulf %682, %683 : vector<1x2x1xf32>
    %685 = vector.broadcast %684 : vector<1x2x1xf32> to vector<1x2x128xf32>
    %686 = arith.subf %680, %685 : vector<1x2x128xf32>
    %687 = arith.mulf %686, %686 : vector<1x2x128xf32>
    %cst_457 = arith.constant dense<0.000000e+00> : vector<1x2xf32>
    %688 = vector.multi_reduction <add>, %687, %cst_457 [2] : vector<1x2x128xf32> to vector<1x2xf32>
    %689 = vector.shape_cast %688 : vector<1x2xf32> to vector<1x2x1xf32>
    %690 = arith.mulf %684, %684 : vector<1x2x1xf32>
    %cst_458 = arith.constant 1.200000e+01 : f32
    %691 = vector.broadcast %cst_458 : f32 to vector<1x2x1xf32>
    %692 = arith.mulf %691, %690 : vector<1x2x1xf32>
    %693 = arith.subf %689, %692 : vector<1x2x1xf32>
    %cst_459 = arith.constant 8.620690e-03 : f32
    %694 = vector.broadcast %cst_459 : f32 to vector<1x2x1xf32>
    %695 = arith.mulf %693, %694 : vector<1x2x1xf32>
    %cst_460 = arith.constant 9.99999974E-6 : f32
    %696 = vector.broadcast %cst_460 : f32 to vector<1x2x1xf32>
    %697 = arith.addf %695, %696 : vector<1x2x1xf32>
    %698 = math.rsqrt %697 : vector<1x2x1xf32>
    %699 = vector.broadcast %698 : vector<1x2x1xf32> to vector<1x2x128xf32>
    %700 = arith.mulf %686, %699 : vector<1x2x128xf32>
    %c0_461 = arith.constant 0 : index
    %c0_462 = arith.constant 0 : index
    %701 = vector.load %arg42[%c0_461, %c0_462] : memref<1x128xf32, #tpu.memory_space<vmem>>, vector<1x128xf32>
    %702 = vector.shape_cast %701 : vector<1x128xf32> to vector<1x1x128xf32>
    %703 = vector.broadcast %702 : vector<1x1x128xf32> to vector<1x2x128xf32>
    %704 = arith.mulf %700, %703 : vector<1x2x128xf32>
    %c0_463 = arith.constant 0 : index
    %c0_464 = arith.constant 0 : index
    %705 = vector.load %arg43[%c0_463, %c0_464] : memref<1x128xf32, #tpu.memory_space<vmem>>, vector<1x128xf32>
    %706 = vector.shape_cast %705 : vector<1x128xf32> to vector<1x1x128xf32>
    %707 = vector.broadcast %706 : vector<1x1x128xf32> to vector<1x2x128xf32>
    %708 = arith.addf %704, %707 : vector<1x2x128xf32>
    %709 = arith.negf %708 : vector<1x2x128xf32>
    %710 = math.exp %709 : vector<1x2x128xf32>
    %cst_465 = arith.constant 1.000000e+00 : f32
    %711 = vector.broadcast %cst_465 : f32 to vector<1x2x128xf32>
    %712 = arith.addf %711, %710 : vector<1x2x128xf32>
    %713 = arith.divf %711, %712 : vector<1x2x128xf32>
    %714 = arith.mulf %708, %713 : vector<1x2x128xf32>
    %c0_466 = arith.constant 0 : index
    %c0_467 = arith.constant 0 : index
    %715 = vector.load %arg44[%c0_466, %c0_467] : memref<128x256xf32, #tpu.memory_space<vmem>>, vector<128x256xf32>
    "tpu.trace_start"() <{level = 10 : i32, message = "btc,cd->btd"}> : () -> ()
    %cst_468 = arith.constant dense<0.000000e+00> : vector<1x2x256xf32>
    %716 = tpu.matmul %714, %715, %cst_468 {dimension_numbers = #tpu.dot_dimension_numbers<[2], [0], [0, 1], [1], [0, 0, 0, 1, 1, 1], [], []>} : vector<1x2x128xf32>, vector<128x256xf32>, vector<1x2x256xf32> -> vector<1x2x256xf32>
    "tpu.trace_stop"() : () -> ()
    %c0_469 = arith.constant 0 : index
    %c0_470 = arith.constant 0 : index
    %717 = vector.load %arg45[%c0_469, %c0_470] : memref<1x256xf32, #tpu.memory_space<vmem>>, vector<1x256xf32>
    %718 = vector.shape_cast %717 : vector<1x256xf32> to vector<1x1x256xf32>
    %719 = vector.broadcast %718 : vector<1x1x256xf32> to vector<1x2x256xf32>
    %720 = arith.addf %716, %719 : vector<1x2x256xf32>
    %721 = math.tanh %720 : vector<1x2x256xf32>
    %c0_471 = arith.constant 0 : index
    %c0_472 = arith.constant 0 : index
    %c0_473 = arith.constant 0 : index
    %722 = vector.load %arg47[%c0_471, %c0_472, %c0_473] : memref<1x2x256xf32, #tpu.memory_space<vmem>>, vector<1x2x256xf32>
    tpu.vector_store %arg47[%c0_471, %c0_472, %c0_473], %721 {strides = array<i32>} : memref<1x2x256xf32, #tpu.memory_space<vmem>>, vector<1x2x256xf32>,
    return
  }
  func.func @transform_0(%arg0: i32) -> (i32, i32, i32) {
    %c0_i32 = arith.constant 0 : i32
    %c0_i32_0 = arith.constant 0 : i32
    %c0_i32_1 = arith.constant 0 : i32
    return %arg0, %c0_i32, %c0_i32_0 : i32, i32, i32
  }
  func.func @transform_1(%arg0: i32) -> (i32, i32, i32, i32) {
    %c0_i32 = arith.constant 0 : i32
    %c0_i32_0 = arith.constant 0 : i32
    %c0_i32_1 = arith.constant 0 : i32
    %c0_i32_2 = arith.constant 0 : i32
    %c0_i32_3 = arith.constant 0 : i32
    return %c0_i32, %c0_i32_0, %c0_i32_1, %c0_i32_2 : i32, i32, i32, i32
  }
  func.func @transform_2(%arg0: i32) -> (i32, i32, i32, i32) {
    %c0_i32 = arith.constant 0 : i32
    %c0_i32_0 = arith.constant 0 : i32
    %c0_i32_1 = arith.constant 0 : i32
    %c0_i32_2 = arith.constant 0 : i32
    %c0_i32_3 = arith.constant 0 : i32
    return %c0_i32, %c0_i32_0, %c0_i32_1, %c0_i32_2 : i32, i32, i32, i32
  }
  func.func @transform_3(%arg0: i32) -> (i32, i32, i32, i32) {
    %c0_i32 = arith.constant 0 : i32
    %c0_i32_0 = arith.constant 0 : i32
    %c0_i32_1 = arith.constant 0 : i32
    %c0_i32_2 = arith.constant 0 : i32
    %c0_i32_3 = arith.constant 0 : i32
    return %c0_i32, %c0_i32_0, %c0_i32_1, %c0_i32_2 : i32, i32, i32, i32
  }
  func.func @transform_4(%arg0: i32) -> (i32, i32, i32, i32) {
    %c0_i32 = arith.constant 0 : i32
    %c0_i32_0 = arith.constant 0 : i32
    %c0_i32_1 = arith.constant 0 : i32
    %c0_i32_2 = arith.constant 0 : i32
    %c0_i32_3 = arith.constant 0 : i32
    return %c0_i32, %c0_i32_0, %c0_i32_1, %c0_i32_2 : i32, i32, i32, i32
  }
  func.func @transform_5(%arg0: i32) -> (i32, i32, i32, i32) {
    %c0_i32 = arith.constant 0 : i32
    %c0_i32_0 = arith.constant 0 : i32
    %c0_i32_1 = arith.constant 0 : i32
    %c0_i32_2 = arith.constant 0 : i32
    %c0_i32_3 = arith.constant 0 : i32
    return %c0_i32, %c0_i32_0, %c0_i32_1, %c0_i32_2 : i32, i32, i32, i32
  }
  func.func @transform_6(%arg0: i32) -> (i32, i32, i32, i32) {
    %c0_i32 = arith.constant 0 : i32
    %c0_i32_0 = arith.constant 0 : i32
    %c0_i32_1 = arith.constant 0 : i32
    %c0_i32_2 = arith.constant 0 : i32
    %c0_i32_3 = arith.constant 0 : i32
    return %c0_i32, %c0_i32_0, %c0_i32_1, %c0_i32_2 : i32, i32, i32, i32
  }
  func.func @transform_7(%arg0: i32) -> (i32, i32, i32, i32) {
    %c0_i32 = arith.constant 0 : i32
    %c0_i32_0 = arith.constant 0 : i32
    %c0_i32_1 = arith.constant 0 : i32
    %c0_i32_2 = arith.constant 0 : i32
    %c0_i32_3 = arith.constant 0 : i32
    return %c0_i32, %c0_i32_0, %c0_i32_1, %c0_i32_2 : i32, i32, i32, i32
  }
  func.func @transform_8(%arg0: i32) -> (i32, i32, i32) {
    %c0_i32 = arith.constant 0 : i32
    %c0_i32_0 = arith.constant 0 : i32
    %c0_i32_1 = arith.constant 0 : i32
    %c0_i32_2 = arith.constant 0 : i32
    return %c0_i32, %c0_i32_0, %c0_i32_1 : i32, i32, i32
  }
  func.func @transform_9(%arg0: i32) -> (i32, i32, i32) {
    %c0_i32 = arith.constant 0 : i32
    %c0_i32_0 = arith.constant 0 : i32
    %c0_i32_1 = arith.constant 0 : i32
    %c0_i32_2 = arith.constant 0 : i32
    return %c0_i32, %c0_i32_0, %c0_i32_1 : i32, i32, i32
  }
  func.func @transform_10(%arg0: i32) -> (i32, i32, i32) {
    %c0_i32 = arith.constant 0 : i32
    %c0_i32_0 = arith.constant 0 : i32
    %c0_i32_1 = arith.constant 0 : i32
    %c0_i32_2 = arith.constant 0 : i32
    return %c0_i32, %c0_i32_0, %c0_i32_1 : i32, i32, i32
  }
  func.func @transform_11(%arg0: i32) -> (i32, i32, i32) {
    %c0_i32 = arith.constant 0 : i32
    %c0_i32_0 = arith.constant 0 : i32
    %c0_i32_1 = arith.constant 0 : i32
    %c0_i32_2 = arith.constant 0 : i32
    return %c0_i32, %c0_i32_0, %c0_i32_1 : i32, i32, i32
  }
  func.func @transform_12(%arg0: i32) -> (i32, i32, i32) {
    %c0_i32 = arith.constant 0 : i32
    %c0_i32_0 = arith.constant 0 : i32
    %c0_i32_1 = arith.constant 0 : i32
    %c0_i32_2 = arith.constant 0 : i32
    return %c0_i32, %c0_i32_0, %c0_i32_1 : i32, i32, i32
  }
  func.func @transform_13(%arg0: i32) -> (i32, i32, i32) {
    %c0_i32 = arith.constant 0 : i32
    %c0_i32_0 = arith.constant 0 : i32
    %c0_i32_1 = arith.constant 0 : i32
    %c0_i32_2 = arith.constant 0 : i32
    return %c0_i32, %c0_i32_0, %c0_i32_1 : i32, i32, i32
  }
  func.func @transform_14(%arg0: i32) -> (i32, i32, i32) {
    %c0_i32 = arith.constant 0 : i32
    %c0_i32_0 = arith.constant 0 : i32
    %c0_i32_1 = arith.constant 0 : i32
    %c0_i32_2 = arith.constant 0 : i32
    return %c0_i32, %c0_i32_0, %c0_i32_1 : i32, i32, i32
  }
  func.func @transform_15(%arg0: i32) -> (i32, i32, i32) {
    %c0_i32 = arith.constant 0 : i32
    %c0_i32_0 = arith.constant 0 : i32
    %c0_i32_1 = arith.constant 0 : i32
    %c0_i32_2 = arith.constant 0 : i32
    return %c0_i32, %c0_i32_0, %c0_i32_1 : i32, i32, i32
  }
  func.func @transform_16(%arg0: i32) -> (i32, i32, i32) {
    %c0_i32 = arith.constant 0 : i32
    %c0_i32_0 = arith.constant 0 : i32
    %c0_i32_1 = arith.constant 0 : i32
    %c0_i32_2 = arith.constant 0 : i32
    return %c0_i32, %c0_i32_0, %c0_i32_1 : i32, i32, i32
  }
  func.func @transform_17(%arg0: i32) -> (i32, i32) {
    %c0_i32 = arith.constant 0 : i32
    %c0_i32_0 = arith.constant 0 : i32
    %c0_i32_1 = arith.constant 0 : i32
    return %c0_i32, %c0_i32_0 : i32, i32
  }
  func.func @transform_18(%arg0: i32) -> (i32, i32) {
    %c0_i32 = arith.constant 0 : i32
    %c0_i32_0 = arith.constant 0 : i32
    %c0_i32_1 = arith.constant 0 : i32
    return %c0_i32, %c0_i32_0 : i32, i32
  }
  func.func @transform_19(%arg0: i32) -> (i32, i32) {
    %c0_i32 = arith.constant 0 : i32
    %c0_i32_0 = arith.constant 0 : i32
    %c0_i32_1 = arith.constant 0 : i32
    return %c0_i32, %c0_i32_0 : i32, i32
  }
  func.func @transform_20(%arg0: i32) -> (i32, i32) {
    %c0_i32 = arith.constant 0 : i32
    %c0_i32_0 = arith.constant 0 : i32
    %c0_i32_1 = arith.constant 0 : i32
    return %c0_i32, %c0_i32_0 : i32, i32
  }
  func.func @transform_21(%arg0: i32) -> (i32, i32) {
    %c0_i32 = arith.constant 0 : i32
    %c0_i32_0 = arith.constant 0 : i32
    %c0_i32_1 = arith.constant 0 : i32
    return %c0_i32, %c0_i32_0 : i32, i32
  }
  func.func @transform_22(%arg0: i32) -> (i32, i32) {
    %c0_i32 = arith.constant 0 : i32
    %c0_i32_0 = arith.constant 0 : i32
    %c0_i32_1 = arith.constant 0 : i32
    return %c0_i32, %c0_i32_0 : i32, i32
  }
  func.func @transform_23(%arg0: i32) -> (i32, i32) {
    %c0_i32 = arith.constant 0 : i32
    %c0_i32_0 = arith.constant 0 : i32
    %c0_i32_1 = arith.constant 0 : i32
    return %c0_i32, %c0_i32_0 : i32, i32
  }
  func.func @transform_24(%arg0: i32) -> (i32, i32) {
    %c0_i32 = arith.constant 0 : i32
    %c0_i32_0 = arith.constant 0 : i32
    %c0_i32_1 = arith.constant 0 : i32
    return %c0_i32, %c0_i32_0 : i32, i32
  }
  func.func @transform_25(%arg0: i32) -> (i32, i32) {
    %c0_i32 = arith.constant 0 : i32
    %c0_i32_0 = arith.constant 0 : i32
    %c0_i32_1 = arith.constant 0 : i32
    return %c0_i32, %c0_i32_0 : i32, i32
  }
  func.func @transform_26(%arg0: i32) -> (i32, i32) {
    %c0_i32 = arith.constant 0 : i32
    %c0_i32_0 = arith.constant 0 : i32
    %c0_i32_1 = arith.constant 0 : i32
    return %c0_i32, %c0_i32_0 : i32, i32
  }
  func.func @transform_27(%arg0: i32) -> (i32, i32) {
    %c0_i32 = arith.constant 0 : i32
    %c0_i32_0 = arith.constant 0 : i32
    %c0_i32_1 = arith.constant 0 : i32
    return %c0_i32, %c0_i32_0 : i32, i32
  }
  func.func @transform_28(%arg0: i32) -> (i32, i32) {
    %c0_i32 = arith.constant 0 : i32
    %c0_i32_0 = arith.constant 0 : i32
    %c0_i32_1 = arith.constant 0 : i32
    return %c0_i32, %c0_i32_0 : i32, i32
  }
  func.func @transform_29(%arg0: i32) -> (i32, i32) {
    %c0_i32 = arith.constant 0 : i32
    %c0_i32_0 = arith.constant 0 : i32
    %c0_i32_1 = arith.constant 0 : i32
    return %c0_i32, %c0_i32_0 : i32, i32
  }
  func.func @transform_30(%arg0: i32) -> (i32, i32) {
    %c0_i32 = arith.constant 0 : i32
    %c0_i32_0 = arith.constant 0 : i32
    %c0_i32_1 = arith.constant 0 : i32
    return %c0_i32, %c0_i32_0 : i32, i32
  }
  func.func @transform_31(%arg0: i32) -> (i32, i32) {
    %c0_i32 = arith.constant 0 : i32
    %c0_i32_0 = arith.constant 0 : i32
    %c0_i32_1 = arith.constant 0 : i32
    return %c0_i32, %c0_i32_0 : i32, i32
  }
  func.func @transform_32(%arg0: i32) -> (i32, i32) {
    %c0_i32 = arith.constant 0 : i32
    %c0_i32_0 = arith.constant 0 : i32
    %c0_i32_1 = arith.constant 0 : i32
    return %c0_i32, %c0_i32_0 : i32, i32
  }
  func.func @transform_33(%arg0: i32) -> (i32, i32) {
    %c0_i32 = arith.constant 0 : i32
    %c0_i32_0 = arith.constant 0 : i32
    %c0_i32_1 = arith.constant 0 : i32
    return %c0_i32, %c0_i32_0 : i32, i32
  }
  func.func @transform_34(%arg0: i32) -> (i32, i32) {
    %c0_i32 = arith.constant 0 : i32
    %c0_i32_0 = arith.constant 0 : i32
    %c0_i32_1 = arith.constant 0 : i32
    return %c0_i32, %c0_i32_0 : i32, i32
  }
  func.func @transform_35(%arg0: i32) -> (i32, i32) {
    %c0_i32 = arith.constant 0 : i32
    %c0_i32_0 = arith.constant 0 : i32
    %c0_i32_1 = arith.constant 0 : i32
    return %c0_i32, %c0_i32_0 : i32, i32
  }
  func.func @transform_36(%arg0: i32) -> (i32, i32) {
    %c0_i32 = arith.constant 0 : i32
    %c0_i32_0 = arith.constant 0 : i32
    %c0_i32_1 = arith.constant 0 : i32
    return %c0_i32, %c0_i32_0 : i32, i32
  }
  func.func @transform_37(%arg0: i32) -> (i32, i32) {
    %c0_i32 = arith.constant 0 : i32
    %c0_i32_0 = arith.constant 0 : i32
    %c0_i32_1 = arith.constant 0 : i32
    return %c0_i32, %c0_i32_0 : i32, i32
  }
  func.func @transform_38(%arg0: i32) -> (i32, i32) {
    %c0_i32 = arith.constant 0 : i32
    %c0_i32_0 = arith.constant 0 : i32
    %c0_i32_1 = arith.constant 0 : i32
    return %c0_i32, %c0_i32_0 : i32, i32
  }
  func.func @transform_39(%arg0: i32) -> (i32, i32) {
    %c0_i32 = arith.constant 0 : i32
    %c0_i32_0 = arith.constant 0 : i32
    %c0_i32_1 = arith.constant 0 : i32
    return %c0_i32, %c0_i32_0 : i32, i32
  }
  func.func @transform_40(%arg0: i32) -> (i32, i32) {
    %c0_i32 = arith.constant 0 : i32
    %c0_i32_0 = arith.constant 0 : i32
    %c0_i32_1 = arith.constant 0 : i32
    return %c0_i32, %c0_i32_0 : i32, i32
  }
  func.func @transform_41(%arg0: i32) -> (i32, i32) {
    %c0_i32 = arith.constant 0 : i32
    %c0_i32_0 = arith.constant 0 : i32
    %c0_i32_1 = arith.constant 0 : i32
    return %c0_i32, %c0_i32_0 : i32, i32
  }
  func.func @transform_42(%arg0: i32) -> (i32, i32) {
    %c0_i32 = arith.constant 0 : i32
    %c0_i32_0 = arith.constant 0 : i32
    %c0_i32_1 = arith.constant 0 : i32
    return %c0_i32, %c0_i32_0 : i32, i32
  }
  func.func @transform_43(%arg0: i32) -> (i32, i32) {
    %c0_i32 = arith.constant 0 : i32
    %c0_i32_0 = arith.constant 0 : i32
    %c0_i32_1 = arith.constant 0 : i32
    return %c0_i32, %c0_i32_0 : i32, i32
  }
  func.func @transform_44(%arg0: i32) -> (i32, i32) {
    %c0_i32 = arith.constant 0 : i32
    %c0_i32_0 = arith.constant 0 : i32
    %c0_i32_1 = arith.constant 0 : i32
    return %c0_i32, %c0_i32_0 : i32, i32
  }
  func.func @transform_45(%arg0: i32) -> (i32, i32, i32) {
    %c0_i32 = arith.constant 0 : i32
    %c0_i32_0 = arith.constant 0 : i32
    %c0_i32_1 = arith.constant 0 : i32
    return %arg0, %c0_i32, %c0_i32_0 : i32, i32, i32
  }
  func.func @transform_46(%arg0: i32) -> (i32, i32, i32) {
    %c0_i32 = arith.constant 0 : i32
    %c0_i32_0 = arith.constant 0 : i32
    %c0_i32_1 = arith.constant 0 : i32
    return %arg0, %c0_i32, %c0_i32_0 : i32, i32, i32
  }
}

</mosaic_0001>

<bundles_post_ra>
// kernel: decoder_forward.1
= control target key start
LH: loop header
LB: loop body
LE: loop exit
PB: predicated region body
PF: predicated region fallthrough
CT: control target
= control target key end

     0   :  { %s9289_s6 = smov 1   ;;  %s9290_s10 = smov 2   ;;  %s10379_s0 = inlined_call_operand.smem [shape: u32[47], index: -1, kind: input, shape index: {}] }
   0x1   :  { %s9348_s5 = sld [smem:[%s10379_s0]]   ;;  %s9291_s14 = smov 3  }
   0x2   :  { %s9353_s9 = sld [smem:[%s10379_s0 + %s9289_s6]]   ;;  %s9292_s18 = smov 4  }
   0x3   :  { %s9358_s13 = sld [smem:[%s10379_s0 + %s9290_s10]]   ;;  %s9293_s22 = smov 5  }
   0x4   :  { %s9363_s17 = sld [smem:[%s10379_s0 + %s9291_s14]]   ;;  %s9294_s26 = smov 6  }
   0x5   :  { %s9368_s21 = sld [smem:[%s10379_s0 + %s9292_s18]]   ;;  %s9295_s30 = smov 7  }
   0x6   :  { %s9373_s25 = sld [smem:[%s10379_s0 + %s9293_s22]]   ;;  %s9296_s4 = smov 8  }
   0x7   :  { %s9378_s29 = sld [smem:[%s10379_s0 + %s9294_s26]]   ;;  %s9297_s10 = smov 9  }
   0x8   :  { %s9383_s3 = sld [smem:[%s10379_s0 + %s9295_s30]]   ;;  %s9298_s15 = smov 10  }
   0x9   :  { %s9388_s8 = sld [smem:[%s10379_s0 + %s9296_s4]]   ;;  %s9299_s20 = smov 11  }
   0xa   :  { %s9393_s14 = sld [smem:[%s10379_s0 + %s9297_s10]]   ;;  %s9300_s26 = smov 12  }
   0xb   :  { %s9398_s19 = sld [smem:[%s10379_s0 + %s9298_s15]]   ;;  %s9301_s1 = smov 13  }
   0xc   :  { %s9403_s24 = sld [smem:[%s10379_s0 + %s9299_s20]]   ;;  %s9302_s7 = smov 14  }
   0xd   :  { %s9408_s30 = sld [smem:[%s10379_s0 + %s9300_s26]]   ;;  %s9303_s15 = smov 15  }
   0xe   :  { %10400 = sst [smem:[#allocation9_spill]] %s9383_s3  ;;  %s9304_s22 = smov 16  }
   0xf   :  { %s9413_s6 = sld [smem:[%s10379_s0 + %s9301_s1]]   ;;  %s9305_s28 = smov 17  }
  0x10   :  { %s9418_s12 = sld [smem:[%s10379_s0 + %s9302_s7]]   ;;  %s9306_s7 = smov 18  }
  0x11   :  { %10401 = sst [smem:[#allocation10_spill]] %s9398_s19 }
  0x12   :  { %s9423_s20 = sld [smem:[%s10379_s0 + %s9303_s15]]   ;;  %s9307_s15 = smov 19  }
  0x13   :  { %10402 = sst [smem:[#allocation11_spill]] %s9408_s30 }
  0x14   :  { %s9428_s27 = sld [smem:[%s10379_s0 + %s9304_s22]]   ;;  %s9308_s22 = smov 20  }
  0x15   :  { %10403 = sst [smem:[#allocation12_spill]] %s9413_s6 }
  0x16   :  { %10404 = sst [smem:[#allocation13_spill]] %s9418_s12 }
  0x17   :  { %s9433_s4 = sld [smem:[%s10379_s0 + %s9305_s28]]   ;;  %s9309_s28 = smov 21  }
  0x18   :  { %10405 = sst [smem:[#allocation14_spill]] %s9423_s20 }
  0x19   :  { %s9438_s12 = sld [smem:[%s10379_s0 + %s9306_s7]]   ;;  %s9310_s7 = smov 22  }
  0x1a   :  { %10406 = sst [smem:[#allocation15_spill]] %s9428_s27 }
  0x1b   :  { %s9443_s20 = sld [smem:[%s10379_s0 + %s9307_s15]]   ;;  %s9311_s15 = smov 23  }
  0x1c   :  { %s9448_s27 = sld [smem:[%s10379_s0 + %s9308_s22]]   ;;  %s9312_s22 = smov 24  }
  0x1d   :  { %10407 = sst [smem:[#allocation16_spill]] %s9433_s4 }
  0x1e   :  { %s9453_s4 = sld [smem:[%s10379_s0 + %s9309_s28]]   ;;  %s9313_s28 = smov 25  }
  0x1f   :  { %10408 = sst [smem:[#allocation17_spill]] %s9438_s12 }
  0x20   :  { %s9458_s12 = sld [smem:[%s10379_s0 + %s9310_s7]]   ;;  %s9314_s7 = smov 26  }
  0x21   :  { %10409 = sst [smem:[#allocation18_spill]] %s9443_s20 }
  0x22   :  { %10410 = sst [smem:[#allocation19_spill]] %s9448_s27 }
  0x23   :  { %s9463_s20 = sld [smem:[%s10379_s0 + %s9311_s15]]   ;;  %s9315_s15 = smov 27  }
  0x24   :  { %10411 = sst [smem:[#allocation20_spill]] %s9453_s4 }
  0x25   :  { %s9468_s27 = sld [smem:[%s10379_s0 + %s9312_s22]]   ;;  %s9316_s22 = smov 28  }
  0x26   :  { %10412 = sst [smem:[#allocation21_spill]] %s9458_s12 }
  0x27   :  { %s9473_s4 = sld [smem:[%s10379_s0 + %s9313_s28]]   ;;  %s9317_s28 = smov 29  }
  0x28   :  { %s9478_s12 = sld [smem:[%s10379_s0 + %s9314_s7]]   ;;  %s9318_s7 = smov 30  }
  0x29   :  { %10413 = sst [smem:[#allocation22_spill]] %s9463_s20 }
  0x2a   :  { %s9483_s20 = sld [smem:[%s10379_s0 + %s9315_s15]]   ;;  %s9319_s15 = smov 31  }
  0x2b   :  { %10414 = sst [smem:[#allocation23_spill]] %s9468_s27 }
  0x2c   :  { %s9488_s27 = sld [smem:[%s10379_s0 + %s9316_s22]]   ;;  %s9320_s22 = smov 32  }
  0x2d   :  { %10415 = sst [smem:[#allocation24_spill]] %s9473_s4 }
  0x2e   :  { %10416 = sst [smem:[#allocation25_spill]] %s9478_s12 }
  0x2f   :  { %s9493_s4 = sld [smem:[%s10379_s0 + %s9317_s28]]   ;;  %s9321_s28 = smov 33  }
  0x30   :  { %10417 = sst [smem:[#allocation26_spill]] %s9483_s20 }
  0x31   :  { %s9498_s12 = sld [smem:[%s10379_s0 + %s9318_s7]]   ;;  %s9322_s7 = smov 34  }
  0x32   :  { %10418 = sst [smem:[#allocation27_spill]] %s9488_s27 }
  0x33   :  { %s9503_s20 = sld [smem:[%s10379_s0 + %s9319_s15]]   ;;  %s9323_s15 = smov 35  }
  0x34   :  { %s9508_s27 = sld [smem:[%s10379_s0 + %s9320_s22]]   ;;  %s9324_s22 = smov 36  }
  0x35   :  { %10419 = sst [smem:[#allocation28_spill]] %s9493_s4 }
  0x36   :  { %s9513_s4 = sld [smem:[%s10379_s0 + %s9321_s28]]   ;;  %s9325_s28 = smov 37  }
  0x37   :  { %10420 = sst [smem:[#allocation29_spill]] %s9498_s12 }
  0x38   :  { %s9518_s12 = sld [smem:[%s10379_s0 + %s9322_s7]]   ;;  %s9326_s7 = smov 38  }
  0x39   :  { %10421 = sst [smem:[#allocation30_spill]] %s9503_s20 }
  0x3a   :  { %10422 = sst [smem:[#allocation31_spill]] %s9508_s27 }
  0x3b   :  { %s9523_s20 = sld [smem:[%s10379_s0 + %s9323_s15]]   ;;  %s9327_s15 = smov 39  }
  0x3c   :  { %10423 = sst [smem:[#allocation32_spill]] %s9513_s4 }
  0x3d   :  { %s9528_s27 = sld [smem:[%s10379_s0 + %s9324_s22]]   ;;  %s9328_s22 = smov 40  }
  0x3e   :  { %10424 = sst [smem:[#allocation33_spill]] %s9518_s12 }
  0x3f   :  { %s9533_s4 = sld [smem:[%s10379_s0 + %s9325_s28]]   ;;  %s9329_s28 = smov 41  }
  0x40   :  { %s9538_s12 = sld [smem:[%s10379_s0 + %s9326_s7]]   ;;  %s9330_s7 = smov 42  }
  0x41   :  { %10425 = sst [smem:[#allocation34_spill]] %s9523_s20 }
  0x42   :  { %s9543_s20 = sld [smem:[%s10379_s0 + %s9327_s15]]   ;;  %s9331_s15 = smov 43  }
  0x43   :  { %10426 = sst [smem:[#allocation35_spill]] %s9528_s27 }
  0x44   :  { %s9548_s27 = sld [smem:[%s10379_s0 + %s9328_s22]]   ;;  %s9332_s22 = smov 44  }
  0x45   :  { %10427 = sst [smem:[#allocation36_spill]] %s9533_s4 }
  0x46   :  { %10428 = sst [smem:[#allocation37_spill]] %s9538_s12 }
  0x47   :  { %s9553_s4 = sld [smem:[%s10379_s0 + %s9329_s28]]   ;;  %s9333_s28 = smov 45  }
  0x48   :  { %10429 = sst [smem:[#allocation38_spill]] %s9543_s20 }
  0x49   :  { %s9558_s12 = sld [smem:[%s10379_s0 + %s9330_s7]]   ;;  %s9334_s7 = smov 46  }
  0x4a   :  { %s9563_s20 = sld [smem:[%s10379_s0 + %s9331_s15]]  }
  0x4b   :  { %s9568_s30 = sld [smem:[%s10379_s0 + %s9332_s22]]  }
  0x4c   :  { %s9573_s6 = sld [smem:[%s10379_s0 + %s9333_s28]]  }
  0x4d   :  { %s9578_s19 = sld [smem:[%s10379_s0 + %s9334_s7]]  }
  0x4e   :  { %99 = vsyncpa [#allocation3], 0 }
  0x4f   :  { %100 = vsyncpa [#allocation5], 0  ;;  %s9580_s15 = smov 0  }
  0x50 LB: > { %s10430_s3 = sld [smem:[#allocation9_spill]]  ;;  %s9586_s16 = sadd.s32 4294967295, %s9287_s15   ;;  %s9287_s15 = sphi %s9580_s15, %s106_s15  }
  0x51   : > { %p7655_p0 = scmp.ge.s32.totalorder %s9287_s15, 1  ;;  %p1113_p1 = scmp.lt.s32.totalorder %s9287_s15, 3 }
  0x52   : > { %p10393_p2 = scmp.eq.s32.totalorder %s9586_s16, 0  ;;  %s9335_s18 = smov [#allocation4]  }
  0x53   : > { %p9591_p3 = pnand %p7655_p0, %p1113_p1  ;;  %s1254_s22 = sshll.u32 %s9335_s18, 4  ;;  %s1255_s22 = int_to_ptr.vmem [resolvable:$true] %s1254_s22 }
  0x54   : > { %s9336_s23 = smov [#allocation2]   ;;  %s9337_s28 = smov [#allocation6]  }
  0x55   : > { %s10431_s0 = scalar_select %p9591_p3, 1, 0 }
  0x56   : > { %p8958_p4 = pneg %p9591_p3  ;;  %s1243_s26 = sshll.u32 %s9336_s23, 4  ;;  %s1244_s26 = int_to_ptr.vmem [resolvable:$true] %s1243_s26 }
  0x57   : > { %s1265_s1 = sshll.u32 %s9337_s28, 4  ;;  %s9206_s7 = scalar_lea.vmem %s1255_s22, 16  ;;  %s9603_s1 = int_to_ptr.vmem [resolvable:$true] %s1265_s1 }
  0x58   : > { %p9599_p5 = pnand %p10393_p2, %p8958_p4  ;;  %p9207_p7 = scmp.ne.s32.totalorder %s1255_s22, %s9206_s7 }
  0x59   : > { %s9213_s10 = scalar_lea.vmem %s1255_s22, 32  ;;  %p9214_p10 = scmp.lt.s32.totalorder %s1255_s22, %s1255_s22 }
  0x5a   : > { %p9197_p6 = pneg %p9599_p5  ;;  %p9215_p11 = scmp.lt.s32.totalorder %s9213_s10, %s9206_s7 }
  0x5c   : > { %p9209_p8 = pnand %p9207_p7, %p9197_p6  ;;  %p9216_p12 = por %p9215_p11, %p9214_p10 }
  0x5e   : > { %p9210_p9 = pneg %p9209_p8 }
  0x60   : > { %p9217_p13 = pnand %p9216_p12, %p9210_p9 }
  0x62   : > { %9220 = shalt.err (!%p9217_p13)
}
  0x63   : > { %8964 = dma.hbm_to_vmem [thread:$0]  (!%p9599_p5), %s9553_s4, 16, %s1255_s22, [#allocation5]  }
  0x64   : > { %s9232_s11 = scalar_lea.vmem %s1244_s26, 16  ;;  %s9239_s18 = scalar_lea.vmem %s1244_s26, 32 }
  0x65   : > { %p9233_p0 = scmp.ne.s32.totalorder %s1244_s26, %s9232_s11  ;;  %p9240_p7 = scmp.lt.s32.totalorder %s1244_s26, %s1244_s26 }
  0x66   : > { %p9241_p8 = scmp.lt.s32.totalorder %s9239_s18, %s9232_s11 }
  0x67   : > { %p9235_p1 = pnand %p9233_p0, %p9197_p6 }
  0x68   : > { %p9242_p2 = por %p9241_p8, %p9240_p7 }
  0x69   : > { %p9236_p4 = pneg %p9235_p1 }
  0x6b   : > { %p9243_p3 = pnand %p9242_p2, %p9236_p4 }
  0x6d   : > { %9246 = shalt.err (!%p9243_p3)
}
  0x6e   : > { %8961 = dma.hbm_to_vmem [thread:$0]  (!%p9599_p5), %s9548_s27, 16, %s1244_s26, [#allocation3]  }
  0x6f   : > { %s9258_s22 = scalar_lea.vmem %s9603_s1, 16  ;;  %s9265_s23 = scalar_lea.vmem %s9603_s1, 32 }
  0x70   : > { %p9259_p9 = scmp.ne.s32.totalorder %s9603_s1, %s9258_s22  ;;  %p9266_p12 = scmp.lt.s32.totalorder %s9603_s1, %s9603_s1 }
  0x71   : > { %p9267_p2 = scmp.lt.s32.totalorder %s9265_s23, %s9258_s22 }
  0x72   : > { %p9261_p10 = pnand %p9259_p9, %p9197_p6 }
  0x73   : > { %p9268_p3 = por %p9267_p2, %p9266_p12 }
  0x74   : > { %p9262_p11 = pneg %p9261_p10 }
  0x76   : > { %p9269_p13 = pnand %p9268_p3, %p9262_p11 }
  0x78   : > { %9272 = shalt.err (!%p9269_p13)
}
  0x79   : > { %8967 = dma.hbm_to_vmem [thread:$0]  (!%p9599_p5), %s9558_s12, 16, %s9603_s1, [#allocation5]  }
  0x7a   : > { %p10433_p0 = scmp.ne.s32.totalorder %s10431_s0, 0 }
  0x7b   : > { %p10434_p1 = scmp.eq.s32.totalorder (!%p10433_p0), %s9586_s16, 0 }
  0x7c   : > { %1292 = sbr.rel (%p10433_p0) target bundleno = 12474 (0x30ba), region = 200 }
  0x81   : > { %9278 = dma.done.wait (%p10434_p1), [#allocation3], 16   ;;  %p10435_p6 = pmov %p10434_p1 }
  0x82   : > { %p10436_p4 = pmov %p10434_p1 }
  0x83   : > { %9280 = vsyncadd (%p10435_p6), [#allocation3], 4294967280 }
  0x84   : > { %9282 = dma.done.wait (%p10436_p4), [#allocation5], 32   ;;  %p10437_p7 = pmov %p10434_p1 }
  0x85   : > { %p1415_p5 = scmp.lt.s32.totalorder %s9586_s16, 1  ;;  %vm1443_vm0 = vcmask 261120   ;;  %v1435_v0 = vld [vmem:[%s9353_s9 + $0x18] sm:$0xff]  ;;  %v1434_v1 = vld [vmem:[%s9353_s9 + $0x10] sm:$0xff]  ;;  %v1433_v3 = vld [vmem:[%s9353_s9 + $0x8] sm:$0xff]  ;;  %vm1697_vm1 = vcmask 64512  }
  0x86   : > { %9284 = vsyncadd (%p10437_p7), [#allocation5], 4294967264  ;;  %8344 = vmatprep.subr.mxu1 %v1435_v0  ;;  %v1432_v4 = vld [vmem:[%s9353_s9] sm:$0xff]  ;;  %v1528_v6 = vld [vmem:[%s9363_s17 + $0x18] sm:$0xff]  ;;  %vm1785_vm2 = vcmask 121856   ;;  %vm1789_vm3 = vcmask 120832  }
  0x87   : > { %s10468_s16 = smov (!%p1415_p5, %s9586_s16), 1  ;;  %8345 = vmatpush3.msra.mxu1 %v1435_v0  ;;  %v1527_v7 = vld [vmem:[%s9363_s17 + $0x10] sm:$0xff]  ;;  %v1526_v8 = vld [vmem:[%s9363_s17 + $0x8] sm:$0xff]  ;;  %v1525_v9 = vld [vmem:[%s9363_s17] sm:$0xff]  ;;  %vm1815_vm4 = vcmask 1046528   ;;  %vm3616_vm5 = vcmask 260096  }
  0x88   : > { %s8014_s0 = sshll.u32 %s10468_s16, 4  ;;  %8346 = vmatprep.subr.mxu1 %v1434_v1  ;;  %v7670_v11 = vld [vmem:[%s9358_s13] ss:$0 sm:$0xff]  ;;  %v1614_v20 = vld [vmem:[%s9373_s25 + $0x18] sm:$0xff]  ;;  %v1613_v21 = vld [vmem:[%s9373_s25 + $0x10] sm:$0xff]  ;;  %s10438_s28 = sld [smem:[#allocation10_spill]] }
  0x89   : > { %s1419_s26 = scalar_lea.vmem %s9348_s5, %s8014_s0  ;;  %8347 = vmatpush3.msra.mxu1 %v1434_v1  ;;  %v7673_v14 = vld [vmem:[%s9368_s21] ss:$0 sm:$0xff]  ;;  %8366 = vmatprep.subr.mxu0 %v1614_v20  ;;  %v1612_v22 = vld [vmem:[%s9373_s25 + $0x8] sm:$0xff]  ;;  %v7697_v43 = vld [vmem:[%s9363_s17 + $0x38] sm:$0xff]  ;;  %s10439_s1 = sld [smem:[#allocation12_spill]]  ;;  %vm6487_vm6 = vcmask 389120  }
  0x8a   : > { %v9649_v2 = vld [vmem:[%s1419_s26] sm:$0xff]  ;;  %8348 = vmatprep.subr.mxu1 %v1433_v3  ;;  %v9657_v5 = vld [vmem:[%s1419_s26 + $0x8] sm:$0x7f]  ;;  %8367 = vmatpush3.msra.mxu0 %v1614_v20  ;;  %v7689_v44 = vld [vmem:[%s9353_s9 + $0x38] sm:$0xff]  ;;  %s10440_s2 = sld [smem:[#allocation11_spill]]  ;;  %vm6483_vm7 = vcmask 392192  }
  0x8b   : > { %8352 = vmatprep.mubr.msk.f32.mxu1 %vm1443_vm0, %v9649_v2  ;;  %8374 = vmatprep.mubr.msk.f32.mxu0 %vm1443_vm0, %v9649_v2  ;;  %v1611_v23 = vld [vmem:[%s9373_s25] sm:$0xff]  ;;  %v7688_v45 = vld [vmem:[%s9353_s9 + $0x30] sm:$0xff]  ;;  %v7687_v46 = vld [vmem:[%s9353_s9 + $0x28] sm:$0xff]  ;;  %s10441_s7 = sld [smem:[#allocation13_spill]]  ;;  %vm6641_vm8 = vcmask 585728   ;;  %vm6637_vm9 = vcmask 588800  }
  0x8c   : > { %8349 = vmatpush3.msra.mxu1 %v1433_v3  ;;  %8368 = vmatprep.subr.mxu0 %v1613_v21  ;;  %v7676_v39 = vld [vmem:[%s9378_s29] ss:$0 sm:$0xff]  ;;  %v7696_v54 = vld [vmem:[%s9363_s17 + $0x30] sm:$0xff]  ;;  %v7695_v55 = vld [vmem:[%s9363_s17 + $0x28] sm:$0xff]  ;;  %s10442_s10 = sld [smem:[#allocation14_spill]]  ;;  %vm9339_vm10 = vmmov 0  }
  0x8d   : > { %8350 = vmatprep.subr.mxu1 %v1432_v4  ;;  %8369 = vmatpush3.msra.mxu0 %v1613_v21  ;;  %v7686_v47 = vld [vmem:[%s9353_s9 + $0x20] sm:$0xff]  ;;  %s10443_s11 = sld [smem:[#allocation15_spill]]  ;;  %vm7070_vm11 = vcmask 386048   ;;  %vm6796_vm12 = vcmask 1044480   ;;  %vm7193_vm13 = vcmask 582656   ;;  %vm7319_vm14 = vcmask 1041408  }
  0x8e   : > { %8351 = vmatpush3.msra.mxu1 %v1432_v4  ;;  %8370 = vmatprep.subr.mxu0 %v1612_v22  ;;  %v7694_v56 = vld [vmem:[%s9363_s17 + $0x20] sm:$0xff]  ;;  %s10444_s18 = sld [smem:[#allocation16_spill]] }
  0x8f   : > { %8353 = vmatmul.mubr.msk.f32.vlgmr.msra.gmra.mxu1 %vm1443_vm0, %v9657_v5  ;;  %8355 = vmatprep.subr.mxu1 %v1528_v6  ;;  %v7691_v58 = vld [vmem:[%s9358_s13 + $0x1] ss:$0 sm:$0xff]  ;;  %s10445_s22 = sld [smem:[#allocation17_spill]] }
  0x90   : > { %8356 = vmatpush3.msra.mxu1 %v1528_v6  ;;  %8363 = vmatprep.mubr.msk.f32.mxu1 %vm1443_vm0, %v9649_v2  ;;  %v7699_v0 = vld [vmem:[%s9368_s21 + $0x1] ss:$0 sm:$0xff]  ;;  %s10446_s23 = sld [smem:[#allocation20_spill]] }
  0x91   : > { %8357 = vmatprep.subr.mxu1 %v1527_v7  ;;  %8371 = vmatpush3.msra.mxu0 %v1612_v22  ;;  %s10447_s0 = sld [smem:[#allocation18_spill]] }
  0x92   : > { %8358 = vmatpush3.msra.mxu1 %v1527_v7  ;;  %8372 = vmatprep.subr.mxu0 %v1611_v23  ;;  %v7705_v7 = vld [vmem:[%s9373_s25 + $0x38] sm:$0xff]  ;;  %s10448_s26 = sld [smem:[#allocation19_spill]] }
  0x93   : > { %8359 = vmatprep.subr.mxu1 %v1526_v8  ;;  %8373 = vmatpush3.msra.mxu0 %v1611_v23 }
  0x94   : > { %8360 = vmatpush3.msra.mxu1 %v1526_v8  ;;  %8375 = vmatmul.mubr.msk.f32.vlgmr.msra.gmra.mxu0 %vm1443_vm0, %v9657_v5  ;;  %v7704_v8 = vld [vmem:[%s9373_s25 + $0x30] sm:$0xff] }
  0x95   : > { %8361 = vmatprep.subr.mxu1 %v1525_v9 }
  0x96   : > { %8362 = vmatpush3.msra.mxu1 %v1525_v9  ;;  %v7703_v9 = vld [vmem:[%s9373_s25 + $0x28] sm:$0xff] }
  0x97   : > { %8364 = vmatmul.mubr.msk.f32.vlgmr.msra.gmra.mxu1 %vm1443_vm0, %v9657_v5 }
 0x14f   : > { %v8354_v10 = vpop.f32.mrf.mxu1 }
 0x150   : > { %v1522_v19 = vadd.f32 %v8354_v10, %v7670_v11  ;;  %v7702_v10 = vld [vmem:[%s9373_s25 + $0x20] sm:$0xff] }
 0x151   : > { %v1516_v12 = vpop.f32.mrf.mxu1 }
 0x152   : > { %v1517_v13 = vadd.f32 %v7670_v11, %v1516_v12 }
 0x154   : > { %8381 = vmatprep.mubr.msk.f32.mxu1 %vm1697_vm1, %v1517_v13  ;;  %v8376_v38 = vpop.f32.mrf.mxu0 }
 0x155   : > { %v1694_v40 = vadd.f32 %v8376_v38, %v7676_v39  ;;  %v7733_v38 = vld [vmem:[%s9363_s17 + $0x58] sm:$0xff] }
 0x156   : > { %v1688_v41 = vpop.f32.mrf.mxu0 }
 0x157   : > { %v8365_v15 = vpop.f32.mrf.mxu1  ;;  %v1689_v42 = vadd.f32 %v7676_v39, %v1688_v41  ;;  %8384 = vmatprep.subr.msk.mxu0 %vm1815_vm4, %v1694_v40  ;;  %v7732_v39 = vld [vmem:[%s9363_s17 + $0x50] sm:$0xff]  ;;  %v7730_v41 = vld [vmem:[%s9363_s17 + $0x40] sm:$0xff] }
 0x158   : > { %v1608_v16 = vadd.f32 %v8365_v15, %v7673_v14  ;;  %8385 = vmatpush3.msk.msra.mxu0 %vm1815_vm4, %v1694_v40  ;;  %v7731_v40 = vld [vmem:[%s9363_s17 + $0x48] sm:$0xff] }
 0x159   : > { %v1602_v17 = vpop.f32.mrf.mxu1  ;;  %8386 = vmatprep.subr.mxu0 %v1689_v42 }
 0x15a   : > { %v1603_v18 = vadd.f32 %v7673_v14, %v1602_v17  ;;  %8377 = vmatprep.subr.msk.mxu1 %vm1697_vm1, %v1608_v16  ;;  %8387 = vmatpush3.msra.mxu0 %v1689_v42  ;;  %v7725_v42 = vld [vmem:[%s9353_s9 + $0x58] sm:$0xff] }
 0x15b   : > { %8378 = vmatpush3.xpose.msk.msra.mxu1 %vm1697_vm1, %v1608_v16  ;;  %8402 = vmatprep.subr.mxu0 %v7697_v43 }
 0x15c   : > { %8379 = vmatprep.subr.msk.mxu1 %vm1697_vm1, %v1603_v18 }
 0x15f   : > { %8380 = vmatpush3.xpose.msk.msra.mxu1 %vm1697_vm1, %v1603_v18 }
 0x160   : > { %8391 = vmatprep.subr.mxu1 %v7689_v44 }
 0x162   : > { %8382 = vmatmul.mubr.msk.f32.vlgmr.msra.gmra.mxu1 %vm1697_vm1, %v1522_v19 }
 0x163   : > { %8399 = vmatprep.mubr.msk.f32.mxu1 %vm1443_vm0, %v9649_v2  ;;  %8392 = vmatpush3.msra.mxu1 %v7689_v44 }
 0x164   : > { %8393 = vmatprep.subr.mxu1 %v7688_v45 }
 0x165   : > { %8394 = vmatpush3.msra.mxu1 %v7688_v45  ;;  %v7724_v45 = vld [vmem:[%s9353_s9 + $0x50] sm:$0xff] }
 0x166   : > { %8395 = vmatprep.subr.mxu1 %v7687_v46 }
 0x167   : > { %8396 = vmatpush3.msra.mxu1 %v7687_v46  ;;  %v7723_v46 = vld [vmem:[%s9353_s9 + $0x48] sm:$0xff] }
 0x168   : > { %8397 = vmatprep.subr.mxu1 %v7686_v47 }
 0x169   : > { %8398 = vmatpush3.msra.mxu1 %v7686_v47 }
 0x16a   : > { %8400 = vmatmul.mubr.msk.f32.vlgmr.msra.gmra.mxu1 %vm1443_vm0, %v9657_v5  ;;  %8413 = vmatprep.subr.mxu1 %v7705_v7 }
 0x16b   : > { %8421 = vmatprep.mubr.msk.f32.mxu1 %vm1443_vm0, %v9649_v2  ;;  %8414 = vmatpush3.msra.mxu1 %v7705_v7 }
 0x16c   : > { %8415 = vmatprep.subr.mxu1 %v7704_v8 }
 0x16d   : > { %8416 = vmatpush3.msra.mxu1 %v7704_v8 }
 0x16e   : > { %8417 = vmatprep.subr.mxu1 %v7703_v9 }
 0x16f   : > { %8418 = vmatpush3.msra.mxu1 %v7703_v9 }
 0x170   : > { %8419 = vmatprep.subr.mxu1 %v7702_v10 }
 0x171   : > { %8420 = vmatpush3.msra.mxu1 %v7702_v10 }
 0x172   : > { %8422 = vmatmul.mubr.msk.f32.vlgmr.msra.gmra.mxu1 %vm1443_vm0, %v9657_v5 }
 0x222   : > { %v8383_v24 = vpop.f32.mrf.mxu1 }
 0x223   : > { %v1790_v27 = vsel %vm1789_vm3, %v8383_v24, -inf }
 0x224   : > { %v1776_v25 = vpop.f32.mrf.mxu1 }
 0x225   : > { %v1786_v26 = vsel %vm1785_vm2, %v1776_v25, -inf }
 0x226   : > { %1787 = vmax.xlane.f32.xlu0 %v1786_v26  ;;  %v7707_v26 = vld [vmem:[%s9378_s29 + $0x1] ss:$0 sm:$0xff] }
 0x22a   : > { %1791 = vmax.xlane.f32.xlu0 %v1790_v27  ;;  %v8401_v57 = vpop.f32.mrf.mxu1 }
 0x22b   : > { %v1980_v59 = vadd.f32 %v8401_v57, %v7691_v58 }
 0x22c   : > { %v1974_v60 = vpop.f32.mrf.mxu1 }
 0x22d   : > { %v1975_v61 = vadd.f32 %v7691_v58, %v1974_v60  ;;  %v7727_v58 = vld [vmem:[%s9358_s13 + $0x2] ss:$0 sm:$0xff] }
 0x2af   : > { %v1788_v28 = vpop.xlane.xlu0 %1787 }
 0x2b0   : > { %v1793_v29 = vsub.f32 %v1776_v25, %v1788_v28  ;;  %v8423_v25 = vpop.f32.mrf.mxu1 }
 0x2b1   : > { %v2156_v27 = vadd.f32 %v8423_v25, %v7707_v26 }
 0x2b2   : > { %v1795_v30 = vmul.f32 1.442695, %v1793_v29  ;;  %v2150_v28 = vpop.f32.mrf.mxu1 }
 0x2b3   : > { %v1792_v31 = vpop.xlane.xlu0 %1791  ;;  %v2151_v29 = vadd.f32 %v7707_v26, %v2150_v28  ;;  %8431 = vmatprep.subr.msk.mxu1 %vm1815_vm4, %v2156_v27 }
 0x2b4   : > { %9033 = vpow2.f32 %v1795_v30  ;;  %v1794_v32 = vsub.f32 %v8383_v24, %v1792_v31  ;;  %8432 = vmatpush3.msk.msra.mxu1 %vm1815_vm4, %v2156_v27  ;;  %v1894_v30 = vld [vmem:[%s10430_s3] sm:$0xff]  ;;  %v7717_v31 = vld [vmem:[%s10430_s3 + $0x8] sm:$0xff] }
 0x2b5   : > { %8433 = vmatprep.subr.mxu1 %v2151_v29 }
 0x2b6   : > { %v1797_v33 = vmul.f32 1.442695, %v1794_v32  ;;  %8434 = vmatpush3.msra.mxu1 %v2151_v29 }
 0x2b7   : > { %8443 = vmatprep.subr.mxu1 %v1894_v30 }
 0x2b8   : > { %9035 = vpow2.f32 %v1797_v33 }
 0x2c1   : > { %v9034_v34 = vpop.eup %9033 }
 0x2c2   : > { %v1799_v35 = vsel %vm1785_vm2, %v9034_v34, 0.0 }
 0x2c3   : > { %1800 = vadd.xlane.f32.xlu1 %v1799_v35 }
 0x2c5   : > { %v9036_v36 = vpop.eup %9035 }
 0x2c6   : > { %v1802_v37 = vsel %vm1789_vm3, %v9036_v36, 0.0 }
 0x2c7   : > { %1803 = vadd.xlane.f32.xlu1 %v1802_v37 }
 0x34c   : > { %v1801_v48 = vpop.xlane.xlu1 %1800 }
 0x34d   : > { %9037 = vrcp.f32 %v1801_v48  ;;  %v7722_v48 = vld [vmem:[%s9353_s9 + $0x40] sm:$0xff] }
 0x350   : > { %v1804_v49 = vpop.xlane.xlu1 %1803 }
 0x351   : > { %9039 = vrcp.f32 %v1804_v49 }
 0x35a   : > { %v9038_v50 = vpop.eup %9037 }
 0x35b   : > { %v1807_v51 = vmul.f32 %v9038_v50, %v9034_v34  ;;  %v7735_v50 = vld [vmem:[%s9368_s21 + $0x2] ss:$0 sm:$0xff] }
 0x35d   : > { %8388 = vmatprep.mubr.msk.f32.mxu0 %vm1785_vm2, %v1807_v51 }
 0x35e   : > { %v9040_v52 = vpop.eup %9039 }
 0x35f   : > { %v1808_v53 = vmul.f32 %v9040_v52, %v9036_v36 }
 0x361   : > { %8389 = vmatmul.mubr.msk.f32.vlgmr.msra.gmra.mxu0 %vm1785_vm2, %v1808_v53 }
 0x362   : > { %8403 = vmatpush3.msra.mxu0 %v7697_v43  ;;  %8410 = vmatprep.mubr.msk.f32.mxu0 %vm1443_vm0, %v9649_v2 }
 0x363   : > { %8404 = vmatprep.subr.mxu0 %v7696_v54 }
 0x364   : > { %8405 = vmatpush3.msra.mxu0 %v7696_v54 }
 0x365   : > { %8406 = vmatprep.subr.mxu0 %v7695_v55 }
 0x366   : > { %8407 = vmatpush3.msra.mxu0 %v7695_v55 }
 0x367   : > { %8408 = vmatprep.subr.mxu0 %v7694_v56 }
 0x368   : > { %8409 = vmatpush3.msra.mxu0 %v7694_v56 }
 0x369   : > { %8411 = vmatmul.mubr.msk.f32.vlgmr.msra.gmra.mxu0 %vm1443_vm0, %v9657_v5 }
 0x36a   : > { %8428 = vmatprep.mubr.msk.f32.mxu0 %vm1697_vm1, %v1975_v61 }
 0x421   : > { %v9712_v62 = vpop.f32.mrf.mxu0 }
 0x423   : > { %v9714_v63 = vpop.f32.mrf.mxu0 }
 0x429   : > { %v8412_v1 = vpop.f32.mrf.mxu0 }
 0x42a   : > { %v2068_v3 = vadd.f32 %v8412_v1, %v7699_v0  ;;  %v7738_v1 = vld [vmem:[%s9373_s25 + $0x40] sm:$0xff] }
 0x42b   : > { %v2062_v4 = vpop.f32.mrf.mxu0 }
 0x42c   : > { %v2063_v6 = vadd.f32 %v7699_v0, %v2062_v4  ;;  %8424 = vmatprep.subr.msk.mxu0 %vm1697_vm1, %v2068_v3  ;;  %v7739_v0 = vld [vmem:[%s9373_s25 + $0x48] sm:$0xff] }
 0x42d   : > { %8425 = vmatpush3.xpose.msk.msra.mxu0 %vm1697_vm1, %v2068_v3 }
 0x42e   : > { %8426 = vmatprep.subr.msk.mxu0 %vm1697_vm1, %v2063_v6 }
 0x431   : > { %8427 = vmatpush3.xpose.msk.msra.mxu0 %vm1697_vm1, %v2063_v6 }
 0x432   : > { %8438 = vmatprep.subr.mxu0 %v7717_v31 }
 0x434   : > { %8429 = vmatmul.mubr.msk.f32.vlgmr.msra.gmra.mxu0 %vm1697_vm1, %v1980_v59 }
 0x435   : > { %8439 = vmatpush3.msra.mxu0 %v7717_v31  ;;  %v7759_v31 = vld [vmem:[%s9353_s9 + $0x78] sm:$0xff] }
 0x436   : > { %8448 = vmatprep.subr.mxu0 %v7725_v42 }
 0x4f4   : > { %v8430_v11 = vpop.f32.mrf.mxu0 }
 0x4f5   : > { %v2249_v12 = vsel %vm1789_vm3, %v8430_v11, -inf }
 0x4f6   : > { %2250 = vmax.xlane.f32.xlu1 %v2249_v12  ;;  %v2237_v13 = vpop.f32.mrf.mxu0 }
 0x4f7   : > { %v2246_v14 = vsel %vm1785_vm2, %v2237_v13, -inf }
 0x4f8   : > { %2247 = vmax.xlane.f32.xlu0 %v2246_v14 }
 0x57f   : > { %v2251_v15 = vpop.xlane.xlu1 %2250 }
 0x580   : > { %v2253_v16 = vsub.f32 %v8430_v11, %v2251_v15 }
 0x581   : > { %v2248_v17 = vpop.xlane.xlu0 %2247 }
 0x582   : > { %v2256_v18 = vmul.f32 1.442695, %v2253_v16  ;;  %v2252_v19 = vsub.f32 %v2237_v13, %v2248_v17 }
 0x584   : > { %9041 = vpow2.f32 %v2256_v18  ;;  %v2254_v20 = vmul.f32 1.442695, %v2252_v19  ;;  %v7743_v19 = vld [vmem:[%s9378_s29 + $0x2] ss:$0 sm:$0xff] }
 0x586   : > { %9043 = vpow2.f32 %v2254_v20 }
 0x591   : > { %v9042_v21 = vpop.eup %9041 }
 0x592   : > { %v2261_v22 = vsel %vm1789_vm3, %v9042_v21, 0.0 }
 0x593   : > { %v9044_v23 = vpop.eup %9043  ;;  %2262 = vadd.xlane.f32.xlu1 %v2261_v22 }
 0x594   : > { %v2258_v24 = vsel %vm1785_vm2, %v9044_v23, 0.0 }
 0x595   : > { %2259 = vadd.xlane.f32.xlu0 %v2258_v24 }
 0x61c   : > { %v2263_v32 = vpop.xlane.xlu1 %2262 }
 0x61d   : > { %9045 = vrcp.f32 %v2263_v32  ;;  %v7758_v32 = vld [vmem:[%s9353_s9 + $0x70] sm:$0xff] }
 0x61e   : > { %v2260_v33 = vpop.xlane.xlu0 %2259 }
 0x61f   : > { %9047 = vrcp.f32 %v2260_v33  ;;  %v7757_v33 = vld [vmem:[%s9353_s9 + $0x68] sm:$0xff] }
 0x62a   : > { %v9046_v34 = vpop.eup %9045 }
 0x62b   : > { %v2267_v37 = vmul.f32 %v9046_v34, %v9042_v21  ;;  %v7756_v34 = vld [vmem:[%s9353_s9 + $0x60] sm:$0xff] }
 0x62c   : > { %v9048_v35 = vpop.eup %9047 }
 0x62d   : > { %v2266_v36 = vmul.f32 %v9048_v35, %v9044_v23  ;;  %v7753_v23 = vld [vmem:[%s10430_s3 + $0x10] sm:$0xff] }
 0x62f   : > { %8435 = vmatprep.mubr.msk.f32.mxu1 %vm1785_vm2, %v2266_v36 }
 0x630   : > { %8436 = vmatmul.mubr.msk.f32.vlgmr.msra.gmra.mxu1 %vm1785_vm2, %v2267_v37  ;;  %v7766_v37 = vld [vmem:[%s9363_s17 + $0x70] sm:$0xff] }
 0x631   : > { %8445 = vmatprep.mubr.msk.f32.mxu1 %vm1697_vm1, %v9714_v63  ;;  %8444 = vmatpush3.msra.mxu1 %v1894_v30  ;;  %v7740_v63 = vld [vmem:[%s9373_s25 + $0x50] sm:$0xff]  ;;  %v7767_v30 = vld [vmem:[%s9363_s17 + $0x78] sm:$0xff] }
 0x632   : > { %8459 = vmatprep.subr.mxu1 %v7733_v38 }
 0x634   : > { %8446 = vmatmul.mubr.msk.f32.vlgmr.msra.gmra.mxu1 %vm1697_vm1, %v9712_v62  ;;  %v7741_v62 = vld [vmem:[%s9373_s25 + $0x58] sm:$0xff] }
 0x635   : > { %8460 = vmatpush3.msra.mxu1 %v7733_v38  ;;  %8467 = vmatprep.mubr.msk.f32.mxu1 %vm1443_vm0, %v9649_v2  ;;  %v7765_v38 = vld [vmem:[%s9363_s17 + $0x68] sm:$0xff] }
 0x636   : > { %8461 = vmatprep.subr.mxu1 %v7732_v39 }
 0x637   : > { %8462 = vmatpush3.msra.mxu1 %v7732_v39  ;;  %v7764_v39 = vld [vmem:[%s9363_s17 + $0x60] sm:$0xff] }
 0x638   : > { %8463 = vmatprep.subr.mxu1 %v7731_v40 }
 0x639   : > { %8464 = vmatpush3.msra.mxu1 %v7731_v40 }
 0x63a   : > { %8465 = vmatprep.subr.mxu1 %v7730_v41 }
 0x63b   : > { %8466 = vmatpush3.msra.mxu1 %v7730_v41  ;;  %v7761_v41 = vld [vmem:[%s9358_s13 + $0x3] ss:$0 sm:$0xff] }
 0x63c   : > { %8468 = vmatmul.mubr.msk.f32.vlgmr.msra.gmra.mxu1 %vm1443_vm0, %v9657_v5 }
 0x6f0   : > { %v8437_v43 = vpop.f32.mrf.mxu1 }
 0x6f2   : > { %v2343_v44 = vpop.f32.mrf.mxu1 }
 0x6f3   : > { %8440 = vmatprep.mubr.msk.f32.mxu0 %vm1697_vm1, %v2343_v44 }
 0x6f4   : > { %8441 = vmatmul.mubr.msk.f32.vlgmr.msra.gmra.mxu0 %vm1697_vm1, %v8437_v43  ;;  %v9758_v47 = vpop.f32.mrf.mxu1 }
 0x6f5   : > { %8449 = vmatpush3.msra.mxu0 %v7725_v42  ;;  %8456 = vmatprep.mubr.msk.f32.mxu0 %vm1443_vm0, %v9649_v2 }
 0x6f6   : > { %8450 = vmatprep.subr.mxu0 %v7724_v45  ;;  %v9761_v49 = vpop.f32.mrf.mxu1 }
 0x6f7   : > { %8451 = vmatpush3.msra.mxu0 %v7724_v45 }
 0x6f8   : > { %8452 = vmatprep.subr.mxu0 %v7723_v46 }
 0x6f9   : > { %8453 = vmatpush3.msra.mxu0 %v7723_v46 }
 0x6fa   : > { %8454 = vmatprep.subr.mxu0 %v7722_v48 }
 0x6fb   : > { %8455 = vmatpush3.msra.mxu0 %v7722_v48 }
 0x6fc   : > { %8457 = vmatmul.mubr.msk.f32.vlgmr.msra.gmra.mxu0 %vm1443_vm0, %v9657_v5  ;;  %v8469_v51 = vpop.f32.mrf.mxu1  ;;  %8470 = vmatprep.subr.mxu0 %v7741_v62 }
 0x6fd   : > { %v2689_v52 = vadd.f32 %v8469_v51, %v7735_v50  ;;  %8478 = vmatprep.mubr.msk.f32.mxu0 %vm1443_vm0, %v9649_v2  ;;  %8471 = vmatpush3.msra.mxu0 %v7741_v62 }
 0x6fe   : > { %v2683_v53 = vpop.f32.mrf.mxu1  ;;  %8472 = vmatprep.subr.mxu0 %v7740_v63 }
 0x6ff   : > { %8481 = vmatprep.subr.msk.mxu1 %vm1697_vm1, %v2689_v52  ;;  %v2684_v54 = vadd.f32 %v7735_v50, %v2683_v53  ;;  %8473 = vmatpush3.msra.mxu0 %v7740_v63  ;;  %v7769_v53 = vld [vmem:[%s9368_s21 + $0x3] ss:$0 sm:$0xff] }
 0x700   : > { %8482 = vmatpush3.xpose.msk.msra.mxu1 %vm1697_vm1, %v2689_v52  ;;  %8474 = vmatprep.subr.mxu0 %v7739_v0 }
 0x701   : > { %8483 = vmatprep.subr.msk.mxu1 %vm1697_vm1, %v2684_v54  ;;  %8475 = vmatpush3.msra.mxu0 %v7739_v0 }
 0x702   : > { %8476 = vmatprep.subr.mxu0 %v7738_v1 }
 0x703   : > { %8477 = vmatpush3.msra.mxu0 %v7738_v1 }
 0x704   : > { %8484 = vmatpush3.xpose.msk.msra.mxu1 %vm1697_vm1, %v2684_v54  ;;  %8479 = vmatmul.mubr.msk.f32.vlgmr.msra.gmra.mxu0 %vm1443_vm0, %v9657_v5 }
 0x705   : > { %8495 = vmatprep.subr.mxu1 %v7753_v23 }
 0x7b4   : > { %v9772_v55 = vpop.f32.mrf.mxu0 }
 0x7b5   : > { %v2513_v45 = vadd.f32 %v9758_v47, %v9772_v55  ;;  %v7775_v47 = vld [vmem:[%s9373_s25 + $0x78] sm:$0xff]  ;;  %v7773_v55 = vld [vmem:[%s9373_s25 + $0x68] sm:$0xff] }
 0x7b6   : > { %v9774_v56 = vpop.f32.mrf.mxu0 }
 0x7b7   : > { %v2508_v48 = vadd.f32 %v9761_v49, %v9774_v56  ;;  %v7774_v49 = vld [vmem:[%s9373_s25 + $0x70] sm:$0xff]  ;;  %v7772_v56 = vld [vmem:[%s9373_s25 + $0x60] sm:$0xff] }
 0x7bc   : > { %v8458_v57 = vpop.f32.mrf.mxu0 }
 0x7bd   : > { %v2601_v61 = vadd.f32 %v8458_v57, %v7727_v58 }
 0x7be   : > { %v2595_v59 = vpop.f32.mrf.mxu0 }
 0x7bf   : > { %v2596_v60 = vadd.f32 %v7727_v58, %v2595_v59 }
 0x7c1   : > { %8485 = vmatprep.mubr.msk.f32.mxu1 %vm1697_vm1, %v2596_v60 }
 0x7c2   : > { %8486 = vmatmul.mubr.msk.f32.vlgmr.msra.gmra.mxu1 %vm1697_vm1, %v2601_v61 }
 0x7c3   : > { %8496 = vmatpush3.msra.mxu1 %v7753_v23 }
 0x7c4   : > { %v8480_v18 = vpop.f32.mrf.mxu0  ;;  %8511 = vmatprep.subr.mxu1 %v7767_v30 }
 0x7c5   : > { %v2777_v20 = vadd.f32 %v8480_v18, %v7743_v19 }
 0x7c6   : > { %v2771_v21 = vpop.f32.mrf.mxu0 }
 0x7c7   : > { %v2772_v22 = vadd.f32 %v7743_v19, %v2771_v21  ;;  %8488 = vmatprep.subr.msk.mxu0 %vm1815_vm4, %v2777_v20 }
 0x7c8   : > { %8489 = vmatpush3.msk.msra.mxu0 %vm1815_vm4, %v2777_v20 }
 0x7c9   : > { %8490 = vmatprep.subr.mxu0 %v2772_v22 }
 0x7ca   : > { %8491 = vmatpush3.msra.mxu0 %v2772_v22 }
 0x7cb   : > { %8500 = vmatprep.subr.mxu0 %v7759_v31 }
 0x882   : > { %v8487_v3 = vpop.f32.mrf.mxu1 }
 0x883   : > { %v2870_v4 = vsel %vm1789_vm3, %v8487_v3, -inf }
 0x884   : > { %2871 = vmax.xlane.f32.xlu1 %v2870_v4  ;;  %v2858_v6 = vpop.f32.mrf.mxu1 }
 0x885   : > { %v2867_v7 = vsel %vm1785_vm2, %v2858_v6, -inf }
 0x886   : > { %2868 = vmax.xlane.f32.xlu0 %v2867_v7 }
 0x90d   : > { %v2872_v8 = vpop.xlane.xlu1 %2871 }
 0x90e   : > { %v2874_v9 = vsub.f32 %v8487_v3, %v2872_v8 }
 0x90f   : > { %v2869_v10 = vpop.xlane.xlu0 %2868 }
 0x910   : > { %v2877_v11 = vmul.f32 1.442695, %v2874_v9  ;;  %v2873_v12 = vsub.f32 %v2858_v6, %v2869_v10 }
 0x912   : > { %9049 = vpow2.f32 %v2877_v11  ;;  %v2875_v13 = vmul.f32 1.442695, %v2873_v12 }
 0x914   : > { %9051 = vpow2.f32 %v2875_v13  ;;  %v7777_v13 = vld [vmem:[%s9378_s29 + $0x3] ss:$0 sm:$0xff] }
 0x91f   : > { %v9050_v14 = vpop.eup %9049 }
 0x920   : > { %v2882_v15 = vsel %vm1789_vm3, %v9050_v14, 0.0 }
 0x921   : > { %v9052_v16 = vpop.eup %9051  ;;  %2883 = vadd.xlane.f32.xlu1 %v2882_v15 }
 0x922   : > { %v2879_v17 = vsel %vm1785_vm2, %v9052_v16, 0.0 }
 0x923   : > { %2880 = vadd.xlane.f32.xlu0 %v2879_v17  ;;  %v7787_v17 = vld [vmem:[%s10430_s3 + $0x18] sm:$0xff] }
 0x9aa   : > { %v2884_v24 = vpop.xlane.xlu1 %2883 }
 0x9ab   : > { %9053 = vrcp.f32 %v2884_v24 }
 0x9ac   : > { %v2881_v25 = vpop.xlane.xlu0 %2880 }
 0x9ad   : > { %9055 = vrcp.f32 %v2881_v25 }
 0x9b8   : > { %v9054_v26 = vpop.eup %9053 }
 0x9b9   : > { %v2888_v29 = vmul.f32 %v9054_v26, %v9050_v14 }
 0x9ba   : > { %v9056_v27 = vpop.eup %9055 }
 0x9bb   : > { %v2887_v28 = vmul.f32 %v9056_v27, %v9052_v16  ;;  %v7790_v27 = vld [vmem:[%s9388_s8] ss:$0 sm:$0xff] }
 0x9bd   : > { %8492 = vmatprep.mubr.msk.f32.mxu0 %vm1785_vm2, %v2887_v28 }
 0x9be   : > { %8493 = vmatmul.mubr.msk.f32.vlgmr.msra.gmra.mxu0 %vm1785_vm2, %v2888_v29 }
 0x9bf   : > { %8508 = vmatprep.mubr.msk.f32.mxu0 %vm1443_vm0, %v9649_v2  ;;  %8501 = vmatpush3.msra.mxu0 %v7759_v31 }
 0x9c0   : > { %8502 = vmatprep.subr.mxu0 %v7758_v32 }
 0x9c1   : > { %8503 = vmatpush3.msra.mxu0 %v7758_v32 }
 0x9c2   : > { %8504 = vmatprep.subr.mxu0 %v7757_v33 }
 0x9c3   : > { %8505 = vmatpush3.msra.mxu0 %v7757_v33 }
 0x9c4   : > { %8506 = vmatprep.subr.mxu0 %v7756_v34 }
 0x9c5   : > { %8507 = vmatpush3.msra.mxu0 %v7756_v34 }
 0x9c6   : > { %8509 = vmatmul.mubr.msk.f32.vlgmr.msra.gmra.mxu0 %vm1443_vm0, %v9657_v5  ;;  %8522 = vmatprep.subr.mxu0 %v7775_v47 }
 0x9c7   : > { %8530 = vmatprep.mubr.msk.f32.mxu0 %vm1443_vm0, %v9649_v2  ;;  %8523 = vmatpush3.msra.mxu0 %v7775_v47  ;;  %v7791_v47 = vld [vmem:[%s9393_s14] ss:$0 sm:$0xff] }
 0x9c8   : > { %8524 = vmatprep.subr.mxu0 %v7774_v49 }
 0x9c9   : > { %8525 = vmatpush3.msra.mxu0 %v7774_v49 }
 0x9ca   : > { %8526 = vmatprep.subr.mxu0 %v7773_v55 }
 0x9cb   : > { %8527 = vmatpush3.msra.mxu0 %v7773_v55 }
 0x9cc   : > { %8528 = vmatprep.subr.mxu0 %v7772_v56 }
 0x9cd   : > { %8529 = vmatpush3.msra.mxu0 %v7772_v56 }
 0x9ce   : > { %8531 = vmatmul.mubr.msk.f32.vlgmr.msra.gmra.mxu0 %vm1443_vm0, %v9657_v5 }
 0xa7e   : > { %v8494_v35 = vpop.f32.mrf.mxu0 }
 0xa80   : > { %v2964_v36 = vpop.f32.mrf.mxu0 }
 0xa81   : > { %8497 = vmatprep.mubr.msk.f32.mxu1 %vm1697_vm1, %v2964_v36 }
 0xa82   : > { %8498 = vmatmul.mubr.msk.f32.vlgmr.msra.gmra.mxu1 %vm1697_vm1, %v8494_v35 }
 0xa83   : > { %8512 = vmatpush3.msra.mxu1 %v7767_v30  ;;  %8519 = vmatprep.mubr.msk.f32.mxu1 %vm1443_vm0, %v9649_v2 }
 0xa84   : > { %8513 = vmatprep.subr.mxu1 %v7766_v37 }
 0xa85   : > { %8514 = vmatpush3.msra.mxu1 %v7766_v37 }
 0xa86   : > { %8515 = vmatprep.subr.mxu1 %v7765_v38  ;;  %v8510_v40 = vpop.f32.mrf.mxu0 }
 0xa87   : > { %8516 = vmatpush3.msra.mxu1 %v7765_v38  ;;  %v3143_v42 = vadd.f32 %v8510_v40, %v7761_v41 }
 0xa88   : > { %8517 = vmatprep.subr.mxu1 %v7764_v39  ;;  %v3137_v43 = vpop.f32.mrf.mxu0 }
 0xa89   : > { %8518 = vmatpush3.msra.mxu1 %v7764_v39  ;;  %v3138_v44 = vadd.f32 %v7761_v41, %v3137_v43 }
 0xa8a   : > { %8520 = vmatmul.mubr.msk.f32.vlgmr.msra.gmra.mxu1 %vm1443_vm0, %v9657_v5 }
 0xa8b   : > { %8537 = vmatprep.mubr.msk.f32.mxu1 %vm1697_vm1, %v3138_v44 }
 0xa8e   : > { %v8532_v12 = vpop.f32.mrf.mxu0 }
 0xa8f   : > { %v3319_v14 = vadd.f32 %v8532_v12, %v7777_v13  ;;  %v3769_v12 = vld [vmem:[%s10439_s1 + $0x30] sm:$0xff] }
 0xa90   : > { %v3313_v15 = vpop.f32.mrf.mxu0 }
 0xa91   : > { %v3314_v16 = vadd.f32 %v7777_v13, %v3313_v15  ;;  %8540 = vmatprep.subr.msk.mxu0 %vm1815_vm4, %v3319_v14  ;;  %v3768_v13 = vld [vmem:[%s10439_s1 + $0x28] sm:$0xff]  ;;  %v3766_v15 = vld [vmem:[%s10439_s1 + $0x18] sm:$0xff] }
 0xa92   : > { %8541 = vmatpush3.msk.msra.mxu0 %vm1815_vm4, %v3319_v14  ;;  %v3767_v14 = vld [vmem:[%s10439_s1 + $0x20] sm:$0xff] }
 0xa93   : > { %8542 = vmatprep.subr.mxu0 %v3314_v16 }
 0xa94   : > { %8543 = vmatpush3.msra.mxu0 %v3314_v16  ;;  %v3765_v16 = vld [vmem:[%s10439_s1 + $0x10] sm:$0xff] }
 0xb42   : > { %v8499_v46 = vpop.f32.mrf.mxu1 }
 0xb43   : > { %v9821_v50 = vadd.f32 %v8499_v46, %v2513_v45  ;;  %v3660_v45 = vld [vmem:[%s9403_s24 + $0x18] sm:$0xff]  ;;  %v3659_v46 = vld [vmem:[%s9403_s24 + $0x10] sm:$0xff] }
 0xb44   : > { %v3047_v51 = vpop.f32.mrf.mxu1  ;;  %8552 = vmatprep.subr.mxu0 %v3660_v45 }
 0xb45   : > { %v9823_v52 = vadd.f32 %v3047_v51, %v2508_v48  ;;  %v3658_v48 = vld [vmem:[%s9403_s24 + $0x8] sm:$0xff] }
 0xb4a   : > { %v8521_v54 = vpop.f32.mrf.mxu1 }
 0xb4b   : > { %v3231_v57 = vadd.f32 %v8521_v54, %v7769_v53 }
 0xb4c   : > { %v3225_v58 = vpop.f32.mrf.mxu1 }
 0xb4d   : > { %v3226_v59 = vadd.f32 %v7769_v53, %v3225_v58  ;;  %8533 = vmatprep.subr.msk.mxu1 %vm1697_vm1, %v3231_v57 }
 0xb4e   : > { %8534 = vmatpush3.xpose.msk.msra.mxu1 %vm1697_vm1, %v3231_v57 }
 0xb4f   : > { %8535 = vmatprep.subr.msk.mxu1 %vm1697_vm1, %v3226_v59 }
 0xb52   : > { %8536 = vmatpush3.xpose.msk.msra.mxu1 %vm1697_vm1, %v3226_v59 }
 0xb53   : > { %8547 = vmatprep.subr.mxu1 %v7787_v17 }
 0xb55   : > { %8538 = vmatmul.mubr.msk.f32.vlgmr.msra.gmra.mxu1 %vm1697_vm1, %v3143_v42 }
 0xb56   : > { %8548 = vmatpush3.msra.mxu1 %v7787_v17  ;;  %v3764_v17 = vld [vmem:[%s10439_s1 + $0x8] sm:$0xff] }
 0xc15   : > { %v8539_v60 = vpop.f32.mrf.mxu1 }
 0xc16   : > { %v3412_v61 = vsel %vm1789_vm3, %v8539_v60, -inf }
 0xc17   : > { %3413 = vmax.xlane.f32.xlu1 %v3412_v61  ;;  %v3400_v62 = vpop.f32.mrf.mxu1  ;;  %v7792_v61 = vld [vmem:[%s10438_s28] ss:$0 sm:$0xff] }
 0xc18   : > { %v3409_v63 = vsel %vm1785_vm2, %v3400_v62, -inf }
 0xc19   : > { %3410 = vmax.xlane.f32.xlu0 %v3409_v63 }
 0xca0   : > { %v3414_v0 = vpop.xlane.xlu1 %3413 }
 0xca1   : > { %v3416_v1 = vsub.f32 %v8539_v60, %v3414_v0 }
 0xca2   : > { %v3411_v3 = vpop.xlane.xlu0 %3410 }
 0xca3   : > { %v3419_v4 = vmul.f32 1.442695, %v3416_v1  ;;  %v3415_v6 = vsub.f32 %v3400_v62, %v3411_v3  ;;  %v3778_v1 = vld [vmem:[%s10439_s1 + $0x78] sm:$0xff]  ;;  %v3777_v3 = vld [vmem:[%s10439_s1 + $0x70] sm:$0xff] }
 0xca4   : > { %8563 = vmatprep.subr.mxu1 %v3778_v1 }
 0xca5   : > { %9057 = vpow2.f32 %v3419_v4  ;;  %v3417_v7 = vmul.f32 1.442695, %v3415_v6  ;;  %v3776_v4 = vld [vmem:[%s10439_s1 + $0x68] sm:$0xff]  ;;  %v3775_v6 = vld [vmem:[%s10439_s1 + $0x60] sm:$0xff] }
 0xca7   : > { %9059 = vpow2.f32 %v3417_v7  ;;  %v3774_v7 = vld [vmem:[%s10439_s1 + $0x58] sm:$0xff] }
 0xcb2   : > { %v9058_v8 = vpop.eup %9057 }
 0xcb3   : > { %v3424_v9 = vsel %vm1789_vm3, %v9058_v8, 0.0 }
 0xcb4   : > { %v9060_v10 = vpop.eup %9059  ;;  %3425 = vadd.xlane.f32.xlu1 %v3424_v9  ;;  %v3772_v9 = vld [vmem:[%s10439_s1 + $0x48] sm:$0xff] }
 0xcb5   : > { %v3421_v11 = vsel %vm1785_vm2, %v9060_v10, 0.0 }
 0xcb6   : > { %3422 = vadd.xlane.f32.xlu0 %v3421_v11  ;;  %v3770_v11 = vld [vmem:[%s10439_s1 + $0x38] sm:$0xff] }
 0xd3d   : > { %v3426_v18 = vpop.xlane.xlu1 %3425 }
 0xd3e   : > { %9061 = vrcp.f32 %v3426_v18  ;;  %v3763_v18 = vld [vmem:[%s10439_s1] sm:$0xff] }
 0xd3f   : > { %v3423_v19 = vpop.xlane.xlu0 %3422 }
 0xd40   : > { %9063 = vrcp.f32 %v3423_v19  ;;  %v7793_v19 = vld [vmem:[%s10440_s2] ss:$0 sm:$0xff] }
 0xd4b   : > { %v9062_v20 = vpop.eup %9061 }
 0xd4c   : > { %v3430_v23 = vmul.f32 %v9062_v20, %v9058_v8  ;;  %v3773_v8 = vld [vmem:[%s10439_s1 + $0x50] sm:$0xff] }
 0xd4d   : > { %v9064_v21 = vpop.eup %9063 }
 0xd4e   : > { %v3429_v22 = vmul.f32 %v9064_v21, %v9060_v10  ;;  %v3771_v10 = vld [vmem:[%s10439_s1 + $0x40] sm:$0xff] }
 0xd50   : > { %8544 = vmatprep.mubr.msk.f32.mxu0 %vm1785_vm2, %v3429_v22 }
 0xd51   : > { %8545 = vmatmul.mubr.msk.f32.vlgmr.msra.gmra.mxu0 %vm1785_vm2, %v3430_v23 }
 0xd52   : > { %8553 = vmatpush3.msra.mxu0 %v3660_v45 }
 0xd53   : > { %8554 = vmatprep.subr.mxu0 %v3659_v46 }
 0xd54   : > { %8555 = vmatpush3.msra.mxu0 %v3659_v46 }
 0xd55   : > { %8556 = vmatprep.subr.mxu0 %v3658_v48 }
 0xd56   : > { %8557 = vmatpush3.msra.mxu0 %v3658_v48 }
 0xe11   : > { %v8546_v24 = vpop.f32.mrf.mxu0 }
 0xe13   : > { %v3506_v25 = vpop.f32.mrf.mxu0 }
 0xe14   : > { %8549 = vmatprep.mubr.msk.f32.mxu1 %vm1697_vm1, %v3506_v25 }
 0xe15   : > { %8550 = vmatmul.mubr.msk.f32.vlgmr.msra.gmra.mxu1 %vm1697_vm1, %v8546_v24 }
 0xe16   : > { %8564 = vmatpush3.msra.mxu1 %v3778_v1 }
 0xe17   : > { %8565 = vmatprep.subr.mxu1 %v3777_v3 }
 0xe18   : > { %8566 = vmatpush3.msra.mxu1 %v3777_v3 }
 0xe19   : > { %8567 = vmatprep.subr.mxu1 %v3776_v4 }
 0xe1a   : > { %8568 = vmatpush3.msra.mxu1 %v3776_v4 }
 0xe1b   : > { %8569 = vmatprep.subr.mxu1 %v3775_v6 }
 0xe1c   : > { %8570 = vmatpush3.msra.mxu1 %v3775_v6  ;;  %v7800_v6 = vld [vmem:[%s10443_s11] ss:$0 sm:$0xff] }
 0xe1d   : > { %8571 = vmatprep.subr.mxu1 %v3774_v7 }
 0xe1e   : > { %8572 = vmatpush3.msra.mxu1 %v3774_v7 }
 0xe1f   : > { %8573 = vmatprep.subr.mxu1 %v3773_v8 }
 0xe20   : > { %8574 = vmatpush3.msra.mxu1 %v3773_v8 }
 0xe21   : > { %8575 = vmatprep.subr.mxu1 %v3772_v9 }
 0xe22   : > { %8576 = vmatpush3.msra.mxu1 %v3772_v9 }
 0xe23   : > { %8577 = vmatprep.subr.mxu1 %v3771_v10 }
 0xe24   : > { %8578 = vmatpush3.msra.mxu1 %v3771_v10  ;;  %v7811_v10 = vld [vmem:[%s9363_s17 + $0x90] sm:$0xff] }
 0xe25   : > { %8579 = vmatprep.subr.mxu1 %v3770_v11 }
 0xe26   : > { %8580 = vmatpush3.msra.mxu1 %v3770_v11  ;;  %v7810_v11 = vld [vmem:[%s9363_s17 + $0x88] sm:$0xff] }
 0xe27   : > { %8581 = vmatprep.subr.mxu1 %v3769_v12 }
 0xe28   : > { %8582 = vmatpush3.msra.mxu1 %v3769_v12  ;;  %v7809_v12 = vld [vmem:[%s9363_s17 + $0x80] sm:$0xff] }
 0xe29   : > { %8583 = vmatprep.subr.mxu1 %v3768_v13 }
 0xe2a   : > { %8584 = vmatpush3.msra.mxu1 %v3768_v13  ;;  %v7820_v13 = vld [vmem:[%s9373_s25 + $0x98] sm:$0xff] }
 0xe2b   : > { %8585 = vmatprep.subr.mxu1 %v3767_v14 }
 0xe2c   : > { %8586 = vmatpush3.msra.mxu1 %v3767_v14  ;;  %v7819_v14 = vld [vmem:[%s9373_s25 + $0x90] sm:$0xff] }
 0xe2d   : > { %8587 = vmatprep.subr.mxu1 %v3766_v15 }
 0xe2e   : > { %8588 = vmatpush3.msra.mxu1 %v3766_v15  ;;  %v7818_v15 = vld [vmem:[%s9373_s25 + $0x88] sm:$0xff] }
 0xe2f   : > { %8589 = vmatprep.subr.mxu1 %v3765_v16 }
 0xe30   : > { %8590 = vmatpush3.msra.mxu1 %v3765_v16  ;;  %v7817_v16 = vld [vmem:[%s9373_s25 + $0x80] sm:$0xff] }
 0xe31   : > { %8591 = vmatprep.subr.mxu1 %v3764_v17 }
 0xe32   : > { %8592 = vmatpush3.msra.mxu1 %v3764_v17 }
 0xe33   : > { %8593 = vmatprep.subr.mxu1 %v3763_v18 }
 0xe34   : > { %8594 = vmatpush3.msra.mxu1 %v3763_v18  ;;  %v7806_v18 = vld [vmem:[%s9358_s13 + $0x4] ss:$0 sm:$0xff] }
 0xed5   : > { %v8551_v26 = vpop.f32.mrf.mxu1 }
 0xed6   : > { %v3599_v28 = vadd.f32 %v8551_v26, %v9821_v50  ;;  %v3657_v50 = vld [vmem:[%s9403_s24] sm:$0xff] }
 0xed7   : > { %v3589_v29 = vpop.f32.mrf.mxu1  ;;  %8558 = vmatprep.subr.mxu0 %v3657_v50 }
 0xed8   : > { %v3608_v30 = vadd.f32 %v7790_v27, %v3599_v28  ;;  %v3598_v31 = vadd.f32 %v3589_v29, %v9823_v52  ;;  %8559 = vmatpush3.msra.mxu0 %v3657_v50 }
 0xeda   : > { %v3607_v32 = vadd.f32 %v7790_v27, %v3598_v31  ;;  %v3610_v33 = vadd.f32 %v3608_v30, %v9657_v5 }
 0xedc   : > { %v3617_v34 = vsel %vm3616_vm5, %v3610_v33, 0.0  ;;  %v3609_v35 = vadd.f32 %v3607_v32, %v9649_v2 }
 0xedd   : > { %3618 = vadd.xlane.f32.xlu1 %v3617_v34  ;;  %v7798_v34 = vld [vmem:[%s10441_s7] ss:$0 sm:$0xff] }
 0xede   : > { %v3613_v36 = vsel %vm1443_vm0, %v3609_v35, 0.0 }
 0xedf   : > { %3614 = vadd.xlane.f32.xlu0 %v3613_v36 }
 0xf66   : > { %v3619_v37 = vpop.xlane.xlu1 %3618 }
 0xf67   : > { %v3622_v38 = vmul.f32 0.03125, %v3619_v37 }
 0xf68   : > { %v3615_v39 = vpop.xlane.xlu0 %3614 }
 0xf69   : > { %v3624_v40 = vsub.f32 %v3610_v33, %v3622_v38  ;;  %v3621_v41 = vmul.f32 0.03125, %v3615_v39 }
 0xf6b   : > { %v3623_v42 = vsub.f32 %v3609_v35, %v3621_v41  ;;  %v3626_v43 = vmul.f32 %v3624_v40, %v3624_v40 }
 0xf6d   : > { %v3630_v5 = vsel %vm3616_vm5, %v3626_v43, 0.0  ;;  %v3625_v44 = vmul.f32 %v3623_v42, %v3623_v42 }
 0xf6e   : > { %3631 = vadd.xlane.f32.xlu1 %v3630_v5 }
 0xf6f   : > { %v3627_v2 = vsel %vm1443_vm0, %v3625_v44, 0.0 }
 0xf70   : > { %3628 = vadd.xlane.f32.xlu0 %v3627_v2 }
 0xff7   : > { %v3632_v51 = vpop.xlane.xlu1 %3631 }
 0xff8   : > { %v3634_v52 = vmul.f32 0.03125, %v3632_v51 }
 0xff9   : > { %v3629_v53 = vpop.xlane.xlu0 %3628 }
 0xffa   : > { %v3636_v54 = vadd.f32 1e-05, %v3634_v52  ;;  %v3633_v57 = vmul.f32 0.03125, %v3629_v53  ;;  %v7804_v53 = vld [vmem:[%s9353_s9 + $0x98] sm:$0xff] }
 0xffb   : > { %8598 = vmatprep.subr.mxu0 %v7804_v53 }
 0xffc   : > { %9065 = vrsqrt.f32 %v3636_v54  ;;  %v3635_v58 = vadd.f32 1e-05, %v3633_v57  ;;  %v7803_v54 = vld [vmem:[%s9353_s9 + $0x90] sm:$0xff]  ;;  %v7802_v57 = vld [vmem:[%s9353_s9 + $0x88] sm:$0xff] }
 0xffe   : > { %9067 = vrsqrt.f32 %v3635_v58  ;;  %v7801_v58 = vld [vmem:[%s9353_s9 + $0x80] sm:$0xff] }
0x1009   : > { %v9066_v59 = vpop.eup %9065 }
0x100a   : > { %v3640_v49 = vmul.f32 %v9066_v59, %v3624_v40  ;;  %v7812_v59 = vld [vmem:[%s9363_s17 + $0x98] sm:$0xff] }
0x100b   : > { %v9068_v55 = vpop.eup %9067 }
0x100c   : > { %v3639_v56 = vmul.f32 %v9068_v55, %v3623_v42  ;;  %v3648_v60 = vmul.f32 %v7791_v47, %v3640_v49 }
0x100e   : > { %v3647_v62 = vmul.f32 %v7791_v47, %v3639_v56  ;;  %v9866_v0 = vadd.f32 %v7792_v61, %v3648_v60 }
0x1010   : > { %v9864_v63 = vadd.f32 %v7792_v61, %v3647_v62 }
0x1012   : > { %8560 = vmatprep.mubr.msk.f32.mxu0 %vm1443_vm0, %v9864_v63 }
0x1013   : > { %8561 = vmatmul.mubr.msk.f32.vlgmr.msra.gmra.mxu0 %vm1443_vm0, %v9866_v0 }
0x1014   : > { %8599 = vmatpush3.msra.mxu0 %v7804_v53 }
0x1015   : > { %8600 = vmatprep.subr.mxu0 %v7803_v54 }
0x1016   : > { %8601 = vmatpush3.msra.mxu0 %v7803_v54 }
0x1017   : > { %8602 = vmatprep.subr.mxu0 %v7802_v57 }
0x1018   : > { %8603 = vmatpush3.msra.mxu0 %v7802_v57  ;;  %v7836_v57 = vld [vmem:[%s9353_s9 + $0xb8] sm:$0xff] }
0x1019   : > { %8604 = vmatprep.subr.mxu0 %v7801_v58 }
0x101a   : > { %8605 = vmatpush3.msra.mxu0 %v7801_v58 }
0x101b   : > { %8609 = vmatprep.subr.mxu0 %v7812_v59 }
0x10d3   : > { %v8562_v20 = vpop.f32.mrf.mxu0 }
0x10d4   : > { %v3746_v21 = vadd.f32 %v8562_v20, %v7793_v19 }
0x10d5   : > { %v3740_v22 = vpop.f32.mrf.mxu0 }
0x10d6   : > { %v7797_v23 = vmul.f32 -1.442695, %v3746_v21  ;;  %v3741_v24 = vadd.f32 %v7793_v19, %v3740_v22 }
0x10d8   : > { %9069 = vpow2.f32 %v7797_v23  ;;  %v7796_v25 = vmul.f32 -1.442695, %v3741_v24 }
0x10da   : > { %9071 = vpow2.f32 %v7796_v25 }
0x10e5   : > { %v9070_v26 = vpop.eup %9069 }
0x10e6   : > { %v3756_v27 = vadd.f32 1.0, %v9070_v26  ;;  %v7822_v26 = vld [vmem:[%s9378_s29 + $0x4] ss:$0 sm:$0xff] }
0x10e7   : > { %v9072_v28 = vpop.eup %9071 }
0x10e8   : > { %v3755_v29 = vadd.f32 1.0, %v9072_v28  ;;  %9073 = vrcp.f32 %v3756_v27  ;;  %v7844_v27 = vld [vmem:[%s9363_s17 + $0xb8] sm:$0xff] }
0x10ea   : > { %9075 = vrcp.f32 %v3755_v29 }
0x10f5   : > { %v9074_v30 = vpop.eup %9073 }
0x10f6   : > { %v3762_v33 = vmul.f32 %v9074_v30, %v3746_v21  ;;  %v7814_v21 = vld [vmem:[%s9368_s21 + $0x4] ss:$0 sm:$0xff] }
0x10f7   : > { %v9076_v31 = vpop.eup %9075 }
0x10f8   : > { %v3761_v32 = vmul.f32 %v9076_v31, %v3741_v24 }
0x10fa   : > { %8595 = vmatprep.mubr.f32.mxu1 %v3761_v32 }
0x10fb   : > { %8596 = vmatmul.mubr.f32.vlgmr.msra.gmra.mxu1 %v3762_v33  ;;  %v7843_v33 = vld [vmem:[%s9363_s17 + $0xb0] sm:$0xff] }
0x11bb   : > { %v8597_v35 = vpop.f32.mrf.mxu1 }
0x11bc   : > { %v3858_v36 = vadd.f32 %v8597_v35, %v7798_v34  ;;  %v7841_v35 = vld [vmem:[%s9363_s17 + $0xa0] sm:$0xff] }
0x11bd   : > { %v3852_v37 = vpop.f32.mrf.mxu1 }
0x11be   : > { %v3853_v38 = vadd.f32 %v7798_v34, %v3852_v37  ;;  %v3862_v39 = vadd.f32 %v3858_v36, %v9866_v0  ;;  %v7842_v34 = vld [vmem:[%s9363_s17 + $0xa8] sm:$0xff] }
0x11c0   : > { %v3868_v40 = vsel %vm3616_vm5, %v3862_v39, 0.0  ;;  %v3861_v41 = vadd.f32 %v3853_v38, %v9864_v63  ;;  %v7799_v63 = vld [vmem:[%s10442_s10] ss:$0 sm:$0xff] }
0x11c1   : > { %3869 = vadd.xlane.f32.xlu1 %v3868_v40  ;;  %v7846_v40 = vld [vmem:[%s9368_s21 + $0x5] ss:$0 sm:$0xff] }
0x11c2   : > { %v3865_v42 = vsel %vm1443_vm0, %v3861_v41, 0.0 }
0x11c3   : > { %3866 = vadd.xlane.f32.xlu0 %v3865_v42 }
0x124a   : > { %v3870_v43 = vpop.xlane.xlu1 %3869 }
0x124b   : > { %v3872_v5 = vmul.f32 0.03125, %v3870_v43 }
0x124c   : > { %v3867_v44 = vpop.xlane.xlu0 %3866 }
0x124d   : > { %v3874_v2 = vsub.f32 %v3862_v39, %v3872_v5  ;;  %v3871_v45 = vmul.f32 0.03125, %v3867_v44 }
0x124f   : > { %v3873_v46 = vsub.f32 %v3861_v41, %v3871_v45  ;;  %v3876_v48 = vmul.f32 %v3874_v2, %v3874_v2 }
0x1251   : > { %v3880_v50 = vsel %vm3616_vm5, %v3876_v48, 0.0  ;;  %v3875_v51 = vmul.f32 %v3873_v46, %v3873_v46 }
0x1252   : > { %3881 = vadd.xlane.f32.xlu1 %v3880_v50 }
0x1253   : > { %v3877_v52 = vsel %vm1443_vm0, %v3875_v51, 0.0 }
0x1254   : > { %3878 = vadd.xlane.f32.xlu0 %v3877_v52 }
0x12db   : > { %v3882_v47 = vpop.xlane.xlu1 %3881 }
0x12dc   : > { %v3884_v49 = vmul.f32 0.03125, %v3882_v47 }
0x12dd   : > { %v3879_v55 = vpop.xlane.xlu0 %3878 }
0x12de   : > { %v3886_v56 = vadd.f32 1e-05, %v3884_v49  ;;  %v3883_v60 = vmul.f32 0.03125, %v3879_v55 }
0x12e0   : > { %9077 = vrsqrt.f32 %v3886_v56  ;;  %v3885_v61 = vadd.f32 1e-05, %v3883_v60  ;;  %v7835_v60 = vld [vmem:[%s9353_s9 + $0xb0] sm:$0xff] }
0x12e2   : > { %9079 = vrsqrt.f32 %v3885_v61  ;;  %v7834_v61 = vld [vmem:[%s9353_s9 + $0xa8] sm:$0xff] }
0x12ed   : > { %v9078_v62 = vpop.eup %9077 }
0x12ee   : > { %v3890_v0 = vmul.f32 %v9078_v62, %v3874_v2  ;;  %v7833_v62 = vld [vmem:[%s9353_s9 + $0xa0] sm:$0xff] }
0x12ef   : > { %v9080_v1 = vpop.eup %9079 }
0x12f0   : > { %v3889_v3 = vmul.f32 %v9080_v1, %v3873_v46  ;;  %v3898_v4 = vmul.f32 %v7799_v63, %v3890_v0  ;;  %v7851_v0 = vld [vmem:[%s9373_s25 + $0xb0] sm:$0xff]  ;;  %v7850_v1 = vld [vmem:[%s9373_s25 + $0xa8] sm:$0xff] }
0x12f2   : > { %v3897_v7 = vmul.f32 %v7799_v63, %v3889_v3  ;;  %v9905_v9 = vadd.f32 %v7800_v6, %v3898_v4  ;;  %v7852_v63 = vld [vmem:[%s9373_s25 + $0xb8] sm:$0xff]  ;;  %v7849_v3 = vld [vmem:[%s9373_s25 + $0xa0] sm:$0xff] }
0x12f4   : > { %v9903_v8 = vadd.f32 %v7800_v6, %v3897_v7 }
0x12f6   : > { %8606 = vmatprep.mubr.msk.f32.mxu0 %vm1443_vm0, %v9903_v8 }
0x12f7   : > { %8607 = vmatmul.mubr.msk.f32.vlgmr.msra.gmra.mxu0 %vm1443_vm0, %v9905_v9 }
0x12f8   : > { %8610 = vmatpush3.msra.mxu0 %v7812_v59  ;;  %8617 = vmatprep.mubr.msk.f32.mxu0 %vm1443_vm0, %v9903_v8 }
0x12f9   : > { %8611 = vmatprep.subr.mxu0 %v7811_v10 }
0x12fa   : > { %8612 = vmatpush3.msra.mxu0 %v7811_v10  ;;  %v7838_v10 = vld [vmem:[%s9358_s13 + $0x5] ss:$0 sm:$0xff] }
0x12fb   : > { %8613 = vmatprep.subr.mxu0 %v7810_v11 }
0x12fc   : > { %8614 = vmatpush3.msra.mxu0 %v7810_v11 }
0x12fd   : > { %8615 = vmatprep.subr.mxu0 %v7809_v12 }
0x12fe   : > { %8616 = vmatpush3.msra.mxu0 %v7809_v12 }
0x12ff   : > { %8618 = vmatmul.mubr.msk.f32.vlgmr.msra.gmra.mxu0 %vm1443_vm0, %v9905_v9  ;;  %8620 = vmatprep.subr.mxu0 %v7820_v13 }
0x1300   : > { %8621 = vmatpush3.msra.mxu0 %v7820_v13  ;;  %8628 = vmatprep.mubr.msk.f32.mxu0 %vm1443_vm0, %v9903_v8 }
0x1301   : > { %8622 = vmatprep.subr.mxu0 %v7819_v14 }
0x1302   : > { %8623 = vmatpush3.msra.mxu0 %v7819_v14  ;;  %v7854_v14 = vld [vmem:[%s9378_s29 + $0x5] ss:$0 sm:$0xff] }
0x1303   : > { %8624 = vmatprep.subr.mxu0 %v7818_v15 }
0x1304   : > { %8625 = vmatpush3.msra.mxu0 %v7818_v15 }
0x1305   : > { %8626 = vmatprep.subr.mxu0 %v7817_v16 }
0x1306   : > { %8627 = vmatpush3.msra.mxu0 %v7817_v16 }
0x1307   : > { %8629 = vmatmul.mubr.msk.f32.vlgmr.msra.gmra.mxu0 %vm1443_vm0, %v9905_v9 }
0x13b7   : > { %v8608_v17 = vpop.f32.mrf.mxu0 }
0x13b8   : > { %v3998_v29 = vadd.f32 %v8608_v17, %v7806_v18 }
0x13b9   : > { %v3992_v19 = vpop.f32.mrf.mxu0 }
0x13ba   : > { %v3993_v20 = vadd.f32 %v7806_v18, %v3992_v19 }
0x13bc   : > { %8635 = vmatprep.mubr.msk.f32.mxu0 %vm1697_vm1, %v3993_v20 }
0x13bf   : > { %v8619_v22 = vpop.f32.mrf.mxu0 }
0x13c0   : > { %v4086_v23 = vadd.f32 %v8619_v22, %v7814_v21 }
0x13c1   : > { %v4080_v24 = vpop.f32.mrf.mxu0 }
0x13c2   : > { %v4081_v25 = vadd.f32 %v7814_v21, %v4080_v24  ;;  %8631 = vmatprep.subr.msk.mxu0 %vm1697_vm1, %v4086_v23 }
0x13c3   : > { %8632 = vmatpush3.xpose.msk.msra.mxu0 %vm1697_vm1, %v4086_v23 }
0x13c4   : > { %8633 = vmatprep.subr.msk.mxu0 %vm1697_vm1, %v4081_v25 }
0x13c7   : > { %v8630_v28 = vpop.f32.mrf.mxu0  ;;  %8634 = vmatpush3.xpose.msk.msra.mxu0 %vm1697_vm1, %v4081_v25 }
0x13c8   : > { %v4174_v30 = vadd.f32 %v8630_v28, %v7822_v26  ;;  %8656 = vmatprep.subr.mxu0 %v7844_v27 }
0x13c9   : > { %v4168_v31 = vpop.f32.mrf.mxu0 }
0x13ca   : > { %v4169_v32 = vadd.f32 %v7822_v26, %v4168_v31  ;;  %8636 = vmatmul.mubr.msk.f32.vlgmr.msra.gmra.mxu0 %vm1697_vm1, %v3998_v29  ;;  %8638 = vmatprep.subr.msk.mxu1 %vm1815_vm4, %v4174_v30 }
0x13cb   : > { %8639 = vmatpush3.msk.msra.mxu1 %vm1815_vm4, %v4174_v30  ;;  %8657 = vmatpush3.msra.mxu0 %v7844_v27 }
0x13cc   : > { %8664 = vmatprep.mubr.msk.f32.mxu0 %vm1443_vm0, %v9903_v8  ;;  %8640 = vmatprep.subr.mxu1 %v4169_v32 }
0x13cd   : > { %8658 = vmatprep.subr.mxu0 %v7843_v33  ;;  %8641 = vmatpush3.msra.mxu1 %v4169_v32 }
0x13ce   : > { %8659 = vmatpush3.msra.mxu0 %v7843_v33  ;;  %8645 = vmatprep.subr.mxu1 %v7836_v57  ;;  %v7832_v33 = vld [vmem:[%s10430_s3 + $0x20] sm:$0xff] }
0x13cf   : > { %8660 = vmatprep.subr.mxu0 %v7842_v34 }
0x13d0   : > { %8661 = vmatpush3.msra.mxu0 %v7842_v34  ;;  %v7864_v34 = vld [vmem:[%s10430_s3 + $0x28] sm:$0xff] }
0x13d1   : > { %8662 = vmatprep.subr.mxu0 %v7841_v35 }
0x13d2   : > { %8663 = vmatpush3.msra.mxu0 %v7841_v35 }
0x13d3   : > { %8665 = vmatmul.mubr.msk.f32.vlgmr.msra.gmra.mxu0 %vm1443_vm0, %v9905_v9 }
0x148a   : > { %v8637_v36 = vpop.f32.mrf.mxu0 }
0x148b   : > { %v4267_v37 = vsel %vm1789_vm3, %v8637_v36, -inf }
0x148c   : > { %4268 = vmax.xlane.f32.xlu1 %v4267_v37  ;;  %v4255_v38 = vpop.f32.mrf.mxu0 }
0x148d   : > { %v4264_v39 = vsel %vm1785_vm2, %v4255_v38, -inf }
0x148e   : > { %4265 = vmax.xlane.f32.xlu0 %v4264_v39 }
0x1493   : > { %v8666_v41 = vpop.f32.mrf.mxu0 }
0x1494   : > { %v4545_v42 = vadd.f32 %v8666_v41, %v7846_v40  ;;  %v7880_v41 = vld [vmem:[%s9363_s17 + $0xd8] sm:$0xff] }
0x1495   : > { %v4539_v43 = vpop.f32.mrf.mxu0 }
0x1496   : > { %v4540_v5 = vadd.f32 %v7846_v40, %v4539_v43  ;;  %8678 = vmatprep.subr.msk.mxu0 %vm1697_vm1, %v4545_v42  ;;  %v7878_v43 = vld [vmem:[%s9363_s17 + $0xc8] sm:$0xff] }
0x1497   : > { %8679 = vmatpush3.xpose.msk.msra.mxu0 %vm1697_vm1, %v4545_v42  ;;  %v7879_v42 = vld [vmem:[%s9363_s17 + $0xd0] sm:$0xff] }
0x1498   : > { %8680 = vmatprep.subr.msk.mxu0 %vm1697_vm1, %v4540_v5 }
0x149b   : > { %8681 = vmatpush3.xpose.msk.msra.mxu0 %vm1697_vm1, %v4540_v5  ;;  %v7877_v5 = vld [vmem:[%s9363_s17 + $0xc0] sm:$0xff] }
0x149c   : > { %8692 = vmatprep.subr.mxu0 %v7864_v34 }
0x1515   : > { %v4269_v44 = vpop.xlane.xlu1 %4268 }
0x1516   : > { %v4271_v2 = vsub.f32 %v8637_v36, %v4269_v44  ;;  %v7872_v44 = vld [vmem:[%s9353_s9 + $0xd8] sm:$0xff] }
0x1517   : > { %v4266_v45 = vpop.xlane.xlu0 %4265 }
0x1518   : > { %v4274_v46 = vmul.f32 1.442695, %v4271_v2  ;;  %v4270_v48 = vsub.f32 %v4255_v38, %v4266_v45 }
0x151a   : > { %9081 = vpow2.f32 %v4274_v46  ;;  %v4272_v50 = vmul.f32 1.442695, %v4270_v48  ;;  %v7871_v46 = vld [vmem:[%s9353_s9 + $0xd0] sm:$0xff]  ;;  %v7870_v48 = vld [vmem:[%s9353_s9 + $0xc8] sm:$0xff] }
0x151c   : > { %9083 = vpow2.f32 %v4272_v50 }
0x1527   : > { %v9082_v51 = vpop.eup %9081 }
0x1528   : > { %v4279_v52 = vsel %vm1789_vm3, %v9082_v51, 0.0 }
0x1529   : > { %v9084_v53 = vpop.eup %9083  ;;  %4280 = vadd.xlane.f32.xlu1 %v4279_v52  ;;  %v7888_v52 = vld [vmem:[%s9373_s25 + $0xd8] sm:$0xff] }
0x152a   : > { %v4276_v54 = vsel %vm1785_vm2, %v9084_v53, 0.0 }
0x152b   : > { %4277 = vadd.xlane.f32.xlu0 %v4276_v54  ;;  %v7882_v54 = vld [vmem:[%s9368_s21 + $0x6] ss:$0 sm:$0xff] }
0x15b2   : > { %v4281_v58 = vpop.xlane.xlu1 %4280 }
0x15b3   : > { %9085 = vrcp.f32 %v4281_v58 }
0x15b4   : > { %v4278_v59 = vpop.xlane.xlu0 %4277 }
0x15b5   : > { %9087 = vrcp.f32 %v4278_v59 }
0x15c0   : > { %v9086_v47 = vpop.eup %9085 }
0x15c1   : > { %v4285_v56 = vmul.f32 %v9086_v47, %v9082_v51  ;;  %v7869_v51 = vld [vmem:[%s9353_s9 + $0xc0] sm:$0xff]  ;;  %v7886_v47 = vld [vmem:[%s9373_s25 + $0xc8] sm:$0xff] }
0x15c2   : > { %v9088_v49 = vpop.eup %9087 }
0x15c3   : > { %v4284_v55 = vmul.f32 %v9088_v49, %v9084_v53 }
0x15c5   : > { %8642 = vmatprep.mubr.msk.f32.mxu1 %vm1785_vm2, %v4284_v55 }
0x15c6   : > { %8643 = vmatmul.mubr.msk.f32.vlgmr.msra.gmra.mxu1 %vm1785_vm2, %v4285_v56  ;;  %v7885_v56 = vld [vmem:[%s9373_s25 + $0xc0] sm:$0xff] }
0x15c7   : > { %8646 = vmatpush3.msra.mxu1 %v7836_v57  ;;  %8653 = vmatprep.mubr.msk.f32.mxu1 %vm1443_vm0, %v9903_v8  ;;  %v7887_v57 = vld [vmem:[%s9373_s25 + $0xd0] sm:$0xff] }
0x15c8   : > { %8647 = vmatprep.subr.mxu1 %v7835_v60 }
0x15c9   : > { %8648 = vmatpush3.msra.mxu1 %v7835_v60 }
0x15ca   : > { %8649 = vmatprep.subr.mxu1 %v7834_v61 }
0x15cb   : > { %8650 = vmatpush3.msra.mxu1 %v7834_v61 }
0x15cc   : > { %8651 = vmatprep.subr.mxu1 %v7833_v62 }
0x15cd   : > { %8652 = vmatpush3.msra.mxu1 %v7833_v62 }
0x15ce   : > { %8654 = vmatmul.mubr.msk.f32.vlgmr.msra.gmra.mxu1 %vm1443_vm0, %v9905_v9  ;;  %8667 = vmatprep.subr.mxu1 %v7852_v63 }
0x15cf   : > { %8668 = vmatpush3.msra.mxu1 %v7852_v63  ;;  %8675 = vmatprep.mubr.msk.f32.mxu1 %vm1443_vm0, %v9903_v8  ;;  %v7874_v63 = vld [vmem:[%s9358_s13 + $0x6] ss:$0 sm:$0xff] }
0x15d0   : > { %8669 = vmatprep.subr.mxu1 %v7851_v0 }
0x15d1   : > { %8670 = vmatpush3.msra.mxu1 %v7851_v0 }
0x15d2   : > { %8671 = vmatprep.subr.mxu1 %v7850_v1 }
0x15d3   : > { %8672 = vmatpush3.msra.mxu1 %v7850_v1 }
0x15d4   : > { %8673 = vmatprep.subr.mxu1 %v7849_v3 }
0x15d5   : > { %8674 = vmatpush3.msra.mxu1 %v7849_v3 }
0x15d6   : > { %8676 = vmatmul.mubr.msk.f32.vlgmr.msra.gmra.mxu1 %vm1443_vm0, %v9905_v9 }
0x1686   : > { %v8644_v4 = vpop.f32.mrf.mxu1 }
0x1688   : > { %v4361_v6 = vpop.f32.mrf.mxu1 }
0x168e   : > { %v8655_v7 = vpop.f32.mrf.mxu1 }
0x168f   : > { %v4457_v13 = vadd.f32 %v8655_v7, %v7838_v10 }
0x1690   : > { %v4451_v11 = vpop.f32.mrf.mxu1 }
0x1691   : > { %v4452_v12 = vadd.f32 %v7838_v10, %v4451_v11 }
0x1693   : > { %8682 = vmatprep.mubr.msk.f32.mxu0 %vm1697_vm1, %v4452_v12 }
0x1694   : > { %8683 = vmatmul.mubr.msk.f32.vlgmr.msra.gmra.mxu0 %vm1697_vm1, %v4457_v13 }
0x1695   : > { %8693 = vmatpush3.msra.mxu0 %v7864_v34  ;;  %v7905_v34 = vld [vmem:[%s9353_s9 + $0xf0] sm:$0xff] }
0x1696   : > { %v8677_v15 = vpop.f32.mrf.mxu1  ;;  %8702 = vmatprep.subr.mxu0 %v7872_v44 }
0x1697   : > { %v4633_v16 = vadd.f32 %v8677_v15, %v7854_v14 }
0x1698   : > { %v4627_v17 = vpop.f32.mrf.mxu1 }
0x1699   : > { %v4628_v18 = vadd.f32 %v7854_v14, %v4627_v17  ;;  %8685 = vmatprep.subr.msk.mxu1 %vm1815_vm4, %v4633_v16 }
0x169a   : > { %8686 = vmatpush3.msk.msra.mxu1 %vm1815_vm4, %v4633_v16 }
0x169b   : > { %8687 = vmatprep.subr.mxu1 %v4628_v18 }
0x169c   : > { %8688 = vmatpush3.msra.mxu1 %v4628_v18 }
0x169d   : > { %8697 = vmatprep.subr.mxu1 %v7832_v33 }
0x1754   : > { %v8684_v19 = vpop.f32.mrf.mxu0 }
0x1755   : > { %v4726_v20 = vsel %vm1789_vm3, %v8684_v19, -inf }
0x1756   : > { %4727 = vmax.xlane.f32.xlu1 %v4726_v20  ;;  %v4714_v21 = vpop.f32.mrf.mxu0 }
0x1757   : > { %v4723_v22 = vsel %vm1785_vm2, %v4714_v21, -inf }
0x1758   : > { %4724 = vmax.xlane.f32.xlu0 %v4723_v22 }
0x17df   : > { %v4728_v23 = vpop.xlane.xlu1 %4727 }
0x17e0   : > { %v4730_v24 = vsub.f32 %v8684_v19, %v4728_v23 }
0x17e1   : > { %v4725_v25 = vpop.xlane.xlu0 %4724 }
0x17e2   : > { %v4733_v26 = vmul.f32 1.442695, %v4730_v24  ;;  %v4729_v27 = vsub.f32 %v4714_v21, %v4725_v25 }
0x17e4   : > { %9089 = vpow2.f32 %v4733_v26  ;;  %v4731_v28 = vmul.f32 1.442695, %v4729_v27  ;;  %v7906_v26 = vld [vmem:[%s9353_s9 + $0xf8] sm:$0xff]  ;;  %v7900_v27 = vld [vmem:[%s10430_s3 + $0x30] sm:$0xff] }
0x17e6   : > { %9091 = vpow2.f32 %v4731_v28 }
0x17f1   : > { %v9090_v29 = vpop.eup %9089 }
0x17f2   : > { %v4738_v30 = vsel %vm1789_vm3, %v9090_v29, 0.0 }
0x17f3   : > { %v9092_v31 = vpop.eup %9091  ;;  %4739 = vadd.xlane.f32.xlu1 %v4738_v30 }
0x17f4   : > { %v4735_v32 = vsel %vm1785_vm2, %v9092_v31, 0.0 }
0x17f5   : > { %4736 = vadd.xlane.f32.xlu0 %v4735_v32 }
0x187c   : > { %v4740_v35 = vpop.xlane.xlu1 %4739 }
0x187d   : > { %9093 = vrcp.f32 %v4740_v35  ;;  %v7904_v35 = vld [vmem:[%s9353_s9 + $0xe8] sm:$0xff] }
0x187e   : > { %v4737_v36 = vpop.xlane.xlu0 %4736 }
0x187f   : > { %9095 = vrcp.f32 %v4737_v36  ;;  %v7903_v36 = vld [vmem:[%s9353_s9 + $0xe0] sm:$0xff] }
0x188a   : > { %v9094_v37 = vpop.eup %9093 }
0x188b   : > { %v4744_v40 = vmul.f32 %v9094_v37, %v9090_v29  ;;  %v7922_v37 = vld [vmem:[%s9373_s25 + $0xf8] sm:$0xff] }
0x188c   : > { %v9096_v38 = vpop.eup %9095 }
0x188d   : > { %v4743_v39 = vmul.f32 %v9096_v38, %v9092_v31  ;;  %v7921_v38 = vld [vmem:[%s9373_s25 + $0xf0] sm:$0xff] }
0x188f   : > { %8689 = vmatprep.mubr.msk.f32.mxu1 %vm1785_vm2, %v4743_v39  ;;  %v7920_v39 = vld [vmem:[%s9373_s25 + $0xe8] sm:$0xff] }
0x1890   : > { %8690 = vmatmul.mubr.msk.f32.vlgmr.msra.gmra.mxu1 %vm1785_vm2, %v4744_v40  ;;  %v7919_v40 = vld [vmem:[%s9373_s25 + $0xe0] sm:$0xff] }
0x1891   : > { %8699 = vmatprep.mubr.msk.f32.mxu1 %vm1697_vm1, %v4361_v6  ;;  %8698 = vmatpush3.msra.mxu1 %v7832_v33 }
0x1892   : > { %8713 = vmatprep.subr.mxu1 %v7880_v41 }
0x1894   : > { %8700 = vmatmul.mubr.msk.f32.vlgmr.msra.gmra.mxu1 %vm1697_vm1, %v8644_v4  ;;  %v7890_v4 = vld [vmem:[%s9378_s29 + $0x6] ss:$0 sm:$0xff] }
0x1895   : > { %8714 = vmatpush3.msra.mxu1 %v7880_v41  ;;  %8721 = vmatprep.mubr.msk.f32.mxu1 %vm1443_vm0, %v9903_v8  ;;  %v7914_v41 = vld [vmem:[%s9363_s17 + $0xf8] sm:$0xff] }
0x1896   : > { %8715 = vmatprep.subr.mxu1 %v7879_v42 }
0x1897   : > { %8716 = vmatpush3.msra.mxu1 %v7879_v42 }
0x1898   : > { %8717 = vmatprep.subr.mxu1 %v7878_v43 }
0x1899   : > { %8718 = vmatpush3.msra.mxu1 %v7878_v43 }
0x189a   : > { %8719 = vmatprep.subr.mxu1 %v7877_v5 }
0x189b   : > { %8720 = vmatpush3.msra.mxu1 %v7877_v5  ;;  %v7913_v5 = vld [vmem:[%s9363_s17 + $0xf0] sm:$0xff] }
0x189c   : > { %8722 = vmatmul.mubr.msk.f32.vlgmr.msra.gmra.mxu1 %vm1443_vm0, %v9905_v9 }
0x1950   : > { %v8691_v2 = vpop.f32.mrf.mxu1 }
0x1952   : > { %v4820_v45 = vpop.f32.mrf.mxu1 }
0x1953   : > { %8694 = vmatprep.mubr.msk.f32.mxu0 %vm1697_vm1, %v4820_v45  ;;  %v7911_v45 = vld [vmem:[%s9363_s17 + $0xe0] sm:$0xff] }
0x1954   : > { %8695 = vmatmul.mubr.msk.f32.vlgmr.msra.gmra.mxu0 %vm1697_vm1, %v8691_v2  ;;  %v10003_v50 = vpop.f32.mrf.mxu1  ;;  %v7908_v2 = vld [vmem:[%s9358_s13 + $0x7] ss:$0 sm:$0xff] }
0x1955   : > { %8703 = vmatpush3.msra.mxu0 %v7872_v44  ;;  %8710 = vmatprep.mubr.msk.f32.mxu0 %vm1443_vm0, %v9903_v8  ;;  %v7912_v44 = vld [vmem:[%s9363_s17 + $0xe8] sm:$0xff] }
0x1956   : > { %8704 = vmatprep.subr.mxu0 %v7871_v46  ;;  %v10007_v53 = vpop.f32.mrf.mxu1 }
0x1957   : > { %8705 = vmatpush3.msra.mxu0 %v7871_v46 }
0x1958   : > { %8706 = vmatprep.subr.mxu0 %v7870_v48 }
0x1959   : > { %8707 = vmatpush3.msra.mxu0 %v7870_v48 }
0x195a   : > { %8708 = vmatprep.subr.mxu0 %v7869_v51 }
0x195b   : > { %8709 = vmatpush3.msra.mxu0 %v7869_v51 }
0x195c   : > { %8711 = vmatmul.mubr.msk.f32.vlgmr.msra.gmra.mxu0 %vm1443_vm0, %v9905_v9  ;;  %v8723_v58 = vpop.f32.mrf.mxu1  ;;  %8724 = vmatprep.subr.mxu0 %v7888_v52 }
0x195d   : > { %v5166_v59 = vadd.f32 %v8723_v58, %v7882_v54  ;;  %8725 = vmatpush3.msra.mxu0 %v7888_v52  ;;  %8732 = vmatprep.mubr.msk.f32.mxu0 %vm1443_vm0, %v9903_v8 }
0x195e   : > { %v5160_v49 = vpop.f32.mrf.mxu1  ;;  %8726 = vmatprep.subr.mxu0 %v7887_v57 }
0x195f   : > { %v5161_v55 = vadd.f32 %v7882_v54, %v5160_v49  ;;  %8727 = vmatpush3.msra.mxu0 %v7887_v57  ;;  %8735 = vmatprep.subr.msk.mxu1 %vm1697_vm1, %v5166_v59  ;;  %v7924_v54 = vld [vmem:[%s9378_s29 + $0x7] ss:$0 sm:$0xff] }
0x1960   : > { %8728 = vmatprep.subr.mxu0 %v7886_v47  ;;  %8736 = vmatpush3.xpose.msk.msra.mxu1 %vm1697_vm1, %v5166_v59 }
0x1961   : > { %8729 = vmatpush3.msra.mxu0 %v7886_v47  ;;  %8737 = vmatprep.subr.msk.mxu1 %vm1697_vm1, %v5161_v55 }
0x1962   : > { %8730 = vmatprep.subr.mxu0 %v7885_v56 }
0x1963   : > { %8731 = vmatpush3.msra.mxu0 %v7885_v56 }
0x1964   : > { %8733 = vmatmul.mubr.msk.f32.vlgmr.msra.gmra.mxu0 %vm1443_vm0, %v9905_v9  ;;  %8738 = vmatpush3.xpose.msk.msra.mxu1 %vm1697_vm1, %v5161_v55 }
0x1965   : > { %8749 = vmatprep.subr.mxu1 %v7900_v27 }
0x1a14   : > { %v10023_v60 = vpop.f32.mrf.mxu0 }
0x1a15   : > { %v4990_v49 = vadd.f32 %v10003_v50, %v10023_v60 }
0x1a16   : > { %v10025_v61 = vpop.f32.mrf.mxu0 }
0x1a17   : > { %v4985_v56 = vadd.f32 %v10007_v53, %v10025_v61 }
0x1a1c   : > { %v8712_v62 = vpop.f32.mrf.mxu0 }
0x1a1d   : > { %v5078_v3 = vadd.f32 %v8712_v62, %v7874_v63 }
0x1a1e   : > { %v5072_v0 = vpop.f32.mrf.mxu0 }
0x1a1f   : > { %v5073_v1 = vadd.f32 %v7874_v63, %v5072_v0 }
0x1a21   : > { %8739 = vmatprep.mubr.msk.f32.mxu1 %vm1697_vm1, %v5073_v1  ;;  %v7916_v1 = vld [vmem:[%s9368_s21 + $0x7] ss:$0 sm:$0xff] }
0x1a22   : > { %8740 = vmatmul.mubr.msk.f32.vlgmr.msra.gmra.mxu1 %vm1697_vm1, %v5078_v3 }
0x1a23   : > { %8750 = vmatpush3.msra.mxu1 %v7900_v27 }
0x1a24   : > { %v8734_v6 = vpop.f32.mrf.mxu0  ;;  %8765 = vmatprep.subr.mxu1 %v7914_v41 }
0x1a25   : > { %v5254_v7 = vadd.f32 %v8734_v6, %v7890_v4 }
0x1a26   : > { %v5248_v10 = vpop.f32.mrf.mxu0 }
0x1a27   : > { %v5249_v11 = vadd.f32 %v7890_v4, %v5248_v10  ;;  %8742 = vmatprep.subr.msk.mxu0 %vm1815_vm4, %v5254_v7 }
0x1a28   : > { %8743 = vmatpush3.msk.msra.mxu0 %vm1815_vm4, %v5254_v7 }
0x1a29   : > { %8744 = vmatprep.subr.mxu0 %v5249_v11 }
0x1a2a   : > { %8745 = vmatpush3.msra.mxu0 %v5249_v11 }
0x1a2b   : > { %8754 = vmatprep.subr.mxu0 %v7906_v26 }
0x1ae2   : > { %v8741_v12 = vpop.f32.mrf.mxu1 }
0x1ae3   : > { %v5347_v13 = vsel %vm1789_vm3, %v8741_v12, -inf }
0x1ae4   : > { %5348 = vmax.xlane.f32.xlu1 %v5347_v13  ;;  %v5335_v14 = vpop.f32.mrf.mxu1 }
0x1ae5   : > { %v5344_v15 = vsel %vm1785_vm2, %v5335_v14, -inf }
0x1ae6   : > { %5345 = vmax.xlane.f32.xlu0 %v5344_v15 }
0x1b6d   : > { %v5349_v16 = vpop.xlane.xlu1 %5348 }
0x1b6e   : > { %v5351_v17 = vsub.f32 %v8741_v12, %v5349_v16 }
0x1b6f   : > { %v5346_v18 = vpop.xlane.xlu0 %5345 }
0x1b70   : > { %v5354_v19 = vmul.f32 1.442695, %v5351_v17  ;;  %v5350_v20 = vsub.f32 %v5335_v14, %v5346_v18 }
0x1b72   : > { %9097 = vpow2.f32 %v5354_v19  ;;  %v5352_v21 = vmul.f32 1.442695, %v5350_v20  ;;  %v7934_v20 = vld [vmem:[%s10430_s3 + $0x38] sm:$0xff]  ;;  %s10461_s3 = sld [smem:[#allocation27_spill]] }
0x1b74   : > { %9099 = vpow2.f32 %v5352_v21 }
0x1b7f   : > { %v9098_v22 = vpop.eup %9097 }
0x1b80   : > { %v5359_v23 = vsel %vm1789_vm3, %v9098_v22, 0.0 }
0x1b81   : > { %v9100_v24 = vpop.eup %9099  ;;  %5360 = vadd.xlane.f32.xlu1 %v5359_v23 }
0x1b82   : > { %v5356_v25 = vsel %vm1785_vm2, %v9100_v24, 0.0 }
0x1b83   : > { %5357 = vadd.xlane.f32.xlu0 %v5356_v25 }
0x1c0a   : > { %v5361_v28 = vpop.xlane.xlu1 %5360 }
0x1c0b   : > { %9101 = vrcp.f32 %v5361_v28 }
0x1c0c   : > { %v5358_v29 = vpop.xlane.xlu0 %5357 }
0x1c0d   : > { %9103 = vrcp.f32 %v5358_v29 }
0x1c18   : > { %v9102_v30 = vpop.eup %9101 }
0x1c19   : > { %v5365_v33 = vmul.f32 %v9102_v30, %v9098_v22  ;;  %v7938_v30 = vld [vmem:[%s9388_s8 + $0x1] ss:$0 sm:$0xff] }
0x1c1a   : > { %v9104_v31 = vpop.eup %9103 }
0x1c1b   : > { %v5364_v32 = vmul.f32 %v9104_v31, %v9100_v24 }
0x1c1d   : > { %8746 = vmatprep.mubr.msk.f32.mxu0 %vm1785_vm2, %v5364_v32 }
0x1c1e   : > { %8747 = vmatmul.mubr.msk.f32.vlgmr.msra.gmra.mxu0 %vm1785_vm2, %v5365_v33 }
0x1c1f   : > { %8755 = vmatpush3.msra.mxu0 %v7906_v26  ;;  %8762 = vmatprep.mubr.msk.f32.mxu0 %vm1443_vm0, %v9903_v8 }
0x1c20   : > { %8756 = vmatprep.subr.mxu0 %v7905_v34 }
0x1c21   : > { %8757 = vmatpush3.msra.mxu0 %v7905_v34 }
0x1c22   : > { %8758 = vmatprep.subr.mxu0 %v7904_v35 }
0x1c23   : > { %8759 = vmatpush3.msra.mxu0 %v7904_v35 }
0x1c24   : > { %8760 = vmatprep.subr.mxu0 %v7903_v36 }
0x1c25   : > { %8761 = vmatpush3.msra.mxu0 %v7903_v36 }
0x1c26   : > { %8763 = vmatmul.mubr.msk.f32.vlgmr.msra.gmra.mxu0 %vm1443_vm0, %v9905_v9  ;;  %8776 = vmatprep.subr.mxu0 %v7922_v37 }
0x1c27   : > { %8777 = vmatpush3.msra.mxu0 %v7922_v37  ;;  %8784 = vmatprep.mubr.msk.f32.mxu0 %vm1443_vm0, %v9903_v8 }
0x1c28   : > { %8778 = vmatprep.subr.mxu0 %v7921_v38 }
0x1c29   : > { %8779 = vmatpush3.msra.mxu0 %v7921_v38 }
0x1c2a   : > { %8780 = vmatprep.subr.mxu0 %v7920_v39 }
0x1c2b   : > { %8781 = vmatpush3.msra.mxu0 %v7920_v39 }
0x1c2c   : > { %8782 = vmatprep.subr.mxu0 %v7919_v40 }
0x1c2d   : > { %8783 = vmatpush3.msra.mxu0 %v7919_v40 }
0x1c2e   : > { %8785 = vmatmul.mubr.msk.f32.vlgmr.msra.gmra.mxu0 %vm1443_vm0, %v9905_v9 }
0x1cde   : > { %v8748_v42 = vpop.f32.mrf.mxu0 }
0x1ce0   : > { %v5441_v43 = vpop.f32.mrf.mxu0 }
0x1ce1   : > { %8751 = vmatprep.mubr.msk.f32.mxu1 %vm1697_vm1, %v5441_v43 }
0x1ce2   : > { %8752 = vmatmul.mubr.msk.f32.vlgmr.msra.gmra.mxu1 %vm1697_vm1, %v8748_v42 }
0x1ce3   : > { %8766 = vmatpush3.msra.mxu1 %v7914_v41  ;;  %8773 = vmatprep.mubr.msk.f32.mxu1 %vm1443_vm0, %v9903_v8 }
0x1ce4   : > { %8767 = vmatprep.subr.mxu1 %v7913_v5 }
0x1ce5   : > { %8768 = vmatpush3.msra.mxu1 %v7913_v5 }
0x1ce6   : > { %v8764_v46 = vpop.f32.mrf.mxu0  ;;  %8769 = vmatprep.subr.mxu1 %v7912_v44 }
0x1ce7   : > { %v5620_v48 = vadd.f32 %v8764_v46, %v7908_v2  ;;  %8770 = vmatpush3.msra.mxu1 %v7912_v44  ;;  %v7946_v46 = vld [vmem:[%s9403_s24 + $0x38] sm:$0xff] }
0x1ce8   : > { %v5614_v51 = vpop.f32.mrf.mxu0  ;;  %8771 = vmatprep.subr.mxu1 %v7911_v45 }
0x1ce9   : > { %v5615_v52 = vadd.f32 %v7908_v2, %v5614_v51  ;;  %8772 = vmatpush3.msra.mxu1 %v7911_v45  ;;  %v7944_v51 = vld [vmem:[%s9403_s24 + $0x28] sm:$0xff] }
0x1cea   : > { %8774 = vmatmul.mubr.msk.f32.vlgmr.msra.gmra.mxu1 %vm1443_vm0, %v9905_v9 }
0x1ceb   : > { %8791 = vmatprep.mubr.msk.f32.mxu1 %vm1697_vm1, %v5615_v52  ;;  %v7943_v52 = vld [vmem:[%s9403_s24 + $0x20] sm:$0xff] }
0x1cee   : > { %v8786_v57 = vpop.f32.mrf.mxu0 }
0x1cef   : > { %v5796_v58 = vadd.f32 %v8786_v57, %v7924_v54 }
0x1cf0   : > { %v5790_v59 = vpop.f32.mrf.mxu0 }
0x1cf1   : > { %v5791_v47 = vadd.f32 %v7924_v54, %v5790_v59  ;;  %8794 = vmatprep.subr.msk.mxu0 %vm1815_vm4, %v5796_v58 }
0x1cf2   : > { %8795 = vmatpush3.msk.msra.mxu0 %vm1815_vm4, %v5796_v58 }
0x1cf3   : > { %8796 = vmatprep.subr.mxu0 %v5791_v47 }
0x1cf4   : > { %8797 = vmatpush3.msra.mxu0 %v5791_v47 }
0x1cf5   : > { %8806 = vmatprep.subr.mxu0 %v7946_v46 }
0x1da2   : > { %v8753_v55 = vpop.f32.mrf.mxu1 }
0x1da3   : > { %v5534_v62 = vadd.f32 %v8753_v55, %v4990_v49 }
0x1da4   : > { %v5524_v63 = vpop.f32.mrf.mxu1 }
0x1da5   : > { %v5533_v0 = vadd.f32 %v5524_v63, %v4985_v56  ;;  %v7941_v56 = vld [vmem:[%s9393_s14 + $0x1] ss:$0 sm:$0xff] }
0x1daa   : > { %v8775_v3 = vpop.f32.mrf.mxu1 }
0x1dab   : > { %v5708_v4 = vadd.f32 %v8775_v3, %v7916_v1  ;;  %v7942_v3 = vld [vmem:[%s10438_s28 + $0x1] ss:$0 sm:$0xff] }
0x1dac   : > { %v5702_v6 = vpop.f32.mrf.mxu1 }
0x1dad   : > { %v5703_v7 = vadd.f32 %v7916_v1, %v5702_v6  ;;  %8787 = vmatprep.subr.msk.mxu1 %vm1697_vm1, %v5708_v4 }
0x1dae   : > { %8788 = vmatpush3.xpose.msk.msra.mxu1 %vm1697_vm1, %v5708_v4 }
0x1daf   : > { %8789 = vmatprep.subr.msk.mxu1 %vm1697_vm1, %v5703_v7 }
0x1db2   : > { %8790 = vmatpush3.xpose.msk.msra.mxu1 %vm1697_vm1, %v5703_v7 }
0x1db3   : > { %8801 = vmatprep.subr.mxu1 %v7934_v20 }
0x1db5   : > { %8792 = vmatmul.mubr.msk.f32.vlgmr.msra.gmra.mxu1 %vm1697_vm1, %v5620_v48  ;;  %v7945_v48 = vld [vmem:[%s9403_s24 + $0x30] sm:$0xff] }
0x1db6   : > { %8802 = vmatpush3.msra.mxu1 %v7934_v20  ;;  %v7954_v20 = vld [vmem:[%s10439_s1 + $0x88] sm:$0xff] }
0x1e75   : > { %v8793_v50 = vpop.f32.mrf.mxu1 }
0x1e76   : > { %v5889_v53 = vsel %vm1789_vm3, %v8793_v50, -inf }
0x1e77   : > { %5890 = vmax.xlane.f32.xlu1 %v5889_v53  ;;  %v5877_v60 = vpop.f32.mrf.mxu1  ;;  %v7967_v53 = vld [vmem:[%s10439_s1 + $0xf0] sm:$0xff] }
0x1e78   : > { %v5886_v61 = vsel %vm1785_vm2, %v5877_v60, -inf }
0x1e79   : > { %5887 = vmax.xlane.f32.xlu0 %v5886_v61  ;;  %v7965_v61 = vld [vmem:[%s10439_s1 + $0xe0] sm:$0xff] }
0x1f00   : > { %v5891_v10 = vpop.xlane.xlu1 %5890 }
0x1f01   : > { %v5893_v11 = vsub.f32 %v8793_v50, %v5891_v10  ;;  %v7968_v50 = vld [vmem:[%s10439_s1 + $0xf8] sm:$0xff] }
0x1f02   : > { %v5888_v12 = vpop.xlane.xlu0 %5887  ;;  %8817 = vmatprep.subr.mxu1 %v7968_v50  ;;  %v7964_v10 = vld [vmem:[%s10439_s1 + $0xd8] sm:$0xff] }
0x1f03   : > { %v5896_v13 = vmul.f32 1.442695, %v5893_v11  ;;  %v5892_v14 = vsub.f32 %v5877_v60, %v5888_v12  ;;  %v7966_v60 = vld [vmem:[%s10439_s1 + $0xe8] sm:$0xff]  ;;  %v7963_v11 = vld [vmem:[%s10439_s1 + $0xd0] sm:$0xff] }
0x1f04   : > { %v7962_v12 = vld [vmem:[%s10439_s1 + $0xc8] sm:$0xff] }
0x1f05   : > { %9105 = vpow2.f32 %v5896_v13  ;;  %v5894_v15 = vmul.f32 1.442695, %v5892_v14  ;;  %v7961_v13 = vld [vmem:[%s10439_s1 + $0xc0] sm:$0xff]  ;;  %v7960_v14 = vld [vmem:[%s10439_s1 + $0xb8] sm:$0xff] }
0x1f07   : > { %9107 = vpow2.f32 %v5894_v15  ;;  %v7959_v15 = vld [vmem:[%s10439_s1 + $0xb0] sm:$0xff] }
0x1f12   : > { %v9106_v16 = vpop.eup %9105 }
0x1f13   : > { %v5901_v17 = vsel %vm1789_vm3, %v9106_v16, 0.0 }
0x1f14   : > { %v9108_v18 = vpop.eup %9107  ;;  %5902 = vadd.xlane.f32.xlu1 %v5901_v17  ;;  %v7957_v17 = vld [vmem:[%s10439_s1 + $0xa0] sm:$0xff] }
0x1f15   : > { %v5898_v19 = vsel %vm1785_vm2, %v9108_v18, 0.0 }
0x1f16   : > { %5899 = vadd.xlane.f32.xlu0 %v5898_v19  ;;  %v7955_v19 = vld [vmem:[%s10439_s1 + $0x90] sm:$0xff] }
0x1f9d   : > { %v5903_v21 = vpop.xlane.xlu1 %5902 }
0x1f9e   : > { %9109 = vrcp.f32 %v5903_v21  ;;  %v7953_v21 = vld [vmem:[%s10439_s1 + $0x80] sm:$0xff] }
0x1f9f   : > { %v5900_v22 = vpop.xlane.xlu0 %5899 }
0x1fa0   : > { %9111 = vrcp.f32 %v5900_v22  ;;  %v7948_v22 = vld [vmem:[%s10440_s2 + $0x1] ss:$0 sm:$0xff]  ;;  %s10460_s2 = sld [smem:[#allocation26_spill]] }
0x1fab   : > { %v9110_v23 = vpop.eup %9109 }
0x1fac   : > { %v5907_v26 = vmul.f32 %v9110_v23, %v9106_v16  ;;  %v7958_v16 = vld [vmem:[%s10439_s1 + $0xa8] sm:$0xff] }
0x1fad   : > { %v9112_v24 = vpop.eup %9111 }
0x1fae   : > { %v5906_v25 = vmul.f32 %v9112_v24, %v9108_v18  ;;  %v7956_v18 = vld [vmem:[%s10439_s1 + $0x98] sm:$0xff]  ;;  %s10459_s1 = sld [smem:[#allocation33_spill]] }
0x1fb0   : > { %8798 = vmatprep.mubr.msk.f32.mxu0 %vm1785_vm2, %v5906_v25 }
0x1fb1   : > { %8799 = vmatmul.mubr.msk.f32.vlgmr.msra.gmra.mxu0 %vm1785_vm2, %v5907_v26 }
0x1fb2   : > { %8807 = vmatpush3.msra.mxu0 %v7946_v46 }
0x1fb3   : > { %8808 = vmatprep.subr.mxu0 %v7945_v48 }
0x1fb4   : > { %8809 = vmatpush3.msra.mxu0 %v7945_v48 }
0x1fb5   : > { %8810 = vmatprep.subr.mxu0 %v7944_v51 }
0x1fb6   : > { %8811 = vmatpush3.msra.mxu0 %v7944_v51 }
0x1fb7   : > { %8812 = vmatprep.subr.mxu0 %v7943_v52 }
0x1fb8   : > { %8813 = vmatpush3.msra.mxu0 %v7943_v52 }
0x2071   : > { %v8800_v27 = vpop.f32.mrf.mxu0 }
0x2073   : > { %v5983_v28 = vpop.f32.mrf.mxu0 }
0x2074   : > { %8803 = vmatprep.mubr.msk.f32.mxu1 %vm1697_vm1, %v5983_v28 }
0x2075   : > { %8804 = vmatmul.mubr.msk.f32.vlgmr.msra.gmra.mxu1 %vm1697_vm1, %v8800_v27 }
0x2076   : > { %8818 = vmatpush3.msra.mxu1 %v7968_v50 }
0x2077   : > { %8819 = vmatprep.subr.mxu1 %v7967_v53 }
0x2078   : > { %8820 = vmatpush3.msra.mxu1 %v7967_v53 }
0x2079   : > { %8821 = vmatprep.subr.mxu1 %v7966_v60 }
0x207a   : > { %8822 = vmatpush3.msra.mxu1 %v7966_v60  ;;  %v7974_v60 = vld [vmem:[%s10443_s11 + $0x1] ss:$0 sm:$0xff] }
0x207b   : > { %8823 = vmatprep.subr.mxu1 %v7965_v61 }
0x207c   : > { %8824 = vmatpush3.msra.mxu1 %v7965_v61 }
0x207d   : > { %8825 = vmatprep.subr.mxu1 %v7964_v10 }
0x207e   : > { %8826 = vmatpush3.msra.mxu1 %v7964_v10 }
0x207f   : > { %8827 = vmatprep.subr.mxu1 %v7963_v11 }
0x2080   : > { %8828 = vmatpush3.msra.mxu1 %v7963_v11 }
0x2081   : > { %8829 = vmatprep.subr.mxu1 %v7962_v12 }
0x2082   : > { %8830 = vmatpush3.msra.mxu1 %v7962_v12  ;;  %v7975_v12 = vld [vmem:[%s10445_s22] ss:$0 sm:$0xff]  ;;  %s10449_s22 = sld [smem:[#allocation21_spill]] }
0x2083   : > { %8831 = vmatprep.subr.mxu1 %v7961_v13 }
0x2084   : > { %8832 = vmatpush3.msra.mxu1 %v7961_v13 }
0x2085   : > { %8833 = vmatprep.subr.mxu1 %v7960_v14 }
0x2086   : > { %8834 = vmatpush3.msra.mxu1 %v7960_v14 }
0x2087   : > { %8835 = vmatprep.subr.mxu1 %v7959_v15 }
0x2088   : > { %8836 = vmatpush3.msra.mxu1 %v7959_v15 }
0x2089   : > { %8837 = vmatprep.subr.mxu1 %v7958_v16 }
0x208a   : > { %8838 = vmatpush3.msra.mxu1 %v7958_v16 }
0x208b   : > { %8839 = vmatprep.subr.mxu1 %v7957_v17 }
0x208c   : > { %8840 = vmatpush3.msra.mxu1 %v7957_v17 }
0x208d   : > { %8841 = vmatprep.subr.mxu1 %v7956_v18 }
0x208e   : > { %8842 = vmatpush3.msra.mxu1 %v7956_v18 }
0x208f   : > { %8843 = vmatprep.subr.mxu1 %v7955_v19 }
0x2090   : > { %8844 = vmatpush3.msra.mxu1 %v7955_v19 }
0x2091   : > { %8845 = vmatprep.subr.mxu1 %v7954_v20 }
0x2092   : > { %8846 = vmatpush3.msra.mxu1 %v7954_v20 }
0x2093   : > { %8847 = vmatprep.subr.mxu1 %v7953_v21 }
0x2094   : > { %8848 = vmatpush3.msra.mxu1 %v7953_v21 }
0x2135   : > { %v8805_v29 = vpop.f32.mrf.mxu1 }
0x2136   : > { %v6076_v31 = vadd.f32 %v8805_v29, %v5534_v62 }
0x2137   : > { %v6066_v32 = vpop.f32.mrf.mxu1 }
0x2138   : > { %v6086_v33 = vadd.f32 %v7938_v30, %v6076_v31  ;;  %v6075_v34 = vadd.f32 %v6066_v32, %v5533_v0 }
0x213a   : > { %v6085_v35 = vadd.f32 %v7938_v30, %v6075_v34  ;;  %v6088_v36 = vadd.f32 %v6086_v33, %v9905_v9 }
0x213c   : > { %v6096_v37 = vsel %vm3616_vm5, %v6088_v36, 0.0  ;;  %v6087_v38 = vadd.f32 %v6085_v35, %v9903_v8 }
0x213d   : > { %6097 = vadd.xlane.f32.xlu1 %v6096_v37  ;;  %v7970_v37 = vld [vmem:[%s10441_s7 + $0x1] ss:$0 sm:$0xff] }
0x213e   : > { %v6093_v39 = vsel %vm1443_vm0, %v6087_v38, 0.0 }
0x213f   : > { %6094 = vadd.xlane.f32.xlu0 %v6093_v39 }
0x21c6   : > { %v6098_v40 = vpop.xlane.xlu1 %6097 }
0x21c7   : > { %v6100_v41 = vmul.f32 0.03125, %v6098_v40 }
0x21c8   : > { %v6095_v42 = vpop.xlane.xlu0 %6094 }
0x21c9   : > { %v6102_v43 = vsub.f32 %v6088_v36, %v6100_v41  ;;  %v6099_v5 = vmul.f32 0.03125, %v6095_v42 }
0x21cb   : > { %v6101_v44 = vsub.f32 %v6087_v38, %v6099_v5  ;;  %v6104_v2 = vmul.f32 %v6102_v43, %v6102_v43 }
0x21cd   : > { %v6108_v9 = vsel %vm3616_vm5, %v6104_v2, 0.0  ;;  %v6103_v45 = vmul.f32 %v6101_v44, %v6101_v44 }
0x21ce   : > { %6109 = vadd.xlane.f32.xlu1 %v6108_v9 }
0x21cf   : > { %v6105_v8 = vsel %vm1443_vm0, %v6103_v45, 0.0 }
0x21d0   : > { %6106 = vadd.xlane.f32.xlu0 %v6105_v8 }
0x2257   : > { %v6110_v54 = vpop.xlane.xlu1 %6109 }
0x2258   : > { %v6112_v57 = vmul.f32 0.03125, %v6110_v54 }
0x2259   : > { %v6107_v58 = vpop.xlane.xlu0 %6106 }
0x225a   : > { %v6114_v59 = vadd.f32 1e-05, %v6112_v57  ;;  %v6111_v47 = vmul.f32 0.03125, %v6107_v58  ;;  %v6394_v58 = vld [vmem:[%s10444_s18 + $0x18] sm:$0xff] }
0x225b   : > { %8852 = vmatprep.subr.mxu0 %v6394_v58 }
0x225c   : > { %9113 = vrsqrt.f32 %v6114_v59  ;;  %v6113_v49 = vadd.f32 1e-05, %v6111_v47  ;;  %v6393_v59 = vld [vmem:[%s10444_s18 + $0x10] sm:$0xff]  ;;  %v6392_v47 = vld [vmem:[%s10444_s18 + $0x8] sm:$0xff] }
0x225e   : > { %9115 = vrsqrt.f32 %v6113_v49  ;;  %v6391_v49 = vld [vmem:[%s10444_s18] sm:$0xff] }
0x2269   : > { %v9114_v55 = vpop.eup %9113 }
0x226a   : > { %v6118_v62 = vmul.f32 %v9114_v55, %v6102_v43 }
0x226b   : > { %v9116_v63 = vpop.eup %9115 }
0x226c   : > { %v6117_v0 = vmul.f32 %v9116_v63, %v6101_v44  ;;  %v6126_v1 = vmul.f32 %v7941_v56, %v6118_v62 }
0x226e   : > { %v6125_v4 = vmul.f32 %v7941_v56, %v6117_v0  ;;  %v10105_v7 = vadd.f32 %v7942_v3, %v6126_v1 }
0x2270   : > { %v10103_v6 = vadd.f32 %v7942_v3, %v6125_v4  ;;  %v7973_v4 = vld [vmem:[%s10442_s10 + $0x1] ss:$0 sm:$0xff] }
0x2272   : > { %8814 = vmatprep.mubr.msk.f32.mxu0 %vm1443_vm0, %v10103_v6 }
0x2273   : > { %8815 = vmatmul.mubr.msk.f32.vlgmr.msra.gmra.mxu0 %vm1443_vm0, %v10105_v7 }
0x2274   : > { %8853 = vmatpush3.msra.mxu0 %v6394_v58 }
0x2275   : > { %8854 = vmatprep.subr.mxu0 %v6393_v59 }
0x2276   : > { %8855 = vmatpush3.msra.mxu0 %v6393_v59 }
0x2277   : > { %8856 = vmatprep.subr.mxu0 %v6392_v47 }
0x2278   : > { %8857 = vmatpush3.msra.mxu0 %v6392_v47 }
0x2279   : > { %8858 = vmatprep.subr.mxu0 %v6391_v49 }
0x227a   : > { %8859 = vmatpush3.msra.mxu0 %v6391_v49 }
0x2333   : > { %v8816_v23 = vpop.f32.mrf.mxu0 }
0x2334   : > { %v6226_v24 = vadd.f32 %v8816_v23, %v7948_v22 }
0x2335   : > { %v6220_v25 = vpop.f32.mrf.mxu0 }
0x2336   : > { %v7952_v26 = vmul.f32 -1.442695, %v6226_v24  ;;  %v6221_v27 = vadd.f32 %v7948_v22, %v6220_v25 }
0x2338   : > { %9117 = vpow2.f32 %v7952_v26  ;;  %v7951_v28 = vmul.f32 -1.442695, %v6221_v27 }
0x233a   : > { %9119 = vpow2.f32 %v7951_v28 }
0x2345   : > { %v9118_v29 = vpop.eup %9117 }
0x2346   : > { %v6236_v30 = vadd.f32 1.0, %v9118_v29  ;;  %v6548_v29 = vld [vmem:[%s10446_s23 + $0x28] sm:$0xff] }
0x2347   : > { %v9120_v31 = vpop.eup %9119  ;;  %8863 = vmatprep.subr.mxu0 %v6548_v29 }
0x2348   : > { %v6235_v32 = vadd.f32 1.0, %v9120_v31  ;;  %9121 = vrcp.f32 %v6236_v30  ;;  %v6547_v30 = vld [vmem:[%s10446_s23 + $0x20] sm:$0xff]  ;;  %v6546_v31 = vld [vmem:[%s10446_s23 + $0x18] sm:$0xff] }
0x234a   : > { %9123 = vrcp.f32 %v6235_v32  ;;  %v6545_v32 = vld [vmem:[%s10446_s23 + $0x10] sm:$0xff] }
0x2355   : > { %v9122_v33 = vpop.eup %9121 }
0x2356   : > { %v6242_v36 = vmul.f32 %v9122_v33, %v6226_v24  ;;  %v6544_v33 = vld [vmem:[%s10446_s23 + $0x8] sm:$0xff] }
0x2357   : > { %v9124_v34 = vpop.eup %9123 }
0x2358   : > { %v6241_v35 = vmul.f32 %v9124_v34, %v6221_v27  ;;  %v6543_v34 = vld [vmem:[%s10446_s23] sm:$0xff] }
0x235a   : > { %8849 = vmatprep.mubr.f32.mxu1 %v6241_v35 }
0x235b   : > { %8850 = vmatmul.mubr.f32.vlgmr.msra.gmra.mxu1 %v6242_v36 }
0x241b   : > { %v8851_v38 = vpop.f32.mrf.mxu1 }
0x241c   : > { %v6340_v39 = vadd.f32 %v8851_v38, %v7970_v37 }
0x241d   : > { %v6334_v40 = vpop.f32.mrf.mxu1 }
0x241e   : > { %v6335_v41 = vadd.f32 %v7970_v37, %v6334_v40  ;;  %v6344_v42 = vadd.f32 %v6340_v39, %v10105_v7 }
0x2420   : > { %v6352_v43 = vsel %vm3616_vm5, %v6344_v42, 0.0  ;;  %v6343_v5 = vadd.f32 %v6335_v41, %v10103_v6 }
0x2421   : > { %6353 = vadd.xlane.f32.xlu1 %v6352_v43 }
0x2422   : > { %v6349_v44 = vsel %vm1443_vm0, %v6343_v5, 0.0 }
0x2423   : > { %6350 = vadd.xlane.f32.xlu0 %v6349_v44  ;;  %v7979_v44 = vld [vmem:[%s10448_s26] ss:$0 sm:$0xff]  ;;  %s10451_s26 = sld [smem:[#allocation22_spill]] }
0x24aa   : > { %v6354_v2 = vpop.xlane.xlu1 %6353 }
0x24ab   : > { %v6356_v9 = vmul.f32 0.03125, %v6354_v2 }
0x24ac   : > { %v6351_v45 = vpop.xlane.xlu0 %6350 }
0x24ad   : > { %v6358_v8 = vsub.f32 %v6344_v42, %v6356_v9  ;;  %v6355_v46 = vmul.f32 0.03125, %v6351_v45  ;;  %v7978_v42 = vld [vmem:[%s10447_s0] ss:$0 sm:$0xff]  ;;  %s10450_s0 = sld [smem:[#allocation24_spill]] }
0x24af   : > { %v6357_v48 = vsub.f32 %v6343_v5, %v6355_v46  ;;  %v6360_v51 = vmul.f32 %v6358_v8, %v6358_v8 }
0x24b1   : > { %v6364_v52 = vsel %vm3616_vm5, %v6360_v51, 0.0  ;;  %v6359_v54 = vmul.f32 %v6357_v48, %v6357_v48 }
0x24b2   : > { %6365 = vadd.xlane.f32.xlu1 %v6364_v52 }
0x24b3   : > { %v6361_v57 = vsel %vm1443_vm0, %v6359_v54, 0.0 }
0x24b4   : > { %6362 = vadd.xlane.f32.xlu0 %v6361_v57 }
0x253b   : > { %v6366_v55 = vpop.xlane.xlu1 %6365 }
0x253c   : > { %v6368_v56 = vmul.f32 0.03125, %v6366_v55 }
0x253d   : > { %v6363_v62 = vpop.xlane.xlu0 %6362 }
0x253e   : > { %v6370_v63 = vadd.f32 1e-05, %v6368_v56  ;;  %v6367_v0 = vmul.f32 0.03125, %v6363_v62  ;;  %v7982_v56 = vld [vmem:[%s10449_s22] ss:$0 sm:$0xff]  ;;  %s10452_s22 = sld [smem:[#allocation23_spill]] }
0x2540   : > { %9125 = vrsqrt.f32 %v6370_v63  ;;  %v6369_v1 = vadd.f32 1e-05, %v6367_v0 }
0x2542   : > { %9127 = vrsqrt.f32 %v6369_v1 }
0x254d   : > { %v9126_v3 = vpop.eup %9125 }
0x254e   : > { %v6374_v6 = vmul.f32 %v9126_v3, %v6358_v8 }
0x254f   : > { %v9128_v7 = vpop.eup %9127 }
0x2550   : > { %v6373_v50 = vmul.f32 %v9128_v7, %v6357_v48  ;;  %v6382_v53 = vmul.f32 %v7973_v4, %v6374_v6 }
0x2552   : > { %v6381_v61 = vmul.f32 %v7973_v4, %v6373_v50  ;;  %v10141_v11 = vadd.f32 %v7974_v60, %v6382_v53 }
0x2554   : > { %v6389_v10 = vadd.f32 %v7974_v60, %v6381_v61 }
0x2556   : > { %8860 = vmatprep.mubr.msk.f32.mxu0 %vm1443_vm0, %v6389_v10 }
0x2557   : > { %8861 = vmatmul.mubr.msk.f32.vlgmr.msra.gmra.mxu0 %vm1443_vm0, %v10141_v11 }
0x2558   : > { %8864 = vmatpush3.msra.mxu0 %v6548_v29 }
0x2559   : > { %8865 = vmatprep.subr.mxu0 %v6547_v30 }
0x255a   : > { %8866 = vmatpush3.msra.mxu0 %v6547_v30 }
0x255b   : > { %8867 = vmatprep.subr.mxu0 %v6546_v31 }
0x255c   : > { %8868 = vmatpush3.msra.mxu0 %v6546_v31 }
0x255d   : > { %8869 = vmatprep.subr.mxu0 %v6545_v32 }
0x255e   : > { %8870 = vmatpush3.msra.mxu0 %v6545_v32  ;;  %v7985_v32 = vld [vmem:[%s10451_s26] ss:$0 sm:$0xff]  ;;  %s10454_s26 = sld [smem:[#allocation25_spill]] }
0x255f   : > { %8871 = vmatprep.subr.mxu0 %v6544_v33 }
0x2560   : > { %8872 = vmatpush3.msra.mxu0 %v6544_v33 }
0x2561   : > { %8873 = vmatprep.subr.mxu0 %v6543_v34 }
0x2562   : > { %8874 = vmatpush3.msra.mxu0 %v6543_v34 }
0x2617   : > { %v8862_v13 = vpop.f32.mrf.mxu0 }
0x2618   : > { %v6480_v14 = vadd.f32 %v8862_v13, %v7975_v12 }
0x2619   : > { %v6474_v15 = vpop.f32.mrf.mxu0 }
0x261a   : > { %v6475_v16 = vadd.f32 %v7975_v12, %v6474_v15  ;;  %v6488_v17 = vsel %vm6487_vm6, %v6480_v14, 0.0  ;;  %v6705_v15 = vld [vmem:[%s10450_s0 + $0x40] sm:$0xff] }
0x261b   : > { %6489 = vadd.xlane.f32.xlu1 %v6488_v17  ;;  %8878 = vmatprep.subr.mxu0 %v6705_v15  ;;  %v6703_v17 = vld [vmem:[%s10450_s0 + $0x30] sm:$0xff] }
0x261c   : > { %v6484_v18 = vsel %vm6483_vm7, %v6475_v16, 0.0 }
0x261d   : > { %6485 = vadd.xlane.f32.xlu0 %v6484_v18  ;;  %v6702_v18 = vld [vmem:[%s10450_s0 + $0x28] sm:$0xff] }
0x26a4   : > { %v6490_v19 = vpop.xlane.xlu1 %6489 }
0x26a5   : > { %v6492_v20 = vmul.f32 0.020833334, %v6490_v19  ;;  %v6701_v19 = vld [vmem:[%s10450_s0 + $0x20] sm:$0xff] }
0x26a6   : > { %v6486_v21 = vpop.xlane.xlu0 %6485 }
0x26a7   : > { %v6494_v22 = vsub.f32 %v6480_v14, %v6492_v20  ;;  %v6491_v23 = vmul.f32 0.020833334, %v6486_v21  ;;  %v6700_v20 = vld [vmem:[%s10450_s0 + $0x18] sm:$0xff]  ;;  %v6699_v21 = vld [vmem:[%s10450_s0 + $0x10] sm:$0xff] }
0x26a9   : > { %v6493_v24 = vsub.f32 %v6475_v16, %v6491_v23  ;;  %v6496_v25 = vmul.f32 %v6494_v22, %v6494_v22  ;;  %v6704_v16 = vld [vmem:[%s10450_s0 + $0x38] sm:$0xff]  ;;  %v6697_v23 = vld [vmem:[%s10450_s0] sm:$0xff] }
0x26ab   : > { %v6500_v26 = vsel %vm6487_vm6, %v6496_v25, 0.0  ;;  %v6495_v27 = vmul.f32 %v6493_v24, %v6493_v24 }
0x26ac   : > { %6501 = vadd.xlane.f32.xlu1 %v6500_v26 }
0x26ad   : > { %v6497_v28 = vsel %vm6483_vm7, %v6495_v27, 0.0 }
0x26ae   : > { %6498 = vadd.xlane.f32.xlu0 %v6497_v28 }
0x2735   : > { %v6502_v35 = vpop.xlane.xlu1 %6501 }
0x2736   : > { %v6504_v36 = vmul.f32 0.020833334, %v6502_v35  ;;  %v7986_v35 = vld [vmem:[%s10452_s22] ss:$0 sm:$0xff]  ;;  %s10455_s22 = sld [smem:[#allocation31_spill]] }
0x2737   : > { %v6499_v37 = vpop.xlane.xlu0 %6498 }
0x2738   : > { %v6506_v38 = vadd.f32 1e-05, %v6504_v36  ;;  %v6503_v39 = vmul.f32 0.020833334, %v6499_v37 }
0x273a   : > { %9129 = vrsqrt.f32 %v6506_v38  ;;  %v6505_v40 = vadd.f32 1e-05, %v6503_v39 }
0x273c   : > { %9131 = vrsqrt.f32 %v6505_v40 }
0x2747   : > { %v9130_v41 = vpop.eup %9129 }
0x2748   : > { %v6510_v43 = vmul.f32 %v9130_v41, %v6494_v22  ;;  %v6698_v22 = vld [vmem:[%s10450_s0 + $0x8] sm:$0xff]  ;;  %s10453_s0 = sld [smem:[#allocation30_spill]] }
0x2749   : > { %v9132_v5 = vpop.eup %9131 }
0x274a   : > { %v6509_v2 = vmul.f32 %v9132_v5, %v6493_v24  ;;  %v6519_v9 = vmul.f32 %v7978_v42, %v6510_v43  ;;  %v9338_v24 = vmov 0.0  }
0x274b   : > { %6965 = vmatprep.mubr.f32.mxu1 %v9338_v24 }
0x274c   : > { %v6518_v45 = vmul.f32 %v7978_v42, %v6509_v2  ;;  %v6528_v8 = vadd.f32 %v7979_v44, %v6519_v9 }
0x274e   : > { %v6527_v46 = vadd.f32 %v7979_v44, %v6518_v45  ;;  %v7981_v48 = vmul.f32 -1.442695, %v6528_v8 }
0x2750   : > { %v7980_v51 = vmul.f32 -1.442695, %v6527_v46  ;;  %9133 = vpow2.f32 %v7981_v48  ;;  %v6989_v48 = vld [vmem:[%s10453_s0 + $0x18] sm:$0xff] }
0x2752   : > { %9135 = vpow2.f32 %v7980_v51  ;;  %v6988_v51 = vld [vmem:[%s10453_s0 + $0x10] sm:$0xff] }
0x275d   : > { %v9134_v52 = vpop.eup %9133 }
0x275e   : > { %v6536_v54 = vadd.f32 1.0, %v9134_v52  ;;  %v6987_v52 = vld [vmem:[%s10453_s0 + $0x8] sm:$0xff] }
0x275f   : > { %v9136_v57 = vpop.eup %9135 }
0x2760   : > { %v6535_v58 = vadd.f32 1.0, %v9136_v57  ;;  %9137 = vrcp.f32 %v6536_v54  ;;  %v6986_v54 = vld [vmem:[%s10453_s0] sm:$0xff]  ;;  %v6997_v57 = vrot.slane %v10141_v11, 5  ;;  %s10456_s0 = sld [smem:[#allocation28_spill]] }
0x2762   : > { %9139 = vrcp.f32 %v6535_v58  ;;  %v7989_v58 = vld [vmem:[%s10454_s26] ss:$0 sm:$0xff]  ;;  %s10457_s26 = sld [smem:[#allocation34_spill]] }
0x276d   : > { %v9138_v59 = vpop.eup %9137 }
0x276e   : > { %v6542_v55 = vmul.f32 %v9138_v59, %v6528_v8 }
0x276f   : > { %v9140_v47 = vpop.eup %9139 }
0x2770   : > { %v6541_v49 = vmul.f32 %v9140_v47, %v6527_v46 }
0x2772   : > { %8875 = vmatprep.mubr.msk.f32.mxu0 %vm6483_vm7, %v6541_v49 }
0x2773   : > { %8876 = vmatmul.mubr.msk.f32.vlgmr.msra.gmra.mxu0 %vm6483_vm7, %v6542_v55  ;;  %v7996_v55 = vld [vmem:[%s10455_s22] ss:$0 sm:$0xff]  ;;  %s10458_s22 = sld [smem:[#allocation32_spill]] }
0x2774   : > { %8879 = vmatpush3.msra.mxu0 %v6705_v15  ;;  %v6885_v15 = vld [vmem:[%s10456_s0 + $0xe0] sm:$0xff] }
0x2775   : > { %8880 = vmatprep.subr.mxu0 %v6704_v16 }
0x2776   : > { %8881 = vmatpush3.msra.mxu0 %v6704_v16  ;;  %v6884_v16 = vld [vmem:[%s10456_s0 + $0xd8] sm:$0xff] }
0x2777   : > { %8882 = vmatprep.subr.mxu0 %v6703_v17 }
0x2778   : > { %8883 = vmatpush3.msra.mxu0 %v6703_v17  ;;  %v6883_v17 = vld [vmem:[%s10456_s0 + $0xd0] sm:$0xff] }
0x2779   : > { %8884 = vmatprep.subr.mxu0 %v6702_v18 }
0x277a   : > { %8885 = vmatpush3.msra.mxu0 %v6702_v18  ;;  %v6882_v18 = vld [vmem:[%s10456_s0 + $0xc8] sm:$0xff] }
0x277b   : > { %8886 = vmatprep.subr.mxu0 %v6701_v19 }
0x277c   : > { %8887 = vmatpush3.msra.mxu0 %v6701_v19  ;;  %v7112_v19 = vld [vmem:[%s10457_s26 + $0x28] sm:$0xff] }
0x277d   : > { %8888 = vmatprep.subr.mxu0 %v6700_v20 }
0x277e   : > { %8889 = vmatpush3.msra.mxu0 %v6700_v20  ;;  %v6881_v20 = vld [vmem:[%s10456_s0 + $0xc0] sm:$0xff] }
0x277f   : > { %8890 = vmatprep.subr.mxu0 %v6699_v21 }
0x2780   : > { %8891 = vmatpush3.msra.mxu0 %v6699_v21  ;;  %v7111_v21 = vld [vmem:[%s10457_s26 + $0x20] sm:$0xff] }
0x2781   : > { %8892 = vmatprep.subr.mxu0 %v6698_v22 }
0x2782   : > { %8893 = vmatpush3.msra.mxu0 %v6698_v22  ;;  %v6880_v22 = vld [vmem:[%s10456_s0 + $0xb8] sm:$0xff] }
0x2783   : > { %8894 = vmatprep.subr.mxu0 %v6697_v23 }
0x2784   : > { %8895 = vmatpush3.msra.mxu0 %v6697_v23  ;;  %v7110_v23 = vld [vmem:[%s10457_s26 + $0x18] sm:$0xff] }
0x2785   : > { %8899 = vmatprep.subr.mxu0 %v9338_v24 }
0x2833   : > { %v8877_v62 = vpop.f32.mrf.mxu0 }
0x2834   : > { %v6634_v63 = vadd.f32 %v8877_v62, %v7982_v56 }
0x2835   : > { %v6628_v0 = vpop.f32.mrf.mxu0 }
0x2836   : > { %v6629_v1 = vadd.f32 %v7982_v56, %v6628_v0  ;;  %v6642_v3 = vsel %vm6641_vm8, %v6634_v63, 0.0 }
0x2837   : > { %6643 = vadd.xlane.f32.xlu1 %v6642_v3 }
0x2838   : > { %v6638_v4 = vsel %vm6637_vm9, %v6629_v1, 0.0 }
0x2839   : > { %6639 = vadd.xlane.f32.xlu0 %v6638_v4 }
0x28c0   : > { %v6644_v6 = vpop.xlane.xlu1 %6643 }
0x28c1   : > { %v6646_v7 = vmul.f32 0.013888889, %v6644_v6 }
0x28c2   : > { %v6640_v50 = vpop.xlane.xlu0 %6639 }
0x28c3   : > { %v6648_v53 = vsub.f32 %v6634_v63, %v6646_v7  ;;  %v6645_v60 = vmul.f32 0.013888889, %v6640_v50 }
0x28c5   : > { %v6647_v61 = vsub.f32 %v6629_v1, %v6645_v60  ;;  %v6650_v10 = vmul.f32 %v6648_v53, %v6648_v53 }
0x28c7   : > { %v6654_v12 = vsel %vm6641_vm8, %v6650_v10, 0.0  ;;  %v6649_v13 = vmul.f32 %v6647_v61, %v6647_v61 }
0x28c8   : > { %6655 = vadd.xlane.f32.xlu1 %v6654_v12  ;;  %v6888_v12 = vld [vmem:[%s10456_s0 + $0xf8] sm:$0xff] }
0x28c9   : > { %v6651_v14 = vsel %vm6637_vm9, %v6649_v13, 0.0  ;;  %v6887_v13 = vld [vmem:[%s10456_s0 + $0xf0] sm:$0xff]  ;;  %6901 = vmatprep.subr.mxu1 %v6888_v12 }
0x28ca   : > { %6652 = vadd.xlane.f32.xlu0 %v6651_v14  ;;  %v6886_v14 = vld [vmem:[%s10456_s0 + $0xe8] sm:$0xff]  ;;  %6902 = vmatpush1.msra.mxu1 %v6887_v13 }
0x28cb   : > { %6903 = vmatprep.subr.mxu1 %v6886_v14 }
0x28cc   : > { %6904 = vmatpush1.msra.mxu1 %v6885_v15 }
0x28cd   : > { %6905 = vmatprep.subr.mxu1 %v6884_v16 }
0x28ce   : > { %6906 = vmatpush1.msra.mxu1 %v6883_v17 }
0x28cf   : > { %6907 = vmatprep.subr.mxu1 %v6882_v18 }
0x28d0   : > { %6908 = vmatpush1.msra.mxu1 %v6881_v20 }
0x28d1   : > { %6909 = vmatprep.subr.mxu1 %v6880_v22 }
0x2951   : > { %v6656_v25 = vpop.xlane.xlu1 %6655 }
0x2952   : > { %v6658_v26 = vmul.f32 0.013888889, %v6656_v25  ;;  %v6879_v25 = vld [vmem:[%s10456_s0 + $0xb0] sm:$0xff] }
0x2953   : > { %v6653_v27 = vpop.xlane.xlu0 %6652  ;;  %6910 = vmatpush1.msra.mxu1 %v6879_v25 }
0x2954   : > { %v6660_v28 = vadd.f32 1e-05, %v6658_v26  ;;  %v6657_v29 = vmul.f32 0.013888889, %v6653_v27  ;;  %v6878_v26 = vld [vmem:[%s10456_s0 + $0xa8] sm:$0xff]  ;;  %v7109_v27 = vld [vmem:[%s10457_s26 + $0x10] sm:$0xff] }
0x2955   : > { %6911 = vmatprep.subr.mxu1 %v6878_v26 }
0x2956   : > { %9141 = vrsqrt.f32 %v6660_v28  ;;  %v6659_v30 = vadd.f32 1e-05, %v6657_v29  ;;  %v6877_v28 = vld [vmem:[%s10456_s0 + $0xa0] sm:$0xff]  ;;  %v6876_v29 = vld [vmem:[%s10456_s0 + $0x98] sm:$0xff] }
0x2957   : > { %6912 = vmatpush1.msra.mxu1 %v6877_v28 }
0x2958   : > { %9143 = vrsqrt.f32 %v6659_v30  ;;  %v7108_v30 = vld [vmem:[%s10457_s26 + $0x8] sm:$0xff]  ;;  %6913 = vmatprep.subr.mxu1 %v6876_v29 }
0x2963   : > { %v9142_v31 = vpop.eup %9141 }
0x2964   : > { %v6664_v33 = vmul.f32 %v9142_v31, %v6648_v53  ;;  %v6875_v31 = vld [vmem:[%s10456_s0 + $0x90] sm:$0xff] }
0x2965   : > { %v9144_v34 = vpop.eup %9143  ;;  %6914 = vmatpush1.msra.mxu1 %v6875_v31 }
0x2966   : > { %v6663_v36 = vmul.f32 %v9144_v34, %v6647_v61  ;;  %v6673_v37 = vmul.f32 %v7985_v32, %v6664_v33  ;;  %v7107_v33 = vld [vmem:[%s10457_s26] sm:$0xff] }
0x2967   : > { %v6873_v34 = vld [vmem:[%s10456_s0 + $0x80] sm:$0xff] }
0x2968   : > { %v6672_v38 = vmul.f32 %v7985_v32, %v6663_v36  ;;  %v6682_v39 = vadd.f32 %v7986_v35, %v6673_v37  ;;  %v6874_v32 = vld [vmem:[%s10456_s0 + $0x88] sm:$0xff]  ;;  %v6871_v36 = vld [vmem:[%s10456_s0 + $0x70] sm:$0xff] }
0x2969   : > { %6915 = vmatprep.subr.mxu1 %v6874_v32  ;;  %v6870_v37 = vld [vmem:[%s10456_s0 + $0x68] sm:$0xff] }
0x296a   : > { %v6681_v40 = vadd.f32 %v7986_v35, %v6672_v38  ;;  %v7988_v41 = vmul.f32 -1.442695, %v6682_v39  ;;  %v6872_v35 = vld [vmem:[%s10456_s0 + $0x78] sm:$0xff]  ;;  %6916 = vmatpush1.msra.mxu1 %v6873_v34  ;;  %v6869_v38 = vld [vmem:[%s10456_s0 + $0x60] sm:$0xff] }
0x296b   : > { %6917 = vmatprep.subr.mxu1 %v6872_v35 }
0x296c   : > { %v7987_v42 = vmul.f32 -1.442695, %v6681_v40  ;;  %9145 = vpow2.f32 %v7988_v41  ;;  %6918 = vmatpush1.msra.mxu1 %v6871_v36  ;;  %v6866_v41 = vld [vmem:[%s10456_s0 + $0x48] sm:$0xff] }
0x296d   : > { %6919 = vmatprep.subr.mxu1 %v6870_v37 }
0x296e   : > { %9147 = vpow2.f32 %v7987_v42  ;;  %6920 = vmatpush1.msra.mxu1 %v6869_v38  ;;  %v6865_v42 = vld [vmem:[%s10456_s0 + $0x40] sm:$0xff] }
0x2979   : > { %v9146_v43 = vpop.eup %9145 }
0x297a   : > { %v6690_v5 = vadd.f32 1.0, %v9146_v43  ;;  %v6864_v43 = vld [vmem:[%s10456_s0 + $0x38] sm:$0xff] }
0x297b   : > { %v9148_v44 = vpop.eup %9147 }
0x297c   : > { %v6689_v2 = vadd.f32 1.0, %v9148_v44  ;;  %9149 = vrcp.f32 %v6690_v5  ;;  %v6863_v5 = vld [vmem:[%s10456_s0 + $0x30] sm:$0xff]  ;;  %v6862_v44 = vld [vmem:[%s10456_s0 + $0x28] sm:$0xff] }
0x297e   : > { %9151 = vrcp.f32 %v6689_v2  ;;  %v6861_v2 = vld [vmem:[%s10456_s0 + $0x20] sm:$0xff] }
0x2989   : > { %v9150_v9 = vpop.eup %9149 }
0x298a   : > { %v6696_v46 = vmul.f32 %v9150_v9, %v6682_v39  ;;  %v6868_v39 = vld [vmem:[%s10456_s0 + $0x58] sm:$0xff] }
0x298b   : > { %v9152_v45 = vpop.eup %9151  ;;  %6921 = vmatprep.subr.mxu1 %v6868_v39  ;;  %v6860_v9 = vld [vmem:[%s10456_s0 + $0x18] sm:$0xff] }
0x298c   : > { %v6695_v8 = vmul.f32 %v9152_v45, %v6681_v40  ;;  %v6867_v40 = vld [vmem:[%s10456_s0 + $0x50] sm:$0xff] }
0x298d   : > { %6922 = vmatpush1.msra.mxu1 %v6867_v40  ;;  %v6859_v45 = vld [vmem:[%s10456_s0 + $0x10] sm:$0xff] }
0x298e   : > { %8896 = vmatprep.mubr.msk.f32.mxu0 %vm6637_vm9, %v6695_v8  ;;  %6923 = vmatprep.subr.mxu1 %v6866_v41  ;;  %v6858_v8 = vld [vmem:[%s10456_s0 + $0x8] sm:$0xff] }
0x298f   : > { %8897 = vmatmul.mubr.msk.f32.vlgmr.msra.gmra.mxu0 %vm6637_vm9, %v6696_v46  ;;  %6924 = vmatpush1.msra.mxu1 %v6865_v42  ;;  %v6857_v46 = vld [vmem:[%s10456_s0] sm:$0xff] }
0x2990   : > { %8900 = vmatpush3.msra.mxu0 %v6989_v48  ;;  %8907 = vmatprep.mubr.msk.f32.mxu0 %vm9339_vm10, %v9338_v24 }
0x2991   : > { %8901 = vmatprep.subr.mxu0 %v9338_v24  ;;  %6925 = vmatprep.subr.mxu1 %v6864_v43 }
0x2992   : > { %8902 = vmatpush3.msra.mxu0 %v6988_v51  ;;  %6926 = vmatpush1.msra.mxu1 %v6863_v5 }
0x2993   : > { %8903 = vmatprep.subr.mxu0 %v9338_v24  ;;  %6927 = vmatprep.subr.mxu1 %v6862_v44 }
0x2994   : > { %8904 = vmatpush3.msra.mxu0 %v6987_v52  ;;  %6928 = vmatpush1.msra.mxu1 %v6861_v2 }
0x2995   : > { %8905 = vmatprep.subr.mxu0 %v9338_v24  ;;  %6929 = vmatprep.subr.mxu1 %v6860_v9 }
0x2996   : > { %8906 = vmatpush3.msra.mxu0 %v6986_v54  ;;  %6930 = vmatpush1.msra.mxu1 %v6859_v45 }
0x2997   : > { %8908 = vmatmul.mubr.msk.f32.vlgmr.msra.gmra.mxu0 %vm1443_vm0, %v6997_v57  ;;  %8910 = vmatprep.subr.mxu0 %v9338_v24 }
0x2998   : > { %8922 = vmatprep.mubr.msk.f32.mxu0 %vm9339_vm10, %v9338_v24  ;;  %8911 = vmatpush3.msra.mxu0 %v7112_v19 }
0x2999   : > { %8912 = vmatprep.subr.mxu0 %v9338_v24  ;;  %6931 = vmatprep.subr.mxu1 %v6858_v8 }
0x299a   : > { %8913 = vmatpush3.msra.mxu0 %v7111_v21  ;;  %6932 = vmatpush1.msra.mxu1 %v6857_v46  ;;  %v6891_v21 = vlaneseq }
0x299b   : > { %8914 = vmatprep.subr.mxu0 %v9338_v24  ;;  %8925 = vmatprep.subr.mxu1 %v9338_v24 }
0x299c   : > { %8915 = vmatpush3.msra.mxu0 %v7110_v23  ;;  %v10275_v25 = vshrl.u32 %v6891_v21, 7 }
0x299d   : > { %8916 = vmatprep.subr.mxu0 %v9338_v24 }
0x299e   : > { %8917 = vmatpush3.msra.mxu0 %v7109_v27  ;;  %v6893_v31 = vsub.s32 0, %v10275_v25 }
0x299f   : > { %8918 = vmatprep.subr.mxu0 %v9338_v24 }
0x29a0   : > { %8919 = vmatpush3.msra.mxu0 %v7108_v30 }
0x29a1   : > { %8920 = vmatprep.subr.mxu0 %v9338_v24 }
0x29a2   : > { %8921 = vmatpush3.msra.mxu0 %v7107_v33  ;;  %v6897_v33 = vsub.s32 1, %v10275_v25 }
0x2a4f   : > { %v8898_v59 = vpop.f32.mrf.mxu0 }
0x2a50   : > { %v10196_v47 = vadd.f32 %v8898_v59, %v7989_v58 }
0x2a51   : > { %v6785_v49 = vpop.f32.mrf.mxu0 }
0x2a52   : > { %v6786_v0 = vadd.f32 %v7989_v58, %v6785_v49  ;;  %v6797_v61 = vsel %vm6796_vm12, %v10196_v47, 0.0 }
0x2a57   : > { %v7066_v56 = vpop.f32.mrf.mxu0 }
0x2a58   : > { %v7067_v62 = vadd.f32 %v7996_v55, %v7066_v56 }
0x2a59   : > { %v8909_v11 = vpop.f32.mrf.mxu0 }
0x2a5a   : > { %v7071_v63 = vsel %vm7070_vm11, %v7067_v62, 0.0  ;;  %v7998_v11 = vld [vmem:[%s10458_s22] ss:$0 sm:$0xff]  ;;  %s10462_s22 = sld [smem:[#allocation35_spill]] }
0x2a5b   : > { %7072 = vadd.xlane.f32.xlu0 %v7071_v63 }
0x2a5f   : > { %6794 = vadd.xlane.f32.xlu0 %v6786_v0 }
0x2a60   : > { %v8001_v22 = vld [vmem:[%s10462_s22] ss:$0 sm:$0xff]  ;;  %s10464_s22 = sld [smem:[#allocation38_spill]] }
0x2ae4   : > { %v7073_v1 = vpop.xlane.xlu0 %7072 }
0x2ae5   : > { %v7074_v3 = vmul.f32 0.020833334, %v7073_v1 }
0x2ae7   : > { %v10199_v4 = vsub.f32 %v7067_v62, %v7074_v3 }
0x2ae8   : > { %v6795_v6 = vpop.xlane.xlu0 %6794 }
0x2ae9   : > { %v7076_v7 = vmul.f32 %v10199_v4, %v10199_v4  ;;  %v10203_v50 = vmul.f32 0.00862069, %v6795_v6 }
0x2aeb   : > { %v7077_v53 = vsel %vm7070_vm11, %v7076_v7, 0.0  ;;  %v10206_v60 = vsub.f32 %v6786_v0, %v10203_v50  ;;  %v6811_v52 = vmul.f32 %v10203_v50, %v10203_v50  ;;  %v7999_v0 = vld [vmem:[%s10459_s1] ss:$0 sm:$0xff]  ;;  %s8015_s1 = sshll.u32 %s10468_s16, 5 }
0x2aec   : > { %7078 = vadd.xlane.f32.xlu1 %v7077_v53  ;;  %v10262_v50 = vld [vmem:[%s10460_s2] ss:$0 sm:$0xff]  ;;  %s10294_s2 = scalar_lea.vmem %s9573_s6, %s8015_s1  ;;  %s10466_s1 = sld [smem:[#allocation37_spill]] }
0x2aed   : > { %v6804_v10 = vmul.f32 %v10206_v60, %v10206_v60  ;;  %v6813_v58 = vmul.f32 12.0, %v6811_v52 }
0x2af0   : > { %6798 = vadd.xlane.f32.xlu1 %v6797_v61  ;;  %v10266_v61 = vld [vmem:[%s10461_s3] ss:$0 sm:$0xff]  ;;  %s10463_s3 = sld [smem:[#allocation29_spill]] }
0x2af4   : > { %6806 = vadd.xlane.f32.xlu1 %v6804_v10 }
0x2af6   : > { %v6889_v32 = vld [vmem:[%s10463_s3] sm:$0x3]  ;;  %s10465_s3 = sld [smem:[#allocation36_spill]] }
0x2af7   : > { %v10288_v35 = vrot.slane %v6889_v32, %v6897_v33 }
0x2b75   : > { %v7079_v48 = vpop.xlane.xlu1 %7078 }
0x2b76   : > { %v7080_v51 = vmul.f32 0.020833334, %v7079_v48 }
0x2b78   : > { %v7081_v54 = vadd.f32 1e-05, %v7080_v51 }
0x2b79   : > { %v6799_v57 = vpop.xlane.xlu1 %6798 }
0x2b7a   : > { %9153 = vrsqrt.f32 %v7081_v54  ;;  %v6801_v20 = vmul.f32 0.00862069, %v6799_v57 }
0x2b7c   : > { %v6803_v23 = vsub.f32 %v10196_v47, %v6801_v20  ;;  %v10284_v47 = vrot.slane %v6889_v32, %v6893_v31  ;;  %v6812_v42 = vmul.f32 %v6801_v20, %v6801_v20 }
0x2b7d   : > { %v6807_v59 = vpop.xlane.xlu1 %6806 }
0x2b7e   : > { %v6815_v49 = vsub.f32 %v6807_v59, %v6813_v58  ;;  %v6805_v30 = vmul.f32 %v6803_v23, %v6803_v23  ;;  %v6814_v2 = vmul.f32 12.0, %v6812_v42  ;;  %v7388_v42 = vld [vmem:[%s9563_s20 + $0xe8] sm:$0xff] }
0x2b80   : > { %v6817_v55 = vmul.f32 0.00862069, %v6815_v49  ;;  %v6808_v34 = vsel %vm6796_vm12, %v6805_v30, 0.0  ;;  %v7238_v49 = vld [vmem:[%s10464_s22 + $0x40] sm:$0xff] }
0x2b82   : > { %v6819_v56 = vadd.f32 1e-05, %v6817_v55  ;;  %v7237_v55 = vld [vmem:[%s10464_s22 + $0x38] sm:$0xff] }
0x2b84   : > { %9155 = vrsqrt.f32 %v6819_v56  ;;  %v7236_v56 = vld [vmem:[%s10464_s22 + $0x30] sm:$0xff] }
0x2b87   : > { %v9154_v62 = vpop.eup %9153 }
0x2b88   : > { %v7083_v63 = vmul.f32 %v9154_v62, %v10199_v4  ;;  %v7235_v62 = vld [vmem:[%s10464_s22 + $0x28] sm:$0xff] }
0x2b8a   : > { %v7091_v1 = vmul.f32 %v7998_v11, %v7083_v63  ;;  %v7234_v11 = vld [vmem:[%s10464_s22 + $0x20] sm:$0xff] }
0x2b8c   : > { %v7099_v3 = vadd.f32 %v7999_v0, %v7091_v1  ;;  %v7233_v0 = vld [vmem:[%s10464_s22 + $0x18] sm:$0xff] }
0x2b8e   : > { %v8000_v6 = vmul.f32 -1.442695, %v7099_v3 }
0x2b90   : > { %9157 = vpow2.f32 %v8000_v6  ;;  %v7231_v6 = vld [vmem:[%s10464_s22 + $0x8] sm:$0xff] }
0x2b91   : > { %v9156_v7 = vpop.eup %9155 }
0x2b92   : > { %v6823_v53 = vmul.f32 %v9156_v7, %v10206_v60  ;;  %v7230_v7 = vld [vmem:[%s10464_s22] sm:$0xff] }
0x2b94   : > { %v6832_v10 = vmul.f32 %v10262_v50, %v6823_v53 }
0x2b96   : > { %v6841_v12 = vadd.f32 %v10266_v61, %v6832_v10 }
0x2b98   : > { %v7994_v13 = vmul.f32 -1.442695, %v6841_v12 }
0x2b9a   : > { %9159 = vpow2.f32 %v7994_v13 }
0x2b9d   : > { %v9158_v14 = vpop.eup %9157 }
0x2b9e   : > { %v7103_v4 = vadd.f32 1.0, %v9158_v14  ;;  %v8003_v14 = vld [vmem:[%s10465_s3] ss:$0 sm:$0xff] }
0x2ba0   : > { %9161 = vrcp.f32 %v7103_v4 }
0x2ba7   : > { %v9160_v15 = vpop.eup %9159 }
0x2ba8   : > { %v6849_v16 = vadd.f32 1.0, %v9160_v15  ;;  %v8004_v15 = vld [vmem:[%s10466_s1] ss:$0 sm:$0xff] }
0x2baa   : > { %9163 = vrcp.f32 %v6849_v16 }
0x2bad   : > { %v9162_v17 = vpop.eup %9161 }
0x2bae   : > { %v7106_v18 = vmul.f32 %v9162_v17, %v7099_v3  ;;  %v7232_v3 = vld [vmem:[%s10464_s22 + $0x10] sm:$0xff] }
0x2bb0   : > { %8923 = vmatmul.mubr.msk.f32.vlgmr.msra.gmra.mxu0 %vm6483_vm7, %v7106_v18 }
0x2bb1   : > { %7467 = vmatprep.mubr.f32.mxu0 %v9338_v24 }
0x2bb7   : > { %v9164_v60 = vpop.eup %9163 }
0x2bb8   : > { %v6855_v19 = vmul.f32 %v9164_v60, %v6841_v12 }
0x2bba   : > { %6966 = vmatmul.mubr.f32.vlgmr.msra.gmra.mxu1 %v6855_v19 }
0x2bbb   : > { %6971 = vmatprep.mubr.f32.mxu1 %v9338_v24  ;;  %8926 = vmatpush3.msra.mxu1 %v7238_v49  ;;  %v7372_v49 = vld [vmem:[%s9563_s20 + $0x68] sm:$0xff] }
0x2bbc   : > { %8927 = vmatprep.subr.mxu1 %v9338_v24 }
0x2bbd   : > { %8928 = vmatpush3.msra.mxu1 %v7237_v55  ;;  %v7371_v55 = vld [vmem:[%s9563_s20 + $0x60] sm:$0xff] }
0x2bbe   : > { %8929 = vmatprep.subr.mxu1 %v9338_v24 }
0x2bbf   : > { %8930 = vmatpush3.msra.mxu1 %v7236_v56  ;;  %v7370_v56 = vld [vmem:[%s9563_s20 + $0x58] sm:$0xff] }
0x2bc0   : > { %8931 = vmatprep.subr.mxu1 %v9338_v24 }
0x2bc1   : > { %8932 = vmatpush3.msra.mxu1 %v7235_v62  ;;  %v7369_v62 = vld [vmem:[%s9563_s20 + $0x50] sm:$0xff] }
0x2bc2   : > { %8933 = vmatprep.subr.mxu1 %v9338_v24 }
0x2bc3   : > { %8934 = vmatpush3.msra.mxu1 %v7234_v11  ;;  %v7368_v11 = vld [vmem:[%s9563_s20 + $0x48] sm:$0xff] }
0x2bc4   : > { %8935 = vmatprep.subr.mxu1 %v9338_v24 }
0x2bc5   : > { %8936 = vmatpush3.msra.mxu1 %v7233_v0  ;;  %v7366_v0 = vld [vmem:[%s9563_s20 + $0x38] sm:$0xff] }
0x2bc6   : > { %8937 = vmatprep.subr.mxu1 %v9338_v24 }
0x2bc7   : > { %8938 = vmatpush3.msra.mxu1 %v7232_v3  ;;  %v7364_v3 = vld [vmem:[%s9563_s20 + $0x28] sm:$0xff] }
0x2bc8   : > { %8939 = vmatprep.subr.mxu1 %v9338_v24 }
0x2bc9   : > { %8940 = vmatpush3.msra.mxu1 %v7231_v6  ;;  %v7363_v6 = vld [vmem:[%s9563_s20 + $0x20] sm:$0xff] }
0x2bca   : > { %8941 = vmatprep.subr.mxu1 %v9338_v24 }
0x2bcb   : > { %8942 = vmatpush3.msra.mxu1 %v7230_v7  ;;  %v7362_v7 = vld [vmem:[%s9563_s20 + $0x18] sm:$0xff] }
0x2c70   : > { %v7189_v26 = vpop.f32.mrf.mxu0 }
0x2c71   : > { %v7190_v27 = vadd.f32 %v8001_v22, %v7189_v26 }
0x2c72   : > { %v8924_v28 = vpop.f32.mrf.mxu0 }
0x2c73   : > { %v7194_v29 = vsel %vm7193_vm13, %v7190_v27, 0.0 }
0x2c74   : > { %7195 = vadd.xlane.f32.xlu0 %v7194_v29  ;;  %v8006_v29 = vld [vmem:[#allocation2] ss:$0 sm:$0xff] }
0x2c78   : > { %6809 = vadd.xlane.f32.xlu0 %v6808_v34 }
0x2c7a   : > { %v6967_v36 = vpop.f32.mrf.mxu1 }
0x2c7b   : > { %v6968_v37 = vadd.f32 %v6967_v36, %v10284_v47 }
0x2c7c   : > { %v6969_v38 = vpop.f32.mrf.mxu1 }
0x2c7d   : > { %9165 = vtanh.f32 %v6968_v37  ;;  %v6970_v39 = vadd.f32 %v6969_v38, %v10288_v35 }
0x2c7f   : > { %9167 = vtanh.f32 %v6970_v39 }
0x2c8a   : > { %v9166_v40 = vpop.eup %9165 }
0x2c8b   : > { %6982 = vst [vmem:[%s10294_s2] sm:$0xff] %v9166_v40  ;;  %v7390_v40 = vld [vmem:[%s9563_s20 + $0xf8] sm:$0xff] }
0x2c8c   : > { %v9168_v41 = vpop.eup %9167  ;;  %7403 = vmatprep.subr.mxu0 %v7390_v40 }
0x2c8d   : > { %6983 = vst [vmem:[%s10294_s2 + $0x8] sm:$0xff] %v9168_v41  ;;  %v7389_v41 = vld [vmem:[%s9563_s20 + $0xf0] sm:$0xff] }
0x2c8e   : > { %7404 = vmatpush1.msra.mxu0 %v7389_v41 }
0x2c8f   : > { %7405 = vmatprep.subr.mxu0 %v7388_v42 }
0x2cfd   : > { %v7196_v43 = vpop.xlane.xlu0 %7195 }
0x2cfe   : > { %v7197_v5 = vmul.f32 0.013888889, %v7196_v43  ;;  %v7387_v43 = vld [vmem:[%s9563_s20 + $0xe0] sm:$0xff] }
0x2cff   : > { %7406 = vmatpush1.msra.mxu0 %v7387_v43 }
0x2d00   : > { %v7198_v44 = vsub.f32 %v7190_v27, %v7197_v5  ;;  %v7386_v5 = vld [vmem:[%s9563_s20 + $0xd8] sm:$0xff] }
0x2d01   : > { %v6810_v9 = vpop.xlane.xlu0 %6809  ;;  %7407 = vmatprep.subr.mxu0 %v7386_v5 }
0x2d02   : > { %v6816_v45 = vsub.f32 %v6810_v9, %v6814_v2  ;;  %v7199_v8 = vmul.f32 %v7198_v44, %v7198_v44  ;;  %v7384_v2 = vld [vmem:[%s9563_s20 + $0xc8] sm:$0xff]  ;;  %v7383_v9 = vld [vmem:[%s9563_s20 + $0xc0] sm:$0xff] }
0x2d04   : > { %v6818_v46 = vmul.f32 0.00862069, %v6816_v45  ;;  %v7200_v48 = vsel %vm7193_vm13, %v7199_v8, 0.0  ;;  %v7382_v45 = vld [vmem:[%s9563_s20 + $0xb8] sm:$0xff]  ;;  %v7381_v8 = vld [vmem:[%s9563_s20 + $0xb0] sm:$0xff] }
0x2d05   : > { %7201 = vadd.xlane.f32.xlu1 %v7200_v48  ;;  %v7379_v48 = vld [vmem:[%s9563_s20 + $0xa0] sm:$0xff] }
0x2d06   : > { %v6820_v51 = vadd.f32 1e-05, %v6818_v46  ;;  %v7380_v46 = vld [vmem:[%s9563_s20 + $0xa8] sm:$0xff] }
0x2d08   : > { %9169 = vrsqrt.f32 %v6820_v51  ;;  %v7378_v51 = vld [vmem:[%s9563_s20 + $0x98] sm:$0xff] }
0x2d15   : > { %v9170_v52 = vpop.eup %9169 }
0x2d16   : > { %v6824_v54 = vmul.f32 %v9170_v52, %v6803_v23  ;;  %v7377_v52 = vld [vmem:[%s9563_s20 + $0x90] sm:$0xff] }
0x2d18   : > { %v6833_v57 = vmul.f32 %v10262_v50, %v6824_v54  ;;  %v7376_v54 = vld [vmem:[%s9563_s20 + $0x88] sm:$0xff] }
0x2d1a   : > { %v6842_v58 = vadd.f32 %v10266_v61, %v6833_v57  ;;  %v7375_v57 = vld [vmem:[%s9563_s20 + $0x80] sm:$0xff] }
0x2d1c   : > { %v7995_v59 = vmul.f32 -1.442695, %v6842_v58 }
0x2d1e   : > { %9171 = vpow2.f32 %v7995_v59  ;;  %v7373_v59 = vld [vmem:[%s9563_s20 + $0x70] sm:$0xff] }
0x2d2b   : > { %v9172_v63 = vpop.eup %9171 }
0x2d2c   : > { %v6850_v1 = vadd.f32 1.0, %v9172_v63  ;;  %v7367_v63 = vld [vmem:[%s9563_s20 + $0x40] sm:$0xff] }
0x2d2e   : > { %9173 = vrcp.f32 %v6850_v1  ;;  %v7365_v1 = vld [vmem:[%s9563_s20 + $0x30] sm:$0xff] }
0x2d3b   : > { %v9174_v50 = vpop.eup %9173 }
0x2d3c   : > { %v6856_v53 = vmul.f32 %v9174_v50, %v6842_v58  ;;  %v7374_v58 = vld [vmem:[%s9563_s20 + $0x78] sm:$0xff]  ;;  %v7361_v50 = vld [vmem:[%s9563_s20 + $0x10] sm:$0xff] }
0x2d3e   : > { %6972 = vmatmul.mubr.f32.gmra.mxu1 %v6856_v53  ;;  %v7360_v53 = vld [vmem:[%s9563_s20 + $0x8] sm:$0xff] }
0x2d3f   : > { %8943 = vmatprep.mubr.msk.f32.mxu1 %vm9339_vm10, %v9338_v24 }
0x2d8e   : > { %v7202_v61 = vpop.xlane.xlu1 %7201 }
0x2d8f   : > { %v7203_v10 = vmul.f32 0.013888889, %v7202_v61  ;;  %v7359_v61 = vld [vmem:[%s9563_s20] sm:$0xff] }
0x2d91   : > { %v7204_v12 = vadd.f32 1e-05, %v7203_v10 }
0x2d93   : > { %9175 = vrsqrt.f32 %v7204_v12 }
0x2da0   : > { %v9176_v13 = vpop.eup %9175 }
0x2da1   : > { %v7206_v4 = vmul.f32 %v9176_v13, %v7198_v44  ;;  %v7385_v44 = vld [vmem:[%s9563_s20 + $0xd0] sm:$0xff] }
0x2da2   : > { %7408 = vmatpush1.msra.mxu0 %v7385_v44 }
0x2da3   : > { %v7214_v16 = vmul.f32 %v8003_v14, %v7206_v4  ;;  %7409 = vmatprep.subr.mxu0 %v7384_v2 }
0x2da4   : > { %7410 = vmatpush1.msra.mxu0 %v7383_v9 }
0x2da5   : > { %v7222_v17 = vadd.f32 %v8004_v15, %v7214_v16  ;;  %7411 = vmatprep.subr.mxu0 %v7382_v45 }
0x2da6   : > { %7412 = vmatpush1.msra.mxu0 %v7381_v8 }
0x2da7   : > { %v8005_v18 = vmul.f32 -1.442695, %v7222_v17  ;;  %7413 = vmatprep.subr.mxu0 %v7380_v46 }
0x2da8   : > { %7414 = vmatpush1.msra.mxu0 %v7379_v48 }
0x2da9   : > { %9177 = vpow2.f32 %v8005_v18  ;;  %7415 = vmatprep.subr.mxu0 %v7378_v51 }
0x2daa   : > { %7416 = vmatpush1.msra.mxu0 %v7377_v52 }
0x2dab   : > { %7417 = vmatprep.subr.mxu0 %v7376_v54 }
0x2dac   : > { %7418 = vmatpush1.msra.mxu0 %v7375_v57 }
0x2dad   : > { %7419 = vmatprep.subr.mxu0 %v7374_v58 }
0x2dae   : > { %7420 = vmatpush1.msra.mxu0 %v7373_v59 }
0x2daf   : > { %7421 = vmatprep.subr.mxu0 %v7372_v49 }
0x2db0   : > { %7422 = vmatpush1.msra.mxu0 %v7371_v55 }
0x2db1   : > { %7423 = vmatprep.subr.mxu0 %v7370_v56 }
0x2db2   : > { %7424 = vmatpush1.msra.mxu0 %v7369_v62 }
0x2db3   : > { %7425 = vmatprep.subr.mxu0 %v7368_v11 }
0x2db4   : > { %7426 = vmatpush1.msra.mxu0 %v7367_v63 }
0x2db5   : > { %7427 = vmatprep.subr.mxu0 %v7366_v0 }
0x2db6   : > { %v9178_v60 = vpop.eup %9177  ;;  %7428 = vmatpush1.msra.mxu0 %v7365_v1 }
0x2db7   : > { %v7226_v19 = vadd.f32 1.0, %v9178_v60  ;;  %7429 = vmatprep.subr.mxu0 %v7364_v3  ;;  %v8009_v60 = vld [vmem:[#allocation6] ss:$0 sm:$0xff] }
0x2db8   : > { %7430 = vmatpush1.msra.mxu0 %v7363_v6 }
0x2db9   : > { %9179 = vrcp.f32 %v7226_v19  ;;  %7431 = vmatprep.subr.mxu0 %v7362_v7 }
0x2dba   : > { %7432 = vmatpush1.msra.mxu0 %v7361_v50 }
0x2dbb   : > { %7433 = vmatprep.subr.mxu0 %v7360_v53 }
0x2dbc   : > { %7434 = vmatpush1.msra.mxu0 %v7359_v61 }
0x2dc6   : > { %v9180_v20 = vpop.eup %9179 }
0x2dc7   : > { %v7229_v21 = vmul.f32 %v9180_v20, %v7222_v17  ;;  %v8008_v17 = vld [vmem:[#allocation4] ss:$0 sm:$0xff] }
0x2dc9   : > { %8944 = vmatmul.mubr.msk.f32.vlgmr.msra.gmra.mxu1 %vm6637_vm9, %v7229_v21 }
0x2dfe   : > { %v6973_v24 = vpop.f32.mrf.mxu1 }
0x2dff   : > { %v6974_v22 = vadd.f32 %v6973_v24, %v10284_v47 }
0x2e00   : > { %v6975_v23 = vpop.f32.mrf.mxu1 }
0x2e01   : > { %9181 = vtanh.f32 %v6974_v22  ;;  %v6976_v26 = vadd.f32 %v6975_v23, %v10288_v35 }
0x2e03   : > { %9183 = vtanh.f32 %v6976_v26 }
0x2e0e   : > { %v9182_v27 = vpop.eup %9181 }
0x2e0f   : > { %6984 = vst [vmem:[%s10294_s2 + $0x10] sm:$0x1f] %v9182_v27  ;;  %v7391_v27 = vld [vmem:[%s9568_s30] sm:$0x3] }
0x2e10   : > { %v9184_v28 = vpop.eup %9183 }
0x2e11   : > { %6985 = vst [vmem:[%s10294_s2 + $0x18] sm:$0x1f] %v9184_v28  ;;  %v7396_v28 = vrot.slane %v7391_v27, %v6893_v31  ;;  %s8016_s2 = sshll.u32 %s10468_s16, 2 }
0x2e12   : > { %s1429_s3 = scalar_lea.vmem %s9578_s19, %s8016_s2 }
0x2e89   : > { %v7315_v30 = vpop.f32.mrf.mxu1 }
0x2e8a   : > { %v7316_v32 = vadd.f32 %v8006_v29, %v7315_v30  ;;  %v7400_v29 = vrot.slane %v7391_v27, %v6897_v33 }
0x2e8b   : > { %v8945_v34 = vpop.f32.mrf.mxu1 }
0x2e8c   : > { %v7320_v47 = vsel %vm7319_vm14, %v7316_v32, 0.0 }
0x2e8d   : > { %7321 = vadd.xlane.f32.xlu0 %v7320_v47 }
0x2f16   : > { %v7322_v36 = vpop.xlane.xlu0 %7321 }
0x2f17   : > { %v10327_v35 = vmul.f32 0.00862069, %v7322_v36 }
0x2f19   : > { %v10330_v37 = vsub.f32 %v7316_v32, %v10327_v35  ;;  %v7329_v10 = vmul.f32 %v10327_v35, %v10327_v35 }
0x2f1b   : > { %v7325_v38 = vmul.f32 %v10330_v37, %v10330_v37  ;;  %v7330_v12 = vmul.f32 12.0, %v7329_v10 }
0x2f1d   : > { %v7326_v39 = vsel %vm7319_vm14, %v7325_v38, 0.0 }
0x2f1e   : > { %7327 = vadd.xlane.f32.xlu1 %v7326_v39 }
0x2fa7   : > { %v7328_v13 = vpop.xlane.xlu1 %7327 }
0x2fa8   : > { %v7331_v14 = vsub.f32 %v7328_v13, %v7330_v12 }
0x2faa   : > { %v7332_v4 = vmul.f32 0.00862069, %v7331_v14 }
0x2fac   : > { %v7333_v15 = vadd.f32 1e-05, %v7332_v4 }
0x2fae   : > { %9185 = vrsqrt.f32 %v7333_v15 }
0x2fbb   : > { %v9186_v16 = vpop.eup %9185 }
0x2fbc   : > { %v7335_v18 = vmul.f32 %v9186_v16, %v10330_v37 }
0x2fbe   : > { %v7343_v19 = vmul.f32 %v8008_v17, %v7335_v18 }
0x2fc0   : > { %v7351_v20 = vadd.f32 %v8009_v60, %v7343_v19 }
0x2fc2   : > { %v8010_v21 = vmul.f32 -1.442695, %v7351_v20 }
0x2fc4   : > { %9187 = vpow2.f32 %v8010_v21 }
0x2fd1   : > { %v9188_v24 = vpop.eup %9187 }
0x2fd2   : > { %v7355_v22 = vadd.f32 1.0, %v9188_v24 }
0x2fd4   : > { %9189 = vrcp.f32 %v7355_v22 }
0x2fe1   : > { %v9190_v23 = vpop.eup %9189 }
0x2fe2   : > { %v7358_v26 = vmul.f32 %v9190_v23, %v7351_v20 }
0x2fe4   : > { %7468 = vmatmul.mubr.f32.vlgmr.msra.gmra.mxu0 %v7358_v26 }
0x30a4   : > { %v7469_v30 = vpop.f32.mrf.mxu0 }
0x30a5   : > { %v7470_v32 = vadd.f32 %v7469_v30, %v7396_v28 }
0x30a6   : > { %v7471_v34 = vpop.f32.mrf.mxu0 }
0x30a7   : > { %v7472_v47 = vadd.f32 %v7471_v34, %v7400_v29  ;;  %9191 = vtanh.f32 %v7470_v32 }
0x30a9   : > { %9193 = vtanh.f32 %v7472_v47 }
0x30b4   : > { %v9192_v36 = vpop.eup %9191 }
0x30b6   : > { %v9194_v35 = vpop.eup %9193 }
0x30b7   : > { %v7478_v37 = vcombine.low %v9192_v36, %v9194_v35 }
0x30b9   : > { %8011 = vst.sshfl [vmem:[%s1429_s3] sm:$0x33 pattern:$0x76325410] %v7478_v37 }
0x30ba PF: > { %s106_s15 = sadd.s32 1, %s9287_s15  }
0x30bb   : > { %p103_p8 = scmp.ge.s32.totalorder %s106_s15, 4  }
0x30bd   :  { %105 = sbr.rel (!%p103_p8) target bundleno = 80 (0x50), region = 359 }
0x30c2   :  { %7525 = vsyncpa [#allocation3], 1 }
0x30c3   :  { %7527 = vsyncpa [#allocation3 + $0x1], 1 }
0x30c4   :  { %7528 = vsyncpa [#allocation5], 1 }

</bundles_post_ra>
